<compile_context>
chip_gen: v7x
topology: tpu7x:2x2x1
jax: 0.10.0
libtpu: 0.0.40
codegen_flags: <defaults>
</compile_context>

<pallas_src>
import jax
import jax.numpy as jnp
from jax.experimental import pallas as pl
from jax.experimental.pallas import tpu as pltpu

HIDDEN = 512


# ----------------------------- Pallas kernel ------------------------------ #
def _cvae_kernel(
    x_ref,       # (TM, input_dim)      bf16  flattened image tile
    y_ref,       # (TM, 1)              int32 class labels
    eps_ref,     # (TM, Lp)             f32   N(0,1) noise, lane-padded
    w1x_ref,     # (input_dim, HIDDEN)  bf16  fc1 weight, x-part
    ytab_ref,    # (NCP, 2*HIDDEN)      f32   [W1_y + b1 | W3_y + b3] class table
    w2122_ref,   # (HIDDEN, 2*Lp)       bf16  fused fc21|fc22, lane-padded
    b2122_ref,   # (1, 2*Lp)            f32
    w3z_ref,     # (Lp, HIDDEN)         bf16  fc3 weight, z-part (zero pad rows)
    w4_ref,      # (HIDDEN, Dp)         bf16  fc4 weight, lane-padded
    b4_ref,      # (1, Dp)              f32
    recon_ref,   # (TM, Dp)             bf16  out (padded; wrapper slices)
    ml_ref,      # (TM, 2*Lp)           f32   out: [mu | pad | logvar | pad]
):
    f32 = jnp.float32
    bf16 = jnp.bfloat16

    tm = y_ref.shape[0]
    ncp = ytab_ref.shape[0]
    hidden = ytab_ref.shape[1] // 2
    lp = ml_ref.shape[1] // 2

    # ---- class-embedding gather via one-hot MXU matmul (exact in f32) ----
    # one_hot(y) @ [W1_y + b1 | W3_y + b3]  ->  (TM, 2*HIDDEN)
    cls_iota = jax.lax.broadcasted_iota(jnp.int32, (tm, ncp), 1)
    onehot = jnp.where(y_ref[...] == cls_iota, 1.0, 0.0).astype(f32)
    ybias = jnp.dot(onehot, ytab_ref[...], preferred_element_type=f32)

    # ---- encode: h1 = relu(x @ W1_x + (W1_y[y] + b1)) ----
    h1 = jnp.dot(x_ref[...], w1x_ref[...], preferred_element_type=f32)
    h1 = jnp.maximum(h1 + ybias[:, :hidden], 0.0)

    # ---- fused fc21 / fc22 : one MXU pass -> [mu | logvar] (lane-dense) ----
    ml = jnp.dot(h1.astype(bf16), w2122_ref[...], preferred_element_type=f32)
    ml = ml + b2122_ref[...]
    mu = ml[:, :lp]        # 128-lane tile aligned
    logvar = ml[:, lp:]    # 128-lane tile aligned

    # ---- reparameterize (f32 elementwise; eps supplied from the wrapper) ----
    std = jnp.exp(0.5 * logvar)
    z = mu + eps_ref[...] * std

    # ---- decode: h3 = relu(z @ W3_z + (W3_y[y] + b3)) ----
    h3 = jnp.dot(z.astype(bf16), w3z_ref[...], preferred_element_type=f32)
    h3 = jnp.maximum(h3 + ybias[:, hidden:], 0.0)

    # ---- fc4 + sigmoid (lane-dense bf16 store) ----
    logits = jnp.dot(h3.astype(bf16), w4_ref[...], preferred_element_type=f32)
    logits = logits + b4_ref[...]
    recon_ref[...] = jax.nn.sigmoid(logits).astype(recon_ref.dtype)
    ml_ref[...] = ml


# ------------------------------ JAX wrapper ------------------------------- #
def _round_up(x, m):
    return (x + m - 1) // m * m


def init_cvae_params(key, input_dim, latent_dim, num_classes, hidden=HIDDEN):
    """PyTorch-Linear-like uniform init; same parameter layout as the nn.Module."""
    def linear(k, fan_in, fan_out):
        kw, kb = jax.random.split(k)
        bound = 1.0 / jnp.sqrt(fan_in)
        w = jax.random.uniform(kw, (fan_in, fan_out), jnp.float32, -bound, bound)
        b = jax.random.uniform(kb, (1, fan_out), jnp.float32, -bound, bound)
        return w, b

    k1, k2, k3, k4, k5 = jax.random.split(key, 5)
    w1, b1 = linear(k1, input_dim + num_classes, hidden)     # fc1
    w21, b21 = linear(k2, hidden, latent_dim)                # fc21
    w22, b22 = linear(k3, hidden, latent_dim)                # fc22
    w3, b3 = linear(k4, latent_dim + num_classes, hidden)    # fc3
    w4, b4 = linear(k5, hidden, input_dim)                   # fc4
    return dict(w1=w1, b1=b1, w21=w21, b21=b21, w22=w22, b22=b22,
                w3=w3, b3=b3, w4=w4, b4=b4)


def cvae_forward(x, y, eps, params, *, input_dim, latent_dim, num_classes, tm=None):
    """Equivalent of CVAE.forward(x, y) -> (recon, mu, logvar)."""
    B = x.shape[0]
    f32, bf16 = jnp.float32, jnp.bfloat16

    x_flat = x.reshape(B, input_dim).astype(f32)              # x.view(-1, D)

    # ----- tile policy (per perf review) -------------------------------- #
    # Two tiles when the padded batch allows it so both v7x TensorCores get
    # work ("parallel" grid axis); the extra ~0.35us step is negligible on
    # single-TC v5e/v6e.  Large batches cap at tm=512 (near HBM roofline).
    b128 = _round_up(max(B, 1), 128)
    if tm is None:
        if b128 <= 128:
            tm = 128
        elif b128 <= 1024:
            tm = b128 // 2
        else:
            tm = 512
    bp = _round_up(max(B, tm), tm)

    # ----- parameter prep: split / fuse / fold biases / lane-pad --------- #
    hid = HIDDEN
    lp = _round_up(latent_dim, 128)        # lane-padded latent width
    dp = _round_up(input_dim, 128)         # lane-padded recon width
    ncp = _round_up(num_classes, 128)      # padded class-table rows (MXU K dim)

    w1 = params["w1"]                                          # (in+nc, H)
    w1x = w1[:input_dim].astype(bf16)
    w1y = w1[input_dim:]                                       # (nc, H)
    w3 = params["w3"]                                          # (latent+nc, H)
    w3y = w3[latent_dim:]                                      # (nc, H)

    # class table with biases folded in: row c = [W1_y[c]+b1 | W3_y[c]+b3]
    ytab = jnp.zeros((ncp, 2 * hid), f32)
    ytab = ytab.at[:num_classes, :hid].set(w1y + params["b1"])
    ytab = ytab.at[:num_classes, hid:].set(w3y + params["b3"])

    # fused + lane-padded fc21|fc22
    w2122 = jnp.zeros((hid, 2 * lp), f32)
    w2122 = w2122.at[:, :latent_dim].set(params["w21"])
    w2122 = w2122.at[:, lp:lp + latent_dim].set(params["w22"])
    w2122 = w2122.astype(bf16)
    b2122 = jnp.zeros((1, 2 * lp), f32)
    b2122 = b2122.at[:, :latent_dim].set(params["b21"])
    b2122 = b2122.at[:, lp:lp + latent_dim].set(params["b22"])

    # lane-padded fc3 z-part (zero rows latent..lp-1 so padded z lanes are inert)
    w3z = jnp.zeros((lp, hid), f32).at[:latent_dim].set(w3[:latent_dim]).astype(bf16)

    # lane-padded fc4
    w4p = jnp.zeros((hid, dp), f32).at[:, :input_dim].set(params["w4"]).astype(bf16)
    b4p = jnp.zeros((1, dp), f32).at[:, :input_dim].set(params["b4"])

    # ----- pad batch-streamed inputs ------------------------------------- #
    x_p = jnp.pad(x_flat, ((0, bp - B), (0, 0))).astype(bf16)
    y_p = jnp.pad(y.astype(jnp.int32).reshape(B, 1), ((0, bp - B), (0, 0)))
    eps_p = jnp.zeros((bp, lp), f32).at[:B, :latent_dim].set(eps.astype(f32))

    grid = (bp // tm,)
    row = lambda bs: pl.BlockSpec(bs, lambda i: (i, 0))        # streamed per tile
    const = lambda bs: pl.BlockSpec(bs, lambda i: (0, 0))      # resident weights

    flops = 2 * bp * (ncp * 2 * hid + input_dim * hid + hid * 2 * lp
                      + lp * hid + hid * dp)
    bytes_in = sum(int(a.size) * a.dtype.itemsize
                   for a in (x_p, y_p, eps_p, w1x, ytab, w2122, b2122, w3z, w4p, b4p))
    bytes_out = bp * dp * 2 + bp * 2 * lp * 4
    cost = pl.CostEstimate(
        flops=int(flops),
        transcendentals=int(bp * (lp + dp)),
        bytes_accessed=int(bytes_in + bytes_out),
    )

    recon_p, ml = pl.pallas_call(
        _cvae_kernel,
        grid=grid,
        in_specs=[
            row((tm, input_dim)),          # x
            row((tm, 1)),                  # y (int32 column)
            row((tm, lp)),                 # eps (lane-padded)
            const((input_dim, hid)),       # w1x
            const((ncp, 2 * hid)),         # class table [W1_y+b1 | W3_y+b3]
            const((hid, 2 * lp)),          # w2122 (padded)
            const((1, 2 * lp)),            # b2122 (padded)
            const((lp, hid)),              # w3z (padded)
            const((hid, dp)),              # w4 (padded)
            const((1, dp)),                # b4 (padded)
        ],
        out_specs=(row((tm, dp)), row((tm, 2 * lp))),
        out_shape=(
            jax.ShapeDtypeStruct((bp, dp), bf16),        # recon (padded, bf16)
            jax.ShapeDtypeStruct((bp, 2 * lp), f32),     # [mu | pad | logvar | pad]
        ),
        compiler_params=pltpu.CompilerParams(dimension_semantics=("parallel",)),
        cost_estimate=cost,
    )(x_p, y_p, eps_p, w1x, ytab, w2122, b2122, w3z, w4p, b4p)

    recon = recon_p[:B, :input_dim]
    mu = ml[:B, :latent_dim]
    logvar = ml[:B, lp:lp + latent_dim]
    return recon, mu, logvar


# --------------------------------- main ----------------------------------- #
if __name__ == "__main__":
    # Small CVAE-consistent dims: x is a (B, 1, 8, 8) "image" -> input_dim = 64.
    # B=256 -> padded batch 256, two 128-row tiles (both v7x TensorCores busy).
    B = 256
    input_dim = 64
    latent_dim = 16
    num_classes = 10

    key = jax.random.PRNGKey(0)
    k_param, k_x, k_y, k_eps = jax.random.split(key, 4)

    params = init_cvae_params(k_param, input_dim, latent_dim, num_classes)
    x = jax.random.normal(k_x, (B, 1, 8, 8), jnp.float32)
    y = jax.random.randint(k_y, (B,), 0, num_classes, jnp.int32)
    # eps plays the role of torch.randn_like(std) in reparameterize (deterministic here).
    eps = jax.random.normal(k_eps, (B, latent_dim), jnp.float32)

    recon, mu, logvar = cvae_forward(
        x, y, eps, params,
        input_dim=input_dim, latent_dim=latent_dim, num_classes=num_classes)
    jax.block_until_ready((recon, mu, logvar))

    assert recon.shape == (B, input_dim)
    assert mu.shape == (B, latent_dim)
    assert logvar.shape == (B, latent_dim)
    assert bool(jnp.all(jnp.isfinite(mu))) and bool(jnp.all(jnp.isfinite(logvar)))
    print("KERNEL_OK")
</pallas_src>

<mosaic_0001>
module attributes {stable_mosaic.version = 11 : i64} {
  func.func @_cvae_kernel(%arg0: i32, %arg1: memref<128x64xbf16, #tpu.memory_space<vmem>>, %arg2: memref<128x1xi32, #tpu.memory_space<vmem>>, %arg3: memref<128x128xf32, #tpu.memory_space<vmem>>, %arg4: memref<64x512xbf16, #tpu.memory_space<vmem>>, %arg5: memref<128x1024xf32, #tpu.memory_space<vmem>>, %arg6: memref<512x256xbf16, #tpu.memory_space<vmem>>, %arg7: memref<1x256xf32, #tpu.memory_space<vmem>>, %arg8: memref<128x512xbf16, #tpu.memory_space<vmem>>, %arg9: memref<512x128xbf16, #tpu.memory_space<vmem>>, %arg10: memref<1x128xf32, #tpu.memory_space<vmem>>, %arg11: memref<128x128xbf16, #tpu.memory_space<vmem>>, %arg12: memref<128x256xf32, #tpu.memory_space<vmem>>) attributes {dimension_semantics = [#tpu.dimension_semantics<parallel>], iteration_bounds = array<i64: 2>, scalar_prefetch = 0 : i64, scratch_operands = 0 : i64, tpu.core_type = #tpu.core_type<tc>, window_params = [{transform_indices = @transform_0, window_bounds = array<i64: 128, 64>}, {transform_indices = @transform_1, window_bounds = array<i64: 128, 1>}, {transform_indices = @transform_2, window_bounds = array<i64: 128, 128>}, {pipeline_mode = #tpu.pipeline_mode<synchronous>, transform_indices = @transform_3, window_bounds = array<i64: 64, 512>}, {pipeline_mode = #tpu.pipeline_mode<synchronous>, transform_indices = @transform_4, window_bounds = array<i64: 128, 1024>}, {pipeline_mode = #tpu.pipeline_mode<synchronous>, transform_indices = @transform_5, window_bounds = array<i64: 512, 256>}, {pipeline_mode = #tpu.pipeline_mode<synchronous>, transform_indices = @transform_6, window_bounds = array<i64: 1, 256>}, {pipeline_mode = #tpu.pipeline_mode<synchronous>, transform_indices = @transform_7, window_bounds = array<i64: 128, 512>}, {pipeline_mode = #tpu.pipeline_mode<synchronous>, transform_indices = @transform_8, window_bounds = array<i64: 512, 128>}, {pipeline_mode = #tpu.pipeline_mode<synchronous>, transform_indices = @transform_9, window_bounds = array<i64: 1, 128>}, {transform_indices = @transform_10, window_bounds = array<i64: 128, 128>}, {transform_indices = @transform_11, window_bounds = array<i64: 128, 256>}]} {
    %0 = tpu.iota {dimensions = array<i32: 1>} : vector<128x128xi32>
    %c0 = arith.constant 0 : index
    %c0_0 = arith.constant 0 : index
    %1 = vector.load %arg2[%c0, %c0_0] : memref<128x1xi32, #tpu.memory_space<vmem>>, vector<128x1xi32>
    %2 = vector.broadcast %1 : vector<128x1xi32> to vector<128x128xi32>
    %3 = arith.cmpi eq, %2, %0 : vector<128x128xi32>
    %cst = arith.constant 1.000000e+00 : f32
    %cst_1 = arith.constant 0.000000e+00 : f32
    %4 = vector.broadcast %cst : f32 to vector<128x128xf32>
    %5 = vector.broadcast %cst_1 : f32 to vector<128x128xf32>
    %6 = arith.select %3, %4, %5 : vector<128x128xi1>, vector<128x128xf32>
    %c0_2 = arith.constant 0 : index
    %c0_3 = arith.constant 0 : index
    %7 = vector.load %arg5[%c0_2, %c0_3] : memref<128x1024xf32, #tpu.memory_space<vmem>>, vector<128x1024xf32>
    %cst_4 = arith.constant dense<0.000000e+00> : vector<128x1024xf32>
    %8 = tpu.matmul %6, %7, %cst_4 {dimension_numbers = #tpu.dot_dimension_numbers<[1], [0], [0], [1], [0, 0, 1, 1], [], []>} : vector<128x128xf32>, vector<128x1024xf32>, vector<128x1024xf32> -> vector<128x1024xf32>
    %c0_5 = arith.constant 0 : index
    %c0_6 = arith.constant 0 : index
    %9 = vector.load %arg1[%c0_5, %c0_6] : memref<128x64xbf16, #tpu.memory_space<vmem>>, vector<128x64xbf16>
    %c0_7 = arith.constant 0 : index
    %c0_8 = arith.constant 0 : index
    %10 = vector.load %arg4[%c0_7, %c0_8] : memref<64x512xbf16, #tpu.memory_space<vmem>>, vector<64x512xbf16>
    %cst_9 = arith.constant dense<0.000000e+00> : vector<128x512xf32>
    %11 = tpu.matmul %9, %10, %cst_9 {dimension_numbers = #tpu.dot_dimension_numbers<[1], [0], [0], [1], [0, 0, 1, 1], [], []>} : vector<128x64xbf16>, vector<64x512xbf16>, vector<128x512xf32> -> vector<128x512xf32>
    %12 = vector.extract_strided_slice %8 {offsets = [0, 0], sizes = [128, 512], strides = [1, 1]} : vector<128x1024xf32> to vector<128x512xf32>
    %13 = arith.addf %11, %12 : vector<128x512xf32>
    %cst_10 = arith.constant 0.000000e+00 : f32
    %14 = vector.broadcast %cst_10 : f32 to vector<128x512xf32>
    %15 = arith.maximumf %13, %14 : vector<128x512xf32>
    %16 = arith.truncf %15 : vector<128x512xf32> to vector<128x512xbf16>
    %c0_11 = arith.constant 0 : index
    %c0_12 = arith.constant 0 : index
    %17 = vector.load %arg6[%c0_11, %c0_12] : memref<512x256xbf16, #tpu.memory_space<vmem>>, vector<512x256xbf16>
    %cst_13 = arith.constant dense<0.000000e+00> : vector<128x256xf32>
    %18 = tpu.matmul %16, %17, %cst_13 {dimension_numbers = #tpu.dot_dimension_numbers<[1], [0], [0], [1], [0, 0, 1, 1], [], []>} : vector<128x512xbf16>, vector<512x256xbf16>, vector<128x256xf32> -> vector<128x256xf32>
    %c0_14 = arith.constant 0 : index
    %c0_15 = arith.constant 0 : index
    %19 = vector.load %arg7[%c0_14, %c0_15] : memref<1x256xf32, #tpu.memory_space<vmem>>, vector<1x256xf32>
    %20 = vector.broadcast %19 : vector<1x256xf32> to vector<128x256xf32>
    %21 = arith.addf %18, %20 : vector<128x256xf32>
    %22 = vector.extract_strided_slice %21 {offsets = [0, 0], sizes = [128, 128], strides = [1, 1]} : vector<128x256xf32> to vector<128x128xf32>
    %23 = vector.extract_strided_slice %21 {offsets = [0, 128], sizes = [128, 128], strides = [1, 1]} : vector<128x256xf32> to vector<128x128xf32>
    %cst_16 = arith.constant 5.000000e-01 : f32
    %24 = vector.broadcast %cst_16 : f32 to vector<128x128xf32>
    %25 = arith.mulf %24, %23 : vector<128x128xf32>
    %26 = math.exp %25 : vector<128x128xf32>
    %c0_17 = arith.constant 0 : index
    %c0_18 = arith.constant 0 : index
    %27 = vector.load %arg3[%c0_17, %c0_18] : memref<128x128xf32, #tpu.memory_space<vmem>>, vector<128x128xf32>
    %28 = arith.mulf %27, %26 : vector<128x128xf32>
    %29 = arith.addf %22, %28 : vector<128x128xf32>
    %30 = arith.truncf %29 : vector<128x128xf32> to vector<128x128xbf16>
    %c0_19 = arith.constant 0 : index
    %c0_20 = arith.constant 0 : index
    %31 = vector.load %arg8[%c0_19, %c0_20] : memref<128x512xbf16, #tpu.memory_space<vmem>>, vector<128x512xbf16>
    %cst_21 = arith.constant dense<0.000000e+00> : vector<128x512xf32>
    %32 = tpu.matmul %30, %31, %cst_21 {dimension_numbers = #tpu.dot_dimension_numbers<[1], [0], [0], [1], [0, 0, 1, 1], [], []>} : vector<128x128xbf16>, vector<128x512xbf16>, vector<128x512xf32> -> vector<128x512xf32>
    %33 = vector.extract_strided_slice %8 {offsets = [0, 512], sizes = [128, 512], strides = [1, 1]} : vector<128x1024xf32> to vector<128x512xf32>
    %34 = arith.addf %32, %33 : vector<128x512xf32>
    %cst_22 = arith.constant 0.000000e+00 : f32
    %35 = vector.broadcast %cst_22 : f32 to vector<128x512xf32>
    %36 = arith.maximumf %34, %35 : vector<128x512xf32>
    %37 = arith.truncf %36 : vector<128x512xf32> to vector<128x512xbf16>
    %c0_23 = arith.constant 0 : index
    %c0_24 = arith.constant 0 : index
    %38 = vector.load %arg9[%c0_23, %c0_24] : memref<512x128xbf16, #tpu.memory_space<vmem>>, vector<512x128xbf16>
    %cst_25 = arith.constant dense<0.000000e+00> : vector<128x128xf32>
    %39 = tpu.matmul %37, %38, %cst_25 {dimension_numbers = #tpu.dot_dimension_numbers<[1], [0], [0], [1], [0, 0, 1, 1], [], []>} : vector<128x512xbf16>, vector<512x128xbf16>, vector<128x128xf32> -> vector<128x128xf32>
    %c0_26 = arith.constant 0 : index
    %c0_27 = arith.constant 0 : index
    %40 = vector.load %arg10[%c0_26, %c0_27] : memref<1x128xf32, #tpu.memory_space<vmem>>, vector<1x128xf32>
    %41 = vector.broadcast %40 : vector<1x128xf32> to vector<128x128xf32>
    %42 = arith.addf %39, %41 : vector<128x128xf32>
    %43 = arith.negf %42 : vector<128x128xf32>
    %44 = math.exp %43 : vector<128x128xf32>
    %cst_28 = arith.constant 1.000000e+00 : f32
    %45 = vector.broadcast %cst_28 : f32 to vector<128x128xf32>
    %46 = arith.addf %45, %44 : vector<128x128xf32>
    %47 = arith.divf %45, %46 : vector<128x128xf32>
    %48 = arith.truncf %47 : vector<128x128xf32> to vector<128x128xbf16>
    %c0_29 = arith.constant 0 : index
    %c0_30 = arith.constant 0 : index
    %49 = vector.load %arg11[%c0_29, %c0_30] : memref<128x128xbf16, #tpu.memory_space<vmem>>, vector<128x128xbf16>
    tpu.vector_store %arg11[%c0_29, %c0_30], %48 {strides = array<i32>} : memref<128x128xbf16, #tpu.memory_space<vmem>>, vector<128x128xbf16>,
    %c0_31 = arith.constant 0 : index
    %c0_32 = arith.constant 0 : index
    %50 = vector.load %arg12[%c0_31, %c0_32] : memref<128x256xf32, #tpu.memory_space<vmem>>, vector<128x256xf32>
    tpu.vector_store %arg12[%c0_31, %c0_32], %21 {strides = array<i32>} : memref<128x256xf32, #tpu.memory_space<vmem>>, vector<128x256xf32>,
    return
  }
  func.func @transform_0(%arg0: i32) -> (i32, i32) {
    %c0_i32 = arith.constant 0 : i32
    %c0_i32_0 = arith.constant 0 : i32
    return %arg0, %c0_i32 : i32, i32
  }
  func.func @transform_1(%arg0: i32) -> (i32, i32) {
    %c0_i32 = arith.constant 0 : i32
    %c0_i32_0 = arith.constant 0 : i32
    return %arg0, %c0_i32 : i32, i32
  }
  func.func @transform_2(%arg0: i32) -> (i32, i32) {
    %c0_i32 = arith.constant 0 : i32
    %c0_i32_0 = arith.constant 0 : i32
    return %arg0, %c0_i32 : i32, i32
  }
  func.func @transform_3(%arg0: i32) -> (i32, i32) {
    %c0_i32 = arith.constant 0 : i32
    %c0_i32_0 = arith.constant 0 : i32
    %c0_i32_1 = arith.constant 0 : i32
    return %c0_i32, %c0_i32_0 : i32, i32
  }
  func.func @transform_4(%arg0: i32) -> (i32, i32) {
    %c0_i32 = arith.constant 0 : i32
    %c0_i32_0 = arith.constant 0 : i32
    %c0_i32_1 = arith.constant 0 : i32
    return %c0_i32, %c0_i32_0 : i32, i32
  }
  func.func @transform_5(%arg0: i32) -> (i32, i32) {
    %c0_i32 = arith.constant 0 : i32
    %c0_i32_0 = arith.constant 0 : i32
    %c0_i32_1 = arith.constant 0 : i32
    return %c0_i32, %c0_i32_0 : i32, i32
  }
  func.func @transform_6(%arg0: i32) -> (i32, i32) {
    %c0_i32 = arith.constant 0 : i32
    %c0_i32_0 = arith.constant 0 : i32
    %c0_i32_1 = arith.constant 0 : i32
    return %c0_i32, %c0_i32_0 : i32, i32
  }
  func.func @transform_7(%arg0: i32) -> (i32, i32) {
    %c0_i32 = arith.constant 0 : i32
    %c0_i32_0 = arith.constant 0 : i32
    %c0_i32_1 = arith.constant 0 : i32
    return %c0_i32, %c0_i32_0 : i32, i32
  }
  func.func @transform_8(%arg0: i32) -> (i32, i32) {
    %c0_i32 = arith.constant 0 : i32
    %c0_i32_0 = arith.constant 0 : i32
    %c0_i32_1 = arith.constant 0 : i32
    return %c0_i32, %c0_i32_0 : i32, i32
  }
  func.func @transform_9(%arg0: i32) -> (i32, i32) {
    %c0_i32 = arith.constant 0 : i32
    %c0_i32_0 = arith.constant 0 : i32
    %c0_i32_1 = arith.constant 0 : i32
    return %c0_i32, %c0_i32_0 : i32, i32
  }
  func.func @transform_10(%arg0: i32) -> (i32, i32) {
    %c0_i32 = arith.constant 0 : i32
    %c0_i32_0 = arith.constant 0 : i32
    return %arg0, %c0_i32 : i32, i32
  }
  func.func @transform_11(%arg0: i32) -> (i32, i32) {
    %c0_i32 = arith.constant 0 : i32
    %c0_i32_0 = arith.constant 0 : i32
    return %arg0, %c0_i32 : i32, i32
  }
}

</mosaic_0001>

<bundles_post_ra>
// kernel: tpu_custom_call.1
= control target key start
LH: loop header
LB: loop body
LE: loop exit
PB: predicated region body
PF: predicated region fallthrough
CT: control target
= control target key end

     0   :  { %s6798_s0 = inlined_call_operand.vmem [shape: bf16[256,64], index: 0, kind: input, shape index: {}]   ;;  %s6799_s1 = inlined_call_operand.vmem [shape: s32[256,1], index: 1, kind: input, shape index: {}]   ;;  %s6800_s2 = inlined_call_operand.vmem [shape: f32[256,128], index: 2, kind: input, shape index: {}]   ;;  %s6801_s3 = inlined_call_operand.vmem [shape: bf16[64,512], index: 3, kind: input, shape index: {}]   ;;  %s6802_s4 = inlined_call_operand.hbm [shape: f32[128,1024], index: 4, kind: input, shape index: {}]   ;;  %s6803_s5 = inlined_call_operand.hbm [shape: bf16[512,256], index: 5, kind: input, shape index: {}]   ;;  %s6804_s6 = inlined_call_operand.vmem [shape: f32[1,256], index: 6, kind: input, shape index: {}]   ;;  %s6805_s7 = inlined_call_operand.hbm [shape: bf16[128,512], index: 7, kind: input, shape index: {}]   ;;  %s6806_s8 = inlined_call_operand.hbm [shape: bf16[512,128], index: 8, kind: input, shape index: {}]   ;;  %s6807_s9 = inlined_call_operand.vmem [shape: f32[1,128], index: 9, kind: input, shape index: {}]   ;;  %s6808_s10 = inlined_call_operand.hbm [shape: bf16[256,128], index: 10, kind: output, shape index: {0}]   ;;  %s6809_s11 = inlined_call_operand.hbm [shape: f32[256,256], index: 11, kind: output, shape index: {1}]  }
   0x1   :  { %6823 = sst [smem:[#allocation107_spill]] %s6803_s5 }
   0x2   :  { %17 = vsyncpa [#allocation3], 0 }
   0x3   :  { %18 = vsyncpa [#allocation6], 0 }
   0x4   :  { %19 = vsyncpa [#allocation9], 0 }
   0x5   :  { %20 = vsyncpa [#allocation4], 0 }
   0x6   :  { %22 = vsyncpa [#allocation4 + $0x1], 0 }
   0x7   :  { %23 = vsyncpa [#allocation12], 0 }
   0x8   :  { %25 = vsyncpa [#allocation12 + $0x1], 0  ;;  %s5358_s17 = smov 0   ;;  %s5360_s18 = smov 0  }
   0x9   :  { %s5362_s19 = smov 0   ;;  %s5364_s20 = smov 0  }
   0xa LB: > { %6824 = sst [smem:[#allocation18_spill]] %s5264_s17  ;;  %s5379_s21 = sadd.s32 4294967295, %s5276_s20   ;;  %s5276_s20 = sphi %s5364_s20, %s7017_s20   ;;  %s5272_s19 = sphi %s5362_s19, %s7019_s19   ;;  %s5268_s18 = sphi %s5360_s18, %s7021_s18   ;;  %s5264_s17 = sphi %s5358_s17, %s7020_s17  }
   0xb   : > { %6825 = sst [smem:[#allocation19_spill]] %s5272_s19  ;;  %s3973_s22 = sadd.s32 4294967294, %s5276_s20  }
   0xc   : > { %6826 = sst [smem:[#allocation20_spill]] %s5276_s20  ;;  %s5383_s23 = sadd.s32 1, %s5276_s20  }
   0xd   : > { %6827 = sst [smem:[#allocation21_spill]] %s5383_s23  ;;  %s263_s24 = sadd.s32 1, %s5272_s19 }
   0xe   : > { %s260_s25 = ssub.s32 %s5276_s20, %s5383_s23  ;;  %p273_p0 = scmp.ne.s32.totalorder %s5272_s19, %s5268_s18 }
   0xf   : > { %p261_p1 = scmp.eq.s32.totalorder %s260_s25, 0  ;;  %p274_p2 = scmp.eq.s32.totalorder %s5379_s21, 1 }
  0x10   : > { %p279_p3 = scmp.ne.s32.totalorder %s5268_s18, %s5264_s17  ;;  %p280_p4 = scmp.eq.s32.totalorder %s3973_s22, 1 }
  0x11   : > { %s5394_s26 = scalar_select %p261_p1, %s5272_s19, %s263_s24  }
  0x12   : > { %p5396_p5 = por %p274_p2, %p273_p0  ;;  %p5400_p6 = por %p280_p4, %p279_p3 }
  0x13   : > { %6828 = sst [smem:[#allocation22_spill]] %s5394_s26  ;;  %p3974_p7 = scmp.ge.s32.totalorder %s5276_s20, 1 }
  0x14   : > { %s6829_s27 = scalar_select %p5396_p5, 1, 0 }
  0x15   : > { %s6830_s28 = scalar_select %p5400_p6, 1, 0 }
  0x16   : > { %p313_p8 = scmp.lt.s32.totalorder %s5276_s20, 3  ;;  %p6811_p9 = scmp.eq.s32.totalorder %s5379_s21, 0 }
  0x17   : > { %6831 = sst [smem:[#allocation23_spill]] %s6830_s28  ;;  %s5278_s30 = smov [#allocation5]  }
  0x18   : > { %p5407_p10 = pnand %p3974_p7, %p313_p8  ;;  %s341_s12 = sshll.u32 %s5278_s30, 4  ;;  %s342_s12 = int_to_ptr.vmem [resolvable:$true] %s341_s12 }
  0x19   : > { %s5279_s14 = smov [#allocation2]   ;;  %s6834_s5 = sld [smem:[#allocation107_spill]] }
  0x1a   : > { %s6832_s29 = scalar_select %p5407_p10, 1, 0 }
  0x1b   : > { %p4673_p11 = pneg %p5407_p10  ;;  %s328_s15 = sshll.u32 %s5279_s14, 4  ;;  %s5419_s15 = int_to_ptr.vmem [resolvable:$true] %s328_s15 }
  0x1d   : > { %p5415_p12 = pnand %p6811_p9, %p4673_p11 }
  0x1f   : > { %s5058_s24 = scalar_lea.hbm %s6834_s5, 8192  ;;  %p5429_p0 = pneg %p5415_p12 }
  0x20   : > { %p5059_p13 = scmp.ne.s32.totalorder %s6834_s5, %s5058_s24  ;;  %p5065_p3 = scmp.lt.u32.totalorder %s5058_s24, %s6834_s5 }
  0x22   : > { %p5061_p1 = pnand %p5429_p0, %p5059_p13 }
  0x24   : > { %p5062_p2 = pneg %p5061_p1 }
  0x26   : > { %p5067_p4 = pnand %p5065_p3, %p5062_p2 }
  0x28   : > { %5070 = shalt.err (!%p5067_p4)
}
  0x29   : > { %s5071_s16 = scalar_lea.vmem %s342_s12, 8192  ;;  %p5079_p9 = scmp.lt.s32.totalorder %s342_s12, %s342_s12 }
  0x2a   : > { %p5072_p7 = scmp.ne.s32.totalorder %s342_s12, %s5071_s16  ;;  %p5080_p6 = scmp.lt.s32.totalorder %s5071_s16, %s5071_s16 }
  0x2c   : > { %p5074_p8 = pnand %p5072_p7, %p5429_p0  ;;  %p5081_p5 = por %p5080_p6, %p5079_p9 }
  0x2e   : > { %p5075_p11 = pneg %p5074_p8 }
  0x30   : > { %p5082_p10 = pnand %p5081_p5, %p5075_p11 }
  0x32   : > { %5085 = shalt.err (!%p5082_p10)
}
  0x33   : > { %s5280_s26 = smov 128   ;;  %s5281_s22 = smov 8  }
  0x34   : > { %4679 = dma.hbm_to_vmem [thread:$0]  (!%p5415_p12), %s6834_s5, 8192, %s342_s12, [#allocation6], %s5280_s26, %s5280_s26, %s5281_s22  }
  0x35   : > { %s5086_s23 = scalar_lea.hbm %s6802_s4, 16384 }
  0x36   : > { %p5087_p13 = scmp.ne.s32.totalorder %s6802_s4, %s5086_s23  ;;  %p5093_p9 = scmp.lt.u32.totalorder %s5086_s23, %s6802_s4 }
  0x38   : > { %p5089_p5 = pnand %p5087_p13, %p5429_p0 }
  0x3a   : > { %p5090_p6 = pneg %p5089_p5 }
  0x3c   : > { %p5095_p10 = pnand %p5093_p9, %p5090_p6 }
  0x3e   : > { %5098 = shalt.err (!%p5095_p10)
}
  0x3f   : > { %s5099_s12 = scalar_lea.vmem %s5419_s15, 16384  ;;  %p5107_p4 = scmp.lt.s32.totalorder %s5419_s15, %s5419_s15 }
  0x40   : > { %p5100_p1 = scmp.ne.s32.totalorder %s5419_s15, %s5099_s12  ;;  %p5108_p7 = scmp.lt.s32.totalorder %s5099_s12, %s5099_s12 }
  0x42   : > { %p5102_p2 = pnand %p5100_p1, %p5429_p0  ;;  %p5109_p8 = por %p5108_p7, %p5107_p4 }
  0x44   : > { %p5103_p3 = pneg %p5102_p2 }
  0x46   : > { %p5110_p11 = pnand %p5109_p8, %p5103_p3 }
  0x48   : > { %5113 = shalt.err (!%p5110_p11)
}
  0x49   : > { %s5282_s17 = smov 1024   ;;  %s6819_s20 = smov 64  }
  0x4a   : > { %4676 = dma.hbm_to_vmem [thread:$0]  (!%p5415_p12), %s6802_s4, 16384, %s5419_s15, [#allocation3], %s5282_s17, %s5282_s17, %s6819_s20  }
  0x4b   : > { %s5284_s26 = smov [#allocation7]   ;;  %s5114_s25 = scalar_lea.hbm %s6805_s7, 4096 }
  0x4c   : > { %s357_s22 = sshll.u32 %s5284_s26, 4  ;;  %p5115_p13 = scmp.ne.s32.totalorder %s6805_s7, %s5114_s25  ;;  %s358_s22 = int_to_ptr.vmem [resolvable:$true] %s357_s22 }
  0x4d   : > { %p5121_p9 = scmp.lt.u32.totalorder %s5114_s25, %s6805_s7 }
  0x4e   : > { %p5117_p5 = pnand %p5115_p13, %p5429_p0 }
  0x50   : > { %p5118_p6 = pneg %p5117_p5 }
  0x52   : > { %p5123_p10 = pnand %p5121_p9, %p5118_p6 }
  0x54   : > { %5126 = shalt.err (!%p5123_p10)
}
  0x55   : > { %s5127_s15 = scalar_lea.vmem %s358_s22, 4096  ;;  %p5135_p4 = scmp.lt.s32.totalorder %s358_s22, %s358_s22 }
  0x56   : > { %p5128_p1 = scmp.ne.s32.totalorder %s358_s22, %s5127_s15  ;;  %p5136_p7 = scmp.lt.s32.totalorder %s5127_s15, %s5127_s15 }
  0x58   : > { %p5130_p2 = pnand %p5128_p1, %p5429_p0  ;;  %p5137_p8 = por %p5136_p7, %p5135_p4 }
  0x5a   : > { %p5131_p3 = pneg %p5130_p2 }
  0x5c   : > { %p5138_p11 = pnand %p5137_p8, %p5131_p3 }
  0x5e   : > { %5141 = shalt.err (!%p5138_p11)
}
  0x5f   : > { %s5285_s17 = smov 256   ;;  %s5286_s23 = smov 16  }
  0x60   : > { %4682 = dma.hbm_to_vmem [thread:$0]  (!%p5415_p12), %s6805_s7, 4096, %s358_s22, [#allocation6], %s5285_s17, %s5285_s17, %s5286_s23  }
  0x61   : > { %s5287_s26 = smov [#allocation8]   ;;  %s5142_s14 = scalar_lea.hbm %s6806_s8, 4096 }
  0x62   : > { %s370_s19 = sshll.u32 %s5287_s26, 4  ;;  %p5143_p13 = scmp.ne.s32.totalorder %s6806_s8, %s5142_s14  ;;  %s371_s19 = int_to_ptr.vmem [resolvable:$true] %s370_s19 }
  0x63   : > { %p5149_p9 = scmp.lt.u32.totalorder %s5142_s14, %s6806_s8 }
  0x64   : > { %p5145_p5 = pnand %p5143_p13, %p5429_p0 }
  0x66   : > { %p5146_p6 = pneg %p5145_p5 }
  0x68   : > { %p5151_p10 = pnand %p5149_p9, %p5146_p6 }
  0x6a   : > { %5154 = shalt.err (!%p5151_p10)
}
  0x6b   : > { %s5155_s22 = scalar_lea.vmem %s371_s19, 4096  ;;  %p5163_p4 = scmp.lt.s32.totalorder %s371_s19, %s371_s19 }
  0x6c   : > { %p5156_p1 = scmp.ne.s32.totalorder %s371_s19, %s5155_s22  ;;  %p5164_p7 = scmp.lt.s32.totalorder %s5155_s22, %s5155_s22 }
  0x6e   : > { %p5158_p2 = pnand %p5156_p1, %p5429_p0  ;;  %p5165_p8 = por %p5164_p7, %p5163_p4 }
  0x70   : > { %p5159_p3 = pneg %p5158_p2 }
  0x72   : > { %p5166_p11 = pnand %p5165_p8, %p5159_p3 }
  0x74   : > { %5169 = shalt.err (!%p5166_p11)
}
  0x75   : > { %s5288_s17 = smov 4   ;;  %s6836_s23 = smov 64  }
  0x76   : > { %4685 = dma.hbm_to_vmem [thread:$0]  (!%p5415_p12), %s6806_s8, 4096, %s371_s19, [#allocation9], %s6836_s23, %s6836_s23, %s5288_s17  }
  0x77   : > { %p6837_p13 = scmp.ne.s32.totalorder %s6832_s29, 0 }
  0x79   : > { %416 = sbr.rel (%p6837_p13) target bundleno = 1529 (0x5f9), region = 60 }
  0x80   : > { %p6838_p0 = scmp.eq.s32.totalorder %s5379_s21, 0 }
  0x82   : > { %5243 = dma.done.wait (%p6838_p0), [#allocation3], 16384   ;;  %p6839_p5 = pmov %p6838_p0 }
  0x83   : > { %p6840_p6 = pmov %p6838_p0 }
  0x84   : > { %5245 = vsyncadd (%p6839_p5), [#allocation3], 4294950912 }
  0x85   : > { %5247 = dma.done.wait (%p6840_p6), [#allocation6], 12288   ;;  %p6841_p9 = pmov %p6838_p0 }
  0x86   : > { %p6842_p10 = pmov %p6838_p0 }
  0x87   : > { %5249 = vsyncadd (%p6841_p9), [#allocation6], 4294955008 }
  0x88   : > { %5251 = dma.done.wait (%p6842_p10), [#allocation9], 4096   ;;  %p6843_p12 = pmov %p6838_p0 }
  0x89   : > { %s3987_s29 = sshll.u32 %s5379_s21, 4  ;;  %v6820_v0 = vmov 0   ;;  %v5290_v5 = vmov 0.0   ;;  %v603_v8 = vld [vmem:[#allocation2 + $0x8] sm:$0xff]  ;;  %v602_v11 = vld [vmem:[#allocation2] sm:$0xff]  ;;  %v605_v13 = vld [vmem:[#allocation2 + $0x18] sm:$0xff] }
  0x8a   : > { %5253 = vsyncadd (%p6843_p12), [#allocation9], 4294963200  ;;  %4753 = vset.pattern.permute.xlu1 %v6820_v0  ;;  %4752 = vset.pattern.permute.xlu0 %v6820_v0  ;;  %p484_p1 = scmp.lt.s32.totalorder %s3987_s29, 31  ;;  %v611_v9 = vld [vmem:[#allocation2 + $0x48] sm:$0xff]  ;;  %v610_v12 = vld [vmem:[#allocation2 + $0x40] sm:$0xff]  ;;  %p7012_p3 = scmp.ne.s32.totalorder %s6829_s27, 0 }
  0x8b   : > { %794 = vmatprep.mubr.f32.mxu0 %v5290_v5  ;;  %955 = vmatprep.mubr.f32.mxu1 %v5290_v5  ;;  %v4461_v10 = vpack.c.bf16 %v611_v9, %v603_v8  ;;  %v4463_v14 = vpack.c.bf16 %v610_v12, %v602_v11  ;;  %v613_v15 = vld [vmem:[#allocation2 + $0x58] sm:$0xff]  ;;  %v604_v16 = vld [vmem:[#allocation2 + $0x10] sm:$0xff]  ;;  %v619_v22 = vld [vmem:[#allocation2 + $0x88] sm:$0xff]  ;;  %s5292_s15 = smov [#allocation11]  }
  0x8c   : > { %s7023_s29 = smov (!%p484_p1, %s3987_s29), 31  ;;  %v612_v17 = vld [vmem:[#allocation2 + $0x50] sm:$0xff]  ;;  %v4493_v20 = vpack.c.bf16 %v613_v15, %v605_v13  ;;  %v627_v23 = vld [vmem:[#allocation2 + $0xc8] sm:$0xff]  ;;  %v618_v24 = vld [vmem:[#allocation2 + $0x80] sm:$0xff]  ;;  %s5174_s22 = sshll.u32 %s5292_s15, 4  ;;  %s5175_s22 = int_to_ptr.vmem [resolvable:$false] %s5174_s22 }
  0x8d   : > { %s3990_s13 = sshll.u32 %s7023_s29, 3  ;;  %4462 = vmatprep.subr.bf16.mxu0 %v4461_v10  ;;  %v4495_v21 = vpack.c.bf16 %v612_v17, %v604_v16  ;;  %v4465_v25 = vpack.c.bf16 %v627_v23, %v619_v22  ;;  %v626_v26 = vld [vmem:[#allocation2 + $0xc0] sm:$0xff]  ;;  %v621_v27 = vld [vmem:[#allocation2 + $0x98] sm:$0xff]  ;;  %v620_v31 = vld [vmem:[#allocation2 + $0x90] sm:$0xff]  ;;  %s3988_s19 = sshll.u32 %s7023_s29, 2 }
  0x8e   : > { %s5532_s26 = scalar_lea.vmem %s6799_s1, %s3990_s13  ;;  %v629_v28 = vld [vmem:[#allocation2 + $0xd8] sm:$0xff]  ;;  %4464 = vmatpush1.bf16.msra.mxu0 %v4463_v14  ;;  %4494 = vmatprep.subr.bf16.mxu1 %v4493_v20  ;;  %v4467_v29 = vpack.c.bf16 %v626_v26, %v618_v24  ;;  %v628_v32 = vld [vmem:[#allocation2 + $0xd0] sm:$0xff]  ;;  %v635_v33 = vld [vmem:[#allocation2 + $0x108] sm:$0xff]  ;;  %s5556_s14 = scalar_lea.vmem %s6798_s0, %s3988_s19 }
  0x8f   : > { %v508_v1 = vld [vmem:[%s5532_s26 + $0x10] sm:$0xff]  ;;  %v506_v2 = vld [vmem:[%s5532_s26] sm:$0xff]  ;;  %v509_v3 = vld [vmem:[%s5532_s26 + $0x18] sm:$0xff]  ;;  %v4497_v30 = vpack.c.bf16 %v629_v28, %v621_v27  ;;  %4496 = vmatpush1.bf16.msra.mxu1 %v4495_v21  ;;  %4466 = vmatprep.subr.bf16.mxu0 %v4465_v25  ;;  %v4499_v34 = vpack.c.bf16 %v628_v32, %v620_v31  ;;  %s4285_s29 = sshll.u32 %s5379_s21, 12  ;;  %s5176_s17 = scalar_lea.vmem %s5175_s22, 8192 }
  0x90   : > { %529 = vperm.xlu1 %4753, %v508_v1   ;;  %523 = vperm.xlu0 %4752, %v506_v2   ;;  %v507_v4 = vld [vmem:[%s5532_s26 + $0x8] sm:$0xff]  ;;  %v510_v7 = vld [vmem:[%s5532_s26 + $0x20] sm:$0xff]  ;;  %v513_v18 = vld [vmem:[%s5532_s26 + $0x38] sm:$0xff]  ;;  %s6655_s24 = scalar_lea.hbm %s6809_s11, %s4285_s29 }
  0x91   : > { %v511_v6 = vld [vmem:[%s5532_s26 + $0x28] sm:$0xff]  ;;  %v512_v19 = vld [vmem:[%s5532_s26 + $0x30] sm:$0xff]  ;;  %v634_v36 = vld [vmem:[#allocation2 + $0x100] sm:$0xff]  ;;  %4498 = vmatprep.subr.bf16.mxu1 %v4497_v30 }
  0x92   : > { %v643_v35 = vld [vmem:[#allocation2 + $0x148] sm:$0xff]  ;;  %v642_v37 = vld [vmem:[#allocation2 + $0x140] sm:$0xff]  ;;  %v637_v40 = vld [vmem:[#allocation2 + $0x118] sm:$0xff]  ;;  %4468 = vmatpush1.bf16.msra.mxu0 %v4467_v29 }
  0x93   : > { %v515_v38 = vld [vmem:[%s5532_s26 + $0x48] sm:$0xff]  ;;  %v4469_v39 = vpack.c.bf16 %v643_v35, %v635_v33  ;;  %v645_v41 = vld [vmem:[#allocation2 + $0x158] sm:$0xff]  ;;  %v636_v42 = vld [vmem:[#allocation2 + $0x110] sm:$0xff]  ;;  %v4471_v48 = vpack.c.bf16 %v642_v37, %v634_v36  ;;  %4500 = vmatpush1.bf16.msra.mxu1 %v4499_v34 }
  0x94   : > { %532 = vperm.xlu1 %4753, %v509_v3   ;;  %526 = vperm.xlu0 %4752, %v507_v4   ;;  %v4501_v43 = vpack.c.bf16 %v645_v41, %v637_v40  ;;  %v644_v44 = vld [vmem:[#allocation2 + $0x150] sm:$0xff]  ;;  %v651_v45 = vld [vmem:[#allocation2 + $0x188] sm:$0xff]  ;;  %v514_v47 = vld [vmem:[%s5532_s26 + $0x40] sm:$0xff] }
  0x95   : > { %v659_v46 = vld [vmem:[#allocation2 + $0x1c8] sm:$0xff]  ;;  %v650_v49 = vld [vmem:[#allocation2 + $0x180] sm:$0xff]  ;;  %v653_v50 = vld [vmem:[#allocation2 + $0x198] sm:$0xff]  ;;  %4470 = vmatprep.subr.bf16.mxu0 %v4469_v39  ;;  %v4503_v51 = vpack.c.bf16 %v644_v44, %v636_v42 }
  0x96   : > { %v4473_v52 = vpack.c.bf16 %v659_v46, %v651_v45  ;;  %v658_v53 = vld [vmem:[#allocation2 + $0x1c0] sm:$0xff]  ;;  %v661_v54 = vld [vmem:[#allocation2 + $0x1d8] sm:$0xff]  ;;  %v652_v55 = vld [vmem:[#allocation2 + $0x190] sm:$0xff]  ;;  %4502 = vmatprep.subr.bf16.mxu1 %v4501_v43  ;;  %4472 = vmatpush1.bf16.msra.mxu0 %v4471_v48 }
  0x97   : > { %v4505_v56 = vpack.c.bf16 %v661_v54, %v653_v50  ;;  %v660_v57 = vld [vmem:[#allocation2 + $0x1d0] sm:$0xff]  ;;  %v667_v58 = vld [vmem:[#allocation2 + $0x208] sm:$0xff]  ;;  %v669_v60 = vld [vmem:[#allocation2 + $0x218] sm:$0xff]  ;;  %v4475_v1 = vpack.c.bf16 %v658_v53, %v650_v49  ;;  %4504 = vmatpush1.bf16.msra.mxu1 %v4503_v51 }
  0x98   : > { %538 = vperm.xlu1 %4753, %v511_v6   ;;  %535 = vperm.xlu0 %4752, %v510_v7   ;;  %v675_v59 = vld [vmem:[#allocation2 + $0x248] sm:$0xff]  ;;  %v677_v61 = vld [vmem:[#allocation2 + $0x258] sm:$0xff]  ;;  %v516_v63 = vld [vmem:[%s5532_s26 + $0x50] sm:$0xff]  ;;  %v4507_v2 = vpack.c.bf16 %v660_v57, %v652_v55 }
  0x99   : > { %v517_v62 = vld [vmem:[%s5532_s26 + $0x58] sm:$0xff]  ;;  %4474 = vmatprep.subr.bf16.mxu0 %v4473_v52  ;;  %v4477_v3 = vpack.c.bf16 %v675_v59, %v667_v58  ;;  %v666_v4 = vld [vmem:[#allocation2 + $0x200] sm:$0xff]  ;;  %v668_v7 = vld [vmem:[#allocation2 + $0x210] sm:$0xff]  ;;  %4506 = vmatprep.subr.bf16.mxu1 %v4505_v56  ;;  %v4509_v8 = vpack.c.bf16 %v677_v61, %v669_v60  ;;  %v6822_v58 = vlaneseq }
  0x9a   : > { %v674_v6 = vld [vmem:[#allocation2 + $0x240] sm:$0xff]  ;;  %v676_v9 = vld [vmem:[#allocation2 + $0x250] sm:$0xff]  ;;  %v683_v10 = vld [vmem:[#allocation2 + $0x288] sm:$0xff]  ;;  %4476 = vmatpush1.bf16.msra.mxu0 %v4475_v1 }
  0x9b   : > { %v691_v11 = vld [vmem:[#allocation2 + $0x2c8] sm:$0xff]  ;;  %v685_v12 = vld [vmem:[#allocation2 + $0x298] sm:$0xff]  ;;  %v518_v15 = vld [vmem:[%s5532_s26 + $0x60] sm:$0xff]  ;;  %v4479_v16 = vpack.c.bf16 %v674_v6, %v666_v4  ;;  %4508 = vmatpush1.bf16.msra.mxu1 %v4507_v2  ;;  %4478 = vmatprep.subr.bf16.mxu0 %v4477_v3  ;;  %v4511_v17 = vpack.c.bf16 %v676_v9, %v668_v7  ;;  %v5559_v61 = vand.u32 127, %v6822_v58 }
  0x9c   : > { %544 = vperm.xlu1 %4753, %v513_v18   ;;  %541 = vperm.xlu0 %4752, %v512_v19   ;;  %v693_v13 = vld [vmem:[#allocation2 + $0x2d8] sm:$0xff]  ;;  %v519_v14 = vld [vmem:[%s5532_s26 + $0x68] sm:$0xff]  ;;  %v4481_v18 = vpack.c.bf16 %v691_v11, %v683_v10  ;;  %v682_v19 = vld [vmem:[#allocation2 + $0x280] sm:$0xff] }
  0x9d   : > { %v690_v20 = vld [vmem:[#allocation2 + $0x2c0] sm:$0xff]  ;;  %v684_v21 = vld [vmem:[#allocation2 + $0x290] sm:$0xff]  ;;  %4510 = vmatprep.subr.bf16.mxu1 %v4509_v8  ;;  %v4513_v22 = vpack.c.bf16 %v693_v13, %v685_v12  ;;  %v699_v24 = vld [vmem:[#allocation2 + $0x308] sm:$0xff]  ;;  %v5291_v13 = vmov 1.0  }
  0x9e   : > { %v692_v23 = vld [vmem:[#allocation2 + $0x2d0] sm:$0xff]  ;;  %v707_v25 = vld [vmem:[#allocation2 + $0x348] sm:$0xff]  ;;  %v701_v26 = vld [vmem:[#allocation2 + $0x318] sm:$0xff]  ;;  %4480 = vmatpush1.bf16.msra.mxu0 %v4479_v16  ;;  %v4483_v30 = vpack.c.bf16 %v690_v20, %v682_v19 }
  0x9f   : > { %v709_v27 = vld [vmem:[#allocation2 + $0x358] sm:$0xff]  ;;  %v520_v29 = vld [vmem:[%s5532_s26 + $0x70] sm:$0xff]  ;;  %4512 = vmatpush1.bf16.msra.mxu1 %v4511_v17  ;;  %4482 = vmatprep.subr.bf16.mxu0 %v4481_v18  ;;  %v4515_v31 = vpack.c.bf16 %v692_v23, %v684_v21  ;;  %v4485_v32 = vpack.c.bf16 %v707_v25, %v699_v24  ;;  %v698_v33 = vld [vmem:[#allocation2 + $0x300] sm:$0xff] }
  0xa0   : > { %550 = vperm.xlu1 %4753, %v515_v38   ;;  %547 = vperm.xlu0 %4752, %v514_v47   ;;  %v521_v28 = vld [vmem:[%s5532_s26 + $0x78] sm:$0xff]  ;;  %v706_v34 = vld [vmem:[#allocation2 + $0x340] sm:$0xff]  ;;  %v700_v35 = vld [vmem:[#allocation2 + $0x310] sm:$0xff]  ;;  %v4517_v36 = vpack.c.bf16 %v709_v27, %v701_v26  ;;  %s6429_s26 = scalar_lea.vmem %s6800_s2, %s3990_s13 }
  0xa1   : > { %4514 = vmatprep.subr.bf16.mxu1 %v4513_v22  ;;  %v708_v37 = vld [vmem:[#allocation2 + $0x350] sm:$0xff]  ;;  %v715_v38 = vld [vmem:[#allocation2 + $0x388] sm:$0xff]  ;;  %v717_v40 = vld [vmem:[#allocation2 + $0x398] sm:$0xff]  ;;  %v4487_v42 = vpack.c.bf16 %v706_v34, %v698_v33 }
  0xa2   : > { %v723_v39 = vld [vmem:[#allocation2 + $0x3c8] sm:$0xff]  ;;  %v725_v41 = vld [vmem:[#allocation2 + $0x3d8] sm:$0xff]  ;;  %4484 = vmatpush1.bf16.msra.mxu0 %v4483_v30  ;;  %v4519_v43 = vpack.c.bf16 %v708_v37, %v700_v35  ;;  %v714_v45 = vld [vmem:[#allocation2 + $0x380] sm:$0xff] }
  0xa3   : > { %4516 = vmatpush1.bf16.msra.mxu1 %v4515_v31  ;;  %4486 = vmatprep.subr.bf16.mxu0 %v4485_v32  ;;  %v4489_v44 = vpack.c.bf16 %v723_v39, %v715_v38  ;;  %v722_v46 = vld [vmem:[#allocation2 + $0x3c0] sm:$0xff]  ;;  %v716_v47 = vld [vmem:[#allocation2 + $0x390] sm:$0xff]  ;;  %v4521_v48 = vpack.c.bf16 %v725_v41, %v717_v40  ;;  %v607_v50 = vld [vmem:[#allocation2 + $0x28] sm:$0xff] }
  0xa4   : > { %556 = vperm.xlu1 %4753, %v517_v62   ;;  %553 = vperm.xlu0 %4752, %v516_v63   ;;  %v724_v49 = vld [vmem:[#allocation2 + $0x3d0] sm:$0xff]  ;;  %v615_v51 = vld [vmem:[#allocation2 + $0x68] sm:$0xff]  ;;  %v609_v52 = vld [vmem:[#allocation2 + $0x38] sm:$0xff]  ;;  %v4491_v54 = vpack.c.bf16 %v722_v46, %v714_v45 }
  0xa5   : > { %4518 = vmatprep.subr.bf16.mxu1 %v4517_v36  ;;  %v617_v53 = vld [vmem:[#allocation2 + $0x78] sm:$0xff]  ;;  %v4523_v55 = vpack.c.bf16 %v724_v49, %v716_v47  ;;  %v4525_v56 = vpack.c.bf16 %v615_v51, %v607_v50  ;;  %v606_v59 = vld [vmem:[#allocation2 + $0x20] sm:$0xff]  ;;  %v623_v62 = vld [vmem:[#allocation2 + $0xa8] sm:$0xff] }
  0xa6   : > { %4488 = vmatpush1.bf16.msra.mxu0 %v4487_v42  ;;  %v4557_v57 = vpack.c.bf16 %v617_v53, %v609_v52  ;;  %v614_v60 = vld [vmem:[#allocation2 + $0x60] sm:$0xff]  ;;  %v631_v63 = vld [vmem:[#allocation2 + $0xe8] sm:$0xff]  ;;  %v608_v1 = vld [vmem:[#allocation2 + $0x30] sm:$0xff] }
  0xa7   : > { %4520 = vmatpush1.bf16.msra.mxu1 %v4519_v43  ;;  %4490 = vmatprep.subr.bf16.mxu0 %v4489_v44  ;;  %v616_v2 = vld [vmem:[#allocation2 + $0x70] sm:$0xff]  ;;  %v4527_v3 = vpack.c.bf16 %v614_v60, %v606_v59  ;;  %v4529_v6 = vpack.c.bf16 %v631_v63, %v623_v62  ;;  %v622_v7 = vld [vmem:[#allocation2 + $0xa0] sm:$0xff]  ;;  %v639_v9 = vld [vmem:[#allocation2 + $0x128] sm:$0xff] }
  0xa8   : > { %562 = vperm.xlu1 %4753, %v519_v14   ;;  %559 = vperm.xlu0 %4752, %v518_v15   ;;  %v630_v8 = vld [vmem:[#allocation2 + $0xe0] sm:$0xff]  ;;  %v4559_v10 = vpack.c.bf16 %v616_v2, %v608_v1  ;;  %v625_v11 = vld [vmem:[#allocation2 + $0xb8] sm:$0xff]  ;;  %v647_v14 = vld [vmem:[#allocation2 + $0x168] sm:$0xff] }
  0xa9   : > { %4522 = vmatprep.subr.bf16.mxu1 %v4521_v48  ;;  %v633_v12 = vld [vmem:[#allocation2 + $0xf8] sm:$0xff]  ;;  %v624_v15 = vld [vmem:[#allocation2 + $0xb0] sm:$0xff]  ;;  %v4531_v18 = vpack.c.bf16 %v630_v8, %v622_v7  ;;  %v638_v19 = vld [vmem:[#allocation2 + $0x120] sm:$0xff]  ;;  %v4533_v22 = vpack.c.bf16 %v647_v14, %v639_v9 }
  0xaa   : > { %4492 = vmatpush1.bf16.msra.mxu0 %v4491_v54  ;;  %v632_v16 = vld [vmem:[#allocation2 + $0xf0] sm:$0xff]  ;;  %v646_v20 = vld [vmem:[#allocation2 + $0x160] sm:$0xff]  ;;  %v4561_v21 = vpack.c.bf16 %v633_v12, %v625_v11  ;;  %v655_v23 = vld [vmem:[#allocation2 + $0x1a8] sm:$0xff] }
  0xab   : > { %4524 = vmatpush1.bf16.msra.mxu1 %v4523_v55  ;;  %4526 = vmatprep.subr.bf16.mxu0 %v4525_v56  ;;  %v4563_v24 = vpack.c.bf16 %v632_v16, %v624_v15  ;;  %v641_v25 = vld [vmem:[#allocation2 + $0x138] sm:$0xff]  ;;  %v648_v30 = vld [vmem:[#allocation2 + $0x170] sm:$0xff]  ;;  %v4535_v31 = vpack.c.bf16 %v646_v20, %v638_v19  ;;  %v654_v32 = vld [vmem:[#allocation2 + $0x1a0] sm:$0xff] }
  0xac   : > { %568 = vperm.xlu1 %4753, %v521_v28   ;;  %565 = vperm.xlu0 %4752, %v520_v29   ;;  %v649_v26 = vld [vmem:[#allocation2 + $0x178] sm:$0xff]  ;;  %v663_v28 = vld [vmem:[#allocation2 + $0x1e8] sm:$0xff]  ;;  %v640_v29 = vld [vmem:[#allocation2 + $0x130] sm:$0xff] }
  0xad   : > { %4558 = vmatprep.subr.bf16.mxu1 %v4557_v57  ;;  %v662_v33 = vld [vmem:[#allocation2 + $0x1e0] sm:$0xff]  ;;  %v4565_v34 = vpack.c.bf16 %v649_v26, %v641_v25  ;;  %v4537_v35 = vpack.c.bf16 %v663_v28, %v655_v23  ;;  %v671_v36 = vld [vmem:[#allocation2 + $0x228] sm:$0xff]  ;;  %v4567_v37 = vpack.c.bf16 %v648_v30, %v640_v29  ;;  %v657_v38 = vld [vmem:[#allocation2 + $0x1b8] sm:$0xff] }
  0xae   : > { %v665_v39 = vld [vmem:[#allocation2 + $0x1f8] sm:$0xff]  ;;  %v679_v40 = vld [vmem:[#allocation2 + $0x268] sm:$0xff]  ;;  %v656_v41 = vld [vmem:[#allocation2 + $0x1b0] sm:$0xff]  ;;  %v4539_v44 = vpack.c.bf16 %v662_v33, %v654_v32 }
  0xaf   : > { %v664_v42 = vld [vmem:[#allocation2 + $0x1f0] sm:$0xff]  ;;  %v670_v45 = vld [vmem:[#allocation2 + $0x220] sm:$0xff]  ;;  %v4569_v47 = vpack.c.bf16 %v665_v39, %v657_v38  ;;  %v4541_v48 = vpack.c.bf16 %v679_v40, %v671_v36  ;;  %v687_v49 = vld [vmem:[#allocation2 + $0x2a8] sm:$0xff] }
  0xb0   : > { %v678_v46 = vld [vmem:[#allocation2 + $0x260] sm:$0xff]  ;;  %v4571_v50 = vpack.c.bf16 %v664_v42, %v656_v41  ;;  %v673_v51 = vld [vmem:[#allocation2 + $0x238] sm:$0xff]  ;;  %v695_v54 = vld [vmem:[#allocation2 + $0x2e8] sm:$0xff] }
  0xb1   : > { %v681_v52 = vld [vmem:[#allocation2 + $0x278] sm:$0xff]  ;;  %v672_v55 = vld [vmem:[#allocation2 + $0x230] sm:$0xff]  ;;  %v4543_v57 = vpack.c.bf16 %v678_v46, %v670_v45  ;;  %v686_v59 = vld [vmem:[#allocation2 + $0x2a0] sm:$0xff]  ;;  %v4545_v63 = vpack.c.bf16 %v695_v54, %v687_v49 }
  0xb2   : > { %v680_v56 = vld [vmem:[#allocation2 + $0x270] sm:$0xff]  ;;  %v694_v60 = vld [vmem:[#allocation2 + $0x2e0] sm:$0xff]  ;;  %v4573_v62 = vpack.c.bf16 %v681_v52, %v673_v51  ;;  %v703_v1 = vld [vmem:[#allocation2 + $0x328] sm:$0xff] }
  0xb3   : > { %v4575_v2 = vpack.c.bf16 %v680_v56, %v672_v55  ;;  %v711_v8 = vld [vmem:[#allocation2 + $0x368] sm:$0xff]  ;;  %v688_v9 = vld [vmem:[#allocation2 + $0x2b0] sm:$0xff]  ;;  %v4547_v11 = vpack.c.bf16 %v694_v60, %v686_v59  ;;  %v702_v12 = vld [vmem:[#allocation2 + $0x320] sm:$0xff] }
  0xb4   : > { %v710_v14 = vld [vmem:[#allocation2 + $0x360] sm:$0xff]  ;;  %v4549_v16 = vpack.c.bf16 %v711_v8, %v703_v1  ;;  %v719_v19 = vld [vmem:[#allocation2 + $0x3a8] sm:$0xff]  ;;  %v705_v20 = vld [vmem:[#allocation2 + $0x338] sm:$0xff] }
  0xb5   : > { %v727_v23 = vld [vmem:[#allocation2 + $0x3e8] sm:$0xff]  ;;  %v712_v25 = vld [vmem:[#allocation2 + $0x370] sm:$0xff]  ;;  %v4551_v26 = vpack.c.bf16 %v710_v14, %v702_v12  ;;  %v718_v28 = vld [vmem:[#allocation2 + $0x3a0] sm:$0xff] }
  0xb6   : > { %v4553_v30 = vpack.c.bf16 %v727_v23, %v719_v19  ;;  %v721_v33 = vld [vmem:[#allocation2 + $0x3b8] sm:$0xff]  ;;  %v720_v36 = vld [vmem:[#allocation2 + $0x3b0] sm:$0xff]  ;;  %v4806_v23 = vld [vmem:[#allocation5 + $0x64] ss:$8 sps:$4 sm:$0xff]  }
  0xb7   : > { %v4756_v41 = vld [vmem:[%s6801_s3 + $0x4] ss:$16 sps:$4 sm:$0xff]   ;;  %v4754_v52 = vld [vmem:[%s6801_s3] ss:$16 sps:$4 sm:$0xff]   ;;  %v4766_v55 = vld [vmem:[%s6801_s3 + $0x8] ss:$16 sps:$4 sm:$0xff]  }
  0xb8   : > { %v4759_v54 = vld [vmem:[%s6801_s3 + $0x24] ss:$16 sps:$4 sm:$0xff]   ;;  %v4757_v56 = vld [vmem:[%s6801_s3 + $0x20] ss:$16 sps:$4 sm:$0xff]  }
  0xb9   : > { %v4762_v59 = vld [vmem:[%s6801_s3 + $0x44] ss:$16 sps:$4 sm:$0xff]   ;;  %v4760_v60 = vld [vmem:[%s6801_s3 + $0x40] ss:$16 sps:$4 sm:$0xff]  }
  0xba   : > { %v4763_v1 = vld [vmem:[%s6801_s3 + $0x60] ss:$16 sps:$4 sm:$0xff]   ;;  %v4791_v8 = vld [vmem:[#allocation5 + $0x14] ss:$8 sps:$4 sm:$0xff]  }
  0xbb   : > { %v4795_v12 = vld [vmem:[#allocation5 + $0x30] ss:$8 sps:$4 sm:$0xff]   ;;  %v4797_v14 = vld [vmem:[#allocation5 + $0x34] ss:$8 sps:$4 sm:$0xff]  }
  0xbc   : > { %v4801_v19 = vld [vmem:[#allocation5 + $0x50] ss:$8 sps:$4 sm:$0xff]  }
 0x10f   : > { %v5561_v4 = vpop.permute.xlu0 %523  ;;  %v5579_v27 = vpop.permute.xlu1 %529 }
 0x110   : > { %vm570_vm0 = vcmp.eq.s32.totalorder %v5561_v4, %v5559_v61  ;;  %vm572_vm2 = vcmp.eq.s32.totalorder %v5579_v27, %v5559_v61  ;;  %v4769_v4 = vld [vmem:[%s6801_s3 + $0x28] ss:$16 sps:$4 sm:$0xff]  }
 0x111   : > { %3993 = vmatmul.mubr.msk.f32.vlgmr.msra.gmra.mrb[0].mxu0 %vm570_vm0, %v5291_v13  ;;  %4009 = vmatmul.mubr.msk.f32.vlgmr.msra.gmra.mrb[0].mxu1 %vm570_vm0, %v5291_v13  ;;  %v4775_v27 = vld [vmem:[%s6801_s3 + $0x68] ss:$16 sps:$4 sm:$0xff]  }
 0x112   : > { %4528 = vmatpush1.bf16.msra.mxu0 %v4527_v3  ;;  %800 = vmatprep.mubr.f32.mxu0 %v5290_v5  ;;  %v689_v3 = vld [vmem:[#allocation2 + $0x2b8] sm:$0xff] }
 0x113   : > { %v5574_v17 = vpop.permute.xlu0 %526  ;;  %961 = vmatprep.mubr.f32.mxu1 %v5290_v5  ;;  %4530 = vmatprep.subr.bf16.mxu0 %v4529_v6  ;;  %v5603_v43 = vpop.permute.xlu1 %532  ;;  %v697_v6 = vld [vmem:[#allocation2 + $0x2f8] sm:$0xff] }
 0x114   : > { %vm571_vm1 = vcmp.eq.s32.totalorder %v5574_v17, %v5559_v61  ;;  %4560 = vmatpush1.bf16.msra.mxu1 %v4559_v10  ;;  %vm573_vm3 = vcmp.eq.s32.totalorder %v5603_v43, %v5559_v61  ;;  %v696_v10 = vld [vmem:[#allocation2 + $0x2f0] sm:$0xff]  ;;  %v4577_v15 = vpack.c.bf16 %v697_v6, %v689_v3  ;;  %v4778_v43 = vld [vmem:[%s5556_s14] sm:$0xff]  }
 0x115   : > { %3994 = vmatmul.mubr.msk.f32.gmra.mrb[2].mxu0 %vm571_vm1, %v5291_v13  ;;  %4010 = vmatmul.mubr.msk.f32.gmra.mrb[2].mxu1 %vm571_vm1, %v5291_v13  ;;  %v4765_v17 = vld [vmem:[%s6801_s3 + $0x64] ss:$16 sps:$4 sm:$0xff]   ;;  %v4786_v3 = vld [vmem:[#allocation5] ss:$8 sps:$4 sm:$0xff]  }
 0x116   : > { %806 = vmatprep.mubr.f32.mxu0 %v5290_v5  ;;  %967 = vmatprep.mubr.f32.mxu1 %v5290_v5  ;;  %v4788_v6 = vld [vmem:[#allocation5 + $0x4] ss:$8 sps:$4 sm:$0xff]  }
 0x117   : > { %4532 = vmatpush1.bf16.msra.mxu0 %v4531_v18  ;;  %4562 = vmatprep.subr.bf16.mxu1 %v4561_v21  ;;  %v5607_v53 = vpop.permute.xlu0 %535  ;;  %v5621_v7 = vpop.permute.xlu1 %538  ;;  %v4579_v18 = vpack.c.bf16 %v696_v10, %v688_v9  ;;  %v713_v21 = vld [vmem:[#allocation2 + $0x378] sm:$0xff]  ;;  %v4783_v9 = vld [vmem:[%s5556_s14 + $0x28] sm:$0xff]  }
 0x118   : > { %4534 = vmatprep.subr.bf16.mxu0 %v4533_v22  ;;  %4564 = vmatpush1.bf16.msra.mxu1 %v4563_v24  ;;  %vm574_vm4 = vcmp.eq.s32.totalorder %v5607_v53, %v5559_v61  ;;  %vm575_vm5 = vcmp.eq.s32.totalorder %v5621_v7, %v5559_v61  ;;  %v704_v24 = vld [vmem:[#allocation2 + $0x330] sm:$0xff]  ;;  %v4581_v29 = vpack.c.bf16 %v713_v21, %v705_v20  ;;  %v4782_v53 = vld [vmem:[%s5556_s14 + $0x20] sm:$0xff]   ;;  %v4785_v21 = vld [vmem:[%s5556_s14 + $0x38] sm:$0xff]  }
 0x119   : > { %3995 = vmatmul.mubr.msk.f32.gmra.mrb[4].mxu0 %vm572_vm2, %v5291_v13  ;;  %4011 = vmatmul.mubr.msk.f32.gmra.mrb[4].mxu1 %vm572_vm2, %v5291_v13  ;;  %v4583_v32 = vpack.c.bf16 %v712_v25, %v704_v24  ;;  %v4789_v7 = vld [vmem:[#allocation5 + $0x10] ss:$8 sps:$4 sm:$0xff]   ;;  %v4792_v10 = vld [vmem:[#allocation5 + $0x20] ss:$8 sps:$4 sm:$0xff]   ;;  %v4803_v20 = vld [vmem:[#allocation5 + $0x54] ss:$8 sps:$4 sm:$0xff]  }
 0x11a   : > { %812 = vmatprep.mubr.f32.mxu0 %v5290_v5  ;;  %973 = vmatprep.mubr.f32.mxu1 %v5290_v5  ;;  %v4807_v24 = vld [vmem:[#allocation5 + $0x70] ss:$8 sps:$4 sm:$0xff]   ;;  %v4809_v25 = vld [vmem:[#allocation5 + $0x74] ss:$8 sps:$4 sm:$0xff]  }
 0x11b   : > { %4536 = vmatpush1.bf16.msra.mxu0 %v4535_v31  ;;  %4566 = vmatprep.subr.bf16.mxu1 %v4565_v34  ;;  %v5635_v22 = vpop.permute.xlu0 %541  ;;  %v726_v31 = vld [vmem:[#allocation2 + $0x3e0] sm:$0xff]  ;;  %v729_v34 = vld [vmem:[#allocation2 + $0x3f8] sm:$0xff] }
 0x11c   : > { %4538 = vmatprep.subr.bf16.mxu0 %v4537_v35  ;;  %4568 = vmatpush1.bf16.msra.mxu1 %v4567_v37  ;;  %vm576_vm6 = vcmp.eq.s32.totalorder %v5635_v22, %v5559_v61  ;;  %v5649_v35 = vpop.permute.xlu1 %544  ;;  %v728_v37 = vld [vmem:[#allocation2 + $0x3f0] sm:$0xff]  ;;  %v4555_v38 = vpack.c.bf16 %v726_v31, %v718_v28  ;;  %v4585_v39 = vpack.c.bf16 %v729_v34, %v721_v33  ;;  %v4804_v22 = vld [vmem:[#allocation5 + $0x60] ss:$8 sps:$4 sm:$0xff]   ;;  %v4812_v28 = vld [vmem:[#allocation5 + $0x84] ss:$8 sps:$4 sm:$0xff]  }
 0x11d   : > { %3996 = vmatmul.mubr.msk.f32.gmra.mrb[6].mxu0 %vm573_vm3, %v5291_v13  ;;  %4012 = vmatmul.mubr.msk.f32.gmra.mrb[6].mxu1 %vm573_vm3, %v5291_v13  ;;  %vm577_vm7 = vcmp.eq.s32.totalorder %v5649_v35, %v5559_v61  ;;  %v4587_v40 = vpack.c.bf16 %v728_v37, %v720_v36  ;;  %v4816_v31 = vld [vmem:[#allocation5 + $0xa0] ss:$8 sps:$4 sm:$0xff]   ;;  %v4819_v33 = vld [vmem:[#allocation5 + $0xb0] ss:$8 sps:$4 sm:$0xff]   ;;  %v4821_v34 = vld [vmem:[#allocation5 + $0xb4] ss:$8 sps:$4 sm:$0xff]  }
 0x11e   : > { %818 = vmatprep.mubr.f32.mxu0 %v5290_v5  ;;  %979 = vmatprep.mubr.f32.mxu1 %v5290_v5  ;;  %v4822_v35 = vld [vmem:[#allocation5 + $0xc0] ss:$8 sps:$4 sm:$0xff]   ;;  %v4824_v36 = vld [vmem:[#allocation5 + $0xc4] ss:$8 sps:$4 sm:$0xff]   ;;  %v4825_v37 = vld [vmem:[#allocation5 + $0xd0] ss:$8 sps:$4 sm:$0xff]  }
 0x11f   : > { %4540 = vmatpush1.bf16.msra.mxu0 %v4539_v44  ;;  %4570 = vmatprep.subr.bf16.mxu1 %v4569_v47  ;;  %v5666_v42 = vpop.permute.xlu0 %547  ;;  %v4768_v44 = vld [vmem:[%s6801_s3 + $0xc] ss:$16 sps:$4 sm:$0xff]  }
 0x120   : > { %4542 = vmatprep.subr.bf16.mxu0 %v4541_v48  ;;  %4572 = vmatpush1.bf16.msra.mxu1 %v4571_v50  ;;  %vm578_vm8 = vcmp.eq.s32.totalorder %v5666_v42, %v5559_v61  ;;  %v5683_v45 = vpop.permute.xlu1 %550 }
 0x121   : > { %3997 = vmatmul.mubr.msk.f32.gmra.mrb[8].mxu0 %vm574_vm4, %v5291_v13  ;;  %4013 = vmatmul.mubr.msk.f32.gmra.mrb[8].mxu1 %vm574_vm4, %v5291_v13  ;;  %vm579_vm9 = vcmp.eq.s32.totalorder %v5683_v45, %v5559_v61  ;;  %v4828_v45 = vld [vmem:[#allocation5 + $0xe0] ss:$8 sps:$4 sm:$0xff]  }
 0x122   : > { %824 = vmatprep.mubr.f32.mxu0 %v5290_v5  ;;  %985 = vmatprep.mubr.f32.mxu1 %v5290_v5 }
 0x123   : > { %4544 = vmatpush1.bf16.msra.mxu0 %v4543_v57  ;;  %4574 = vmatprep.subr.bf16.mxu1 %v4573_v62  ;;  %v5697_v46 = vpop.permute.xlu0 %553  ;;  %v4771_v57 = vld [vmem:[%s6801_s3 + $0x2c] ss:$16 sps:$4 sm:$0xff]  }
 0x124   : > { %4546 = vmatprep.subr.bf16.mxu0 %v4545_v63  ;;  %4576 = vmatpush1.bf16.msra.mxu1 %v4575_v2  ;;  %vm580_vm10 = vcmp.eq.s32.totalorder %v5697_v46, %v5559_v61  ;;  %v5711_v47 = vpop.permute.xlu1 %556  ;;  %v4774_v62 = vld [vmem:[%s6801_s3 + $0x4c] ss:$16 sps:$4 sm:$0xff]   ;;  %v4772_v63 = vld [vmem:[%s6801_s3 + $0x48] ss:$16 sps:$4 sm:$0xff]  }
 0x125   : > { %3998 = vmatmul.mubr.msk.f32.gmra.mrb[10].mxu0 %vm575_vm5, %v5291_v13  ;;  %4014 = vmatmul.mubr.msk.f32.gmra.mrb[10].mxu1 %vm575_vm5, %v5291_v13  ;;  %vm581_vm11 = vcmp.eq.s32.totalorder %v5711_v47, %v5559_v61  ;;  %v4777_v2 = vld [vmem:[%s6801_s3 + $0x6c] ss:$16 sps:$4 sm:$0xff]  }
 0x126   : > { %830 = vmatprep.mubr.f32.mxu0 %v5290_v5  ;;  %991 = vmatprep.mubr.f32.mxu1 %v5290_v5 }
 0x127   : > { %4548 = vmatpush1.bf16.msra.mxu0 %v4547_v11  ;;  %4578 = vmatprep.subr.bf16.mxu1 %v4577_v15  ;;  %v5725_v48 = vpop.permute.xlu0 %559  ;;  %v4794_v11 = vld [vmem:[#allocation5 + $0x24] ss:$8 sps:$4 sm:$0xff]   ;;  %v4784_v15 = vld [vmem:[%s5556_s14 + $0x30] sm:$0xff]  }
 0x128   : > { %4550 = vmatprep.subr.bf16.mxu0 %v4549_v16  ;;  %4580 = vmatpush1.bf16.msra.mxu1 %v4579_v18  ;;  %vm582_vm12 = vcmp.eq.s32.totalorder %v5725_v48, %v5559_v61  ;;  %v5739_v49 = vpop.permute.xlu1 %562  ;;  %v4798_v16 = vld [vmem:[#allocation5 + $0x40] ss:$8 sps:$4 sm:$0xff]   ;;  %v4800_v18 = vld [vmem:[#allocation5 + $0x44] ss:$8 sps:$4 sm:$0xff]  }
 0x129   : > { %3999 = vmatmul.mubr.msk.f32.gmra.mrb[12].mxu0 %vm576_vm6, %v5291_v13  ;;  %4015 = vmatmul.mubr.msk.f32.gmra.mrb[12].mxu1 %vm576_vm6, %v5291_v13  ;;  %vm583_vm13 = vcmp.eq.s32.totalorder %v5739_v49, %v5559_v61 }
 0x12a   : > { %836 = vmatprep.mubr.f32.mxu0 %v5290_v5  ;;  %997 = vmatprep.mubr.f32.mxu1 %v5290_v5 }
 0x12b   : > { %4552 = vmatpush1.bf16.msra.mxu0 %v4551_v26  ;;  %4582 = vmatprep.subr.bf16.mxu1 %v4581_v29  ;;  %v5753_v50 = vpop.permute.xlu0 %565  ;;  %v4810_v26 = vld [vmem:[#allocation5 + $0x80] ss:$8 sps:$4 sm:$0xff]   ;;  %v4813_v29 = vld [vmem:[#allocation5 + $0x90] ss:$8 sps:$4 sm:$0xff]  }
 0x12c   : > { %4554 = vmatprep.subr.bf16.mxu0 %v4553_v30  ;;  %4584 = vmatpush1.bf16.msra.mxu1 %v4583_v32  ;;  %vm584_vm14 = vcmp.eq.s32.totalorder %v5753_v50, %v5559_v61  ;;  %v5767_v51 = vpop.permute.xlu1 %568  ;;  %v4815_v30 = vld [vmem:[#allocation5 + $0x94] ss:$8 sps:$4 sm:$0xff]   ;;  %v4818_v32 = vld [vmem:[#allocation5 + $0xa4] ss:$8 sps:$4 sm:$0xff]  }
 0x12d   : > { %4000 = vmatmul.mubr.msk.f32.gmra.mrb[14].mxu0 %vm577_vm7, %v5291_v13  ;;  %4016 = vmatmul.mubr.msk.f32.gmra.mrb[14].mxu1 %vm577_vm7, %v5291_v13  ;;  %vm585_vm15 = vcmp.eq.s32.totalorder %v5767_v51, %v5559_v61  ;;  %v4780_v61 = vld [vmem:[%s5556_s14 + $0x10] sm:$0xff]  }
 0x12e   : > { %842 = vmatprep.mubr.f32.mxu0 %v5290_v5  ;;  %1003 = vmatprep.mubr.f32.mxu1 %v5290_v5  ;;  %v4833_v50 = vld [vmem:[#allocation5 + $0xf4] ss:$8 sps:$4 sm:$0xff]   ;;  %v4831_v51 = vld [vmem:[#allocation5 + $0xf0] ss:$8 sps:$4 sm:$0xff]  }
 0x12f   : > { %4556 = vmatpush1.bf16.msra.mxu0 %v4555_v38  ;;  %4586 = vmatprep.subr.bf16.mxu1 %v4585_v39  ;;  %v4827_v38 = vld [vmem:[#allocation5 + $0xd4] ss:$8 sps:$4 sm:$0xff]  }
 0x130   : > { %4588 = vmatpush1.bf16.msra.mxu1 %v4587_v40  ;;  %1551 = vmatprep.subr.bf16.mxu0 %v4756_v41 }
 0x131   : > { %4001 = vmatmul.mubr.msk.f32.gmra.mrb[16].mxu0 %vm578_vm8, %v5291_v13  ;;  %4017 = vmatmul.mubr.msk.f32.gmra.mrb[16].mxu1 %vm578_vm8, %v5291_v13 }
 0x132   : > { %848 = vmatprep.mubr.f32.mxu0 %v5290_v5  ;;  %1009 = vmatprep.mubr.f32.mxu1 %v5290_v5 }
 0x133   : > { %1664 = vmatprep.subr.bf16.mxu1 %v4768_v44  ;;  %v4830_v44 = vld [vmem:[#allocation5 + $0xe4] ss:$8 sps:$4 sm:$0xff]  }
 0x135   : > { %4002 = vmatmul.mubr.msk.f32.gmra.mrb[18].mxu0 %vm579_vm9, %v5291_v13  ;;  %4018 = vmatmul.mubr.msk.f32.gmra.mrb[18].mxu1 %vm579_vm9, %v5291_v13 }
 0x136   : > { %854 = vmatprep.mubr.f32.mxu0 %v5290_v5  ;;  %1015 = vmatprep.mubr.f32.mxu1 %v5290_v5 }
 0x139   : > { %4003 = vmatmul.mubr.msk.f32.gmra.mrb[20].mxu0 %vm580_vm10, %v5291_v13  ;;  %4019 = vmatmul.mubr.msk.f32.gmra.mrb[20].mxu1 %vm580_vm10, %v5291_v13 }
 0x13a   : > { %860 = vmatprep.mubr.f32.mxu0 %v5290_v5  ;;  %1021 = vmatprep.mubr.f32.mxu1 %v5290_v5 }
 0x13d   : > { %4004 = vmatmul.mubr.msk.f32.gmra.mrb[22].mxu0 %vm581_vm11, %v5291_v13  ;;  %4020 = vmatmul.mubr.msk.f32.gmra.mrb[22].mxu1 %vm581_vm11, %v5291_v13 }
 0x13e   : > { %866 = vmatprep.mubr.f32.mxu0 %v5290_v5  ;;  %1027 = vmatprep.mubr.f32.mxu1 %v5290_v5 }
 0x141   : > { %4005 = vmatmul.mubr.msk.f32.gmra.mrb[24].mxu0 %vm582_vm12, %v5291_v13  ;;  %4021 = vmatmul.mubr.msk.f32.gmra.mrb[24].mxu1 %vm582_vm12, %v5291_v13 }
 0x142   : > { %872 = vmatprep.mubr.f32.mxu0 %v5290_v5  ;;  %1033 = vmatprep.mubr.f32.mxu1 %v5290_v5 }
 0x145   : > { %4006 = vmatmul.mubr.msk.f32.gmra.mrb[26].mxu0 %vm583_vm13, %v5291_v13  ;;  %4022 = vmatmul.mubr.msk.f32.gmra.mrb[26].mxu1 %vm583_vm13, %v5291_v13 }
 0x146   : > { %878 = vmatprep.mubr.f32.mxu0 %v5290_v5  ;;  %1039 = vmatprep.mubr.f32.mxu1 %v5290_v5 }
 0x149   : > { %4007 = vmatmul.mubr.msk.f32.gmra.mrb[28].mxu0 %vm584_vm14, %v5291_v13  ;;  %4023 = vmatmul.mubr.msk.f32.gmra.mrb[28].mxu1 %vm584_vm14, %v5291_v13 }
 0x14a   : > { %884 = vmatprep.mubr.f32.mxu0 %v5290_v5  ;;  %1045 = vmatprep.mubr.f32.mxu1 %v5290_v5 }
 0x14d   : > { %4008 = vmatmul.mubr.msk.f32.gmra.mrb[30].mxu0 %vm585_vm15, %v5291_v13  ;;  %4024 = vmatmul.mubr.msk.f32.gmra.mrb[30].mxu1 %vm585_vm15, %v5291_v13 }
 0x14e   : > { %1116 = vmatprep.mubr.f32.mxu0 %v5290_v5  ;;  %1277 = vmatprep.mubr.f32.mxu1 %v5290_v5 }
 0x151   : > { %4025 = vmatmul.mubr.msk.f32.vlgmr.msra.gmra.mrb[32].mxu0 %vm570_vm0, %v5291_v13  ;;  %4041 = vmatmul.mubr.msk.f32.vlgmr.msra.gmra.mrb[32].mxu1 %vm570_vm0, %v5291_v13  ;;  %vm1526_vm0 = vcmask 523264  }
 0x152   : > { %1552 = vmatpush1.bf16.msra.mxu0 %v4754_v52  ;;  %1122 = vmatprep.mubr.f32.mxu0 %v5290_v5 }
 0x153   : > { %1283 = vmatprep.mubr.f32.mxu1 %v5290_v5  ;;  %1553 = vmatprep.subr.bf16.mxu0 %v4759_v54 }
 0x154   : > { %1665 = vmatpush1.bf16.msra.mxu1 %v4766_v55 }
 0x155   : > { %4026 = vmatmul.mubr.msk.f32.gmra.mrb[34].mxu0 %vm571_vm1, %v5291_v13  ;;  %4042 = vmatmul.mubr.msk.f32.gmra.mrb[34].mxu1 %vm571_vm1, %v5291_v13 }
 0x156   : > { %1128 = vmatprep.mubr.f32.mxu0 %v5290_v5  ;;  %1289 = vmatprep.mubr.f32.mxu1 %v5290_v5 }
 0x157   : > { %1554 = vmatpush1.bf16.msra.mxu0 %v4757_v56  ;;  %1666 = vmatprep.subr.bf16.mxu1 %v4771_v57  ;;  %v4836_v57 = vld [vmem:[#allocation5 + $0x104] ss:$8 sps:$4 sm:$0xff]  }
 0x158   : > { %1555 = vmatprep.subr.bf16.mxu0 %v4762_v59  ;;  %1667 = vmatpush1.bf16.msra.mxu1 %v4769_v4 }
 0x159   : > { %4027 = vmatmul.mubr.msk.f32.gmra.mrb[36].mxu0 %vm572_vm2, %v5291_v13  ;;  %4043 = vmatmul.mubr.msk.f32.gmra.mrb[36].mxu1 %vm572_vm2, %v5291_v13 }
 0x15a   : > { %1134 = vmatprep.mubr.f32.mxu0 %v5290_v5  ;;  %1295 = vmatprep.mubr.f32.mxu1 %v5290_v5 }
 0x15b   : > { %1556 = vmatpush1.bf16.msra.mxu0 %v4760_v60  ;;  %1668 = vmatprep.subr.bf16.mxu1 %v4774_v62 }
 0x15c   : > { %1557 = vmatprep.subr.bf16.mxu0 %v4765_v17  ;;  %1669 = vmatpush1.bf16.msra.mxu1 %v4772_v63 }
 0x15d   : > { %4028 = vmatmul.mubr.msk.f32.gmra.mrb[38].mxu0 %vm573_vm3, %v5291_v13  ;;  %4044 = vmatmul.mubr.msk.f32.gmra.mrb[38].mxu1 %vm573_vm3, %v5291_v13 }
 0x15e   : > { %1140 = vmatprep.mubr.f32.mxu0 %v5290_v5  ;;  %1301 = vmatprep.mubr.f32.mxu1 %v5290_v5 }
 0x15f   : > { %1558 = vmatpush1.bf16.msra.mxu0 %v4763_v1  ;;  %1670 = vmatprep.subr.bf16.mxu1 %v4777_v2 }
 0x160   : > { %1671 = vmatpush1.bf16.msra.mxu1 %v4775_v27  ;;  %2269 = vmatprep.subr.bf16.mxu0 %v4788_v6 }
 0x161   : > { %4029 = vmatmul.mubr.msk.f32.gmra.mrb[40].mxu0 %vm574_vm4, %v5291_v13  ;;  %4045 = vmatmul.mubr.msk.f32.gmra.mrb[40].mxu1 %vm574_vm4, %v5291_v13 }
 0x162   : > { %1146 = vmatprep.mubr.f32.mxu0 %v5290_v5  ;;  %1307 = vmatprep.mubr.f32.mxu1 %v5290_v5 }
 0x165   : > { %4030 = vmatmul.mubr.msk.f32.gmra.mrb[42].mxu0 %vm575_vm5, %v5291_v13  ;;  %4046 = vmatmul.mubr.msk.f32.gmra.mrb[42].mxu1 %vm575_vm5, %v5291_v13 }
 0x166   : > { %1152 = vmatprep.mubr.f32.mxu0 %v5290_v5  ;;  %1313 = vmatprep.mubr.f32.mxu1 %v5290_v5 }
 0x169   : > { %4031 = vmatmul.mubr.msk.f32.gmra.mrb[44].mxu0 %vm576_vm6, %v5291_v13  ;;  %4047 = vmatmul.mubr.msk.f32.gmra.mrb[44].mxu1 %vm576_vm6, %v5291_v13 }
 0x16a   : > { %1158 = vmatprep.mubr.f32.mxu0 %v5290_v5  ;;  %1319 = vmatprep.mubr.f32.mxu1 %v5290_v5 }
 0x16d   : > { %4032 = vmatmul.mubr.msk.f32.gmra.mrb[46].mxu0 %vm577_vm7, %v5291_v13  ;;  %4048 = vmatmul.mubr.msk.f32.gmra.mrb[46].mxu1 %vm577_vm7, %v5291_v13 }
 0x16e   : > { %1164 = vmatprep.mubr.f32.mxu0 %v5290_v5  ;;  %1325 = vmatprep.mubr.f32.mxu1 %v5290_v5 }
 0x171   : > { %4033 = vmatmul.mubr.msk.f32.gmra.mrb[48].mxu0 %vm578_vm8, %v5291_v13  ;;  %4049 = vmatmul.mubr.msk.f32.gmra.mrb[48].mxu1 %vm578_vm8, %v5291_v13 }
 0x172   : > { %1170 = vmatprep.mubr.f32.mxu0 %v5290_v5  ;;  %1331 = vmatprep.mubr.f32.mxu1 %v5290_v5 }
 0x175   : > { %4034 = vmatmul.mubr.msk.f32.gmra.mrb[50].mxu0 %vm579_vm9, %v5291_v13  ;;  %4050 = vmatmul.mubr.msk.f32.gmra.mrb[50].mxu1 %vm579_vm9, %v5291_v13 }
 0x176   : > { %1176 = vmatprep.mubr.f32.mxu0 %v5290_v5  ;;  %1337 = vmatprep.mubr.f32.mxu1 %v5290_v5 }
 0x179   : > { %4035 = vmatmul.mubr.msk.f32.gmra.mrb[52].mxu0 %vm580_vm10, %v5291_v13  ;;  %4051 = vmatmul.mubr.msk.f32.gmra.mrb[52].mxu1 %vm580_vm10, %v5291_v13 }
 0x17a   : > { %1182 = vmatprep.mubr.f32.mxu0 %v5290_v5  ;;  %1343 = vmatprep.mubr.f32.mxu1 %v5290_v5 }
 0x17d   : > { %4036 = vmatmul.mubr.msk.f32.gmra.mrb[54].mxu0 %vm581_vm11, %v5291_v13  ;;  %4052 = vmatmul.mubr.msk.f32.gmra.mrb[54].mxu1 %vm581_vm11, %v5291_v13 }
 0x17e   : > { %1188 = vmatprep.mubr.f32.mxu0 %v5290_v5  ;;  %1349 = vmatprep.mubr.f32.mxu1 %v5290_v5 }
 0x181   : > { %4037 = vmatmul.mubr.msk.f32.gmra.mrb[56].mxu0 %vm582_vm12, %v5291_v13  ;;  %4053 = vmatmul.mubr.msk.f32.gmra.mrb[56].mxu1 %vm582_vm12, %v5291_v13 }
 0x182   : > { %1194 = vmatprep.mubr.f32.mxu0 %v5290_v5  ;;  %1355 = vmatprep.mubr.f32.mxu1 %v5290_v5 }
 0x185   : > { %4038 = vmatmul.mubr.msk.f32.gmra.mrb[58].mxu0 %vm583_vm13, %v5291_v13  ;;  %4054 = vmatmul.mubr.msk.f32.gmra.mrb[58].mxu1 %vm583_vm13, %v5291_v13 }
 0x186   : > { %1200 = vmatprep.mubr.f32.mxu0 %v5290_v5  ;;  %1361 = vmatprep.mubr.f32.mxu1 %v5290_v5 }
 0x189   : > { %4039 = vmatmul.mubr.msk.f32.gmra.mrb[60].mxu0 %vm584_vm14, %v5291_v13  ;;  %4055 = vmatmul.mubr.msk.f32.gmra.mrb[60].mxu1 %vm584_vm14, %v5291_v13 }
 0x18a   : > { %1206 = vmatprep.mubr.f32.mxu0 %v5290_v5  ;;  %1367 = vmatprep.mubr.f32.mxu1 %v5290_v5  ;;  %v4779_v5 = vld [vmem:[%s5556_s14 + $0x8] sm:$0xff]  }
 0x18d   : > { %4040 = vmatmul.mubr.msk.f32.gmra.mrb[62].mxu0 %vm585_vm15, %v5291_v13  ;;  %4056 = vmatmul.mubr.msk.f32.gmra.mrb[62].mxu1 %vm585_vm15, %v5291_v13  ;;  %v4781_v13 = vld [vmem:[%s5556_s14 + $0x18] sm:$0xff]   ;;  %s6393_s14 = sand.u32 1, %s5268_s18  }
 0x18e   : > { %1583 = vmatprep.mubr.bf16.mxu0 %v6820_v0  ;;  %1696 = vmatprep.mubr.bf16.mxu1 %v6820_v0  ;;  %s3986_s20 = sshll.u32 %s6393_s14, 8  ;;  %s3784_s16 = scalar_lea.sflag [#allocation12], %s6393_s14 }
 0x18f   : > { %s6405_s5 = scalar_lea.vmem [#allocation11], %s3986_s20 }
 0x190   : > { %s3814_s25 = sshll.u32 %s6405_s5, 4  ;;  %s6658_s25 = int_to_ptr.vmem [resolvable:$true] %s3814_s25 }
 0x191   : > { %4081 = vmatmul.mubr.msk.bf16.vlgmr.msra.gmra.mrb[64].mxu0 %vm1526_vm0, %v4778_v43  ;;  %4089 = vmatmul.mubr.msk.bf16.vlgmr.msra.gmra.mrb[64].mxu1 %vm1526_vm0, %v4778_v43  ;;  %s5170_s12 = scalar_lea.vmem %s6658_s25, 4096  ;;  %p5177_p8 = scmp.lt.s32.totalorder %s6658_s25, %s5175_s22 }
 0x192   : > { %1593 = vmatprep.mubr.bf16.mxu0 %v6820_v0  ;;  %1706 = vmatprep.mubr.bf16.mxu1 %v6820_v0  ;;  %p5171_p2 = scmp.ne.s32.totalorder %s6658_s25, %s5170_s12  ;;  %p5178_p11 = scmp.lt.s32.totalorder %s5176_s17, %s5170_s12 }
 0x193   : > { %2270 = vmatpush1.bf16.msra.mxu0 %v4786_v3 }
 0x194   : > { %2271 = vmatprep.subr.bf16.mxu0 %v4791_v8  ;;  %p5172_p4 = pnand %p5171_p2, %p7012_p3  ;;  %p5179_p13 = por %p5178_p11, %p5177_p8 }
 0x196   : > { %p5173_p7 = pneg %p5172_p4 }
 0x197   : > { %2272 = vmatpush1.bf16.msra.mxu0 %v4789_v7 }
 0x198   : > { %2273 = vmatprep.subr.bf16.mxu0 %v4794_v11  ;;  %p5180_p0 = pnand %p5179_p13, %p5173_p7 }
 0x199   : > { %4082 = vmatmul.mubr.msk.bf16.gmra.mrb[68].mxu0 %vm1526_vm0, %v4779_v5  ;;  %4090 = vmatmul.mubr.msk.bf16.gmra.mrb[68].mxu1 %vm1526_vm0, %v4779_v5 }
 0x19a   : > { %1603 = vmatprep.mubr.bf16.mxu0 %v6820_v0  ;;  %1716 = vmatprep.mubr.bf16.mxu1 %v6820_v0 }
 0x19b   : > { %2274 = vmatpush1.bf16.msra.mxu0 %v4792_v10 }
 0x19c   : > { %2275 = vmatprep.subr.bf16.mxu0 %v4797_v14 }
 0x19f   : > { %2276 = vmatpush1.bf16.msra.mxu0 %v4795_v12 }
 0x1a0   : > { %2277 = vmatprep.subr.bf16.mxu0 %v4800_v18 }
 0x1a1   : > { %4083 = vmatmul.mubr.msk.bf16.gmra.mrb[72].mxu0 %vm1526_vm0, %v4780_v61  ;;  %4091 = vmatmul.mubr.msk.bf16.gmra.mrb[72].mxu1 %vm1526_vm0, %v4780_v61 }
 0x1a2   : > { %1613 = vmatprep.mubr.bf16.mxu0 %v6820_v0  ;;  %1726 = vmatprep.mubr.bf16.mxu1 %v6820_v0 }
 0x1a3   : > { %2278 = vmatpush1.bf16.msra.mxu0 %v4798_v16 }
 0x1a4   : > { %2279 = vmatprep.subr.bf16.mxu0 %v4803_v20 }
 0x1a7   : > { %2280 = vmatpush1.bf16.msra.mxu0 %v4801_v19 }
 0x1a8   : > { %2281 = vmatprep.subr.bf16.mxu0 %v4806_v23 }
 0x1a9   : > { %4084 = vmatmul.mubr.msk.bf16.gmra.mrb[76].mxu0 %vm1526_vm0, %v4781_v13  ;;  %4092 = vmatmul.mubr.msk.bf16.gmra.mrb[76].mxu1 %vm1526_vm0, %v4781_v13 }
 0x1aa   : > { %1623 = vmatprep.mubr.bf16.mxu0 %v6820_v0  ;;  %1736 = vmatprep.mubr.bf16.mxu1 %v6820_v0 }
 0x1ab   : > { %2282 = vmatpush1.bf16.msra.mxu0 %v4804_v22 }
 0x1ac   : > { %2283 = vmatprep.subr.bf16.mxu0 %v4809_v25 }
 0x1af   : > { %2284 = vmatpush1.bf16.msra.mxu0 %v4807_v24 }
 0x1b0   : > { %2285 = vmatprep.subr.bf16.mxu0 %v4812_v28 }
 0x1b1   : > { %4085 = vmatmul.mubr.msk.bf16.gmra.mrb[80].mxu0 %vm1526_vm0, %v4782_v53  ;;  %4093 = vmatmul.mubr.msk.bf16.gmra.mrb[80].mxu1 %vm1526_vm0, %v4782_v53 }
 0x1b2   : > { %1633 = vmatprep.mubr.bf16.mxu0 %v6820_v0  ;;  %1746 = vmatprep.mubr.bf16.mxu1 %v6820_v0 }
 0x1b3   : > { %2286 = vmatpush1.bf16.msra.mxu0 %v4810_v26 }
 0x1b4   : > { %2287 = vmatprep.subr.bf16.mxu0 %v4815_v30 }
 0x1b7   : > { %2288 = vmatpush1.bf16.msra.mxu0 %v4813_v29 }
 0x1b8   : > { %2289 = vmatprep.subr.bf16.mxu0 %v4818_v32 }
 0x1b9   : > { %4086 = vmatmul.mubr.msk.bf16.gmra.mrb[84].mxu0 %vm1526_vm0, %v4783_v9  ;;  %4094 = vmatmul.mubr.msk.bf16.gmra.mrb[84].mxu1 %vm1526_vm0, %v4783_v9 }
 0x1ba   : > { %1643 = vmatprep.mubr.bf16.mxu0 %v6820_v0  ;;  %1756 = vmatprep.mubr.bf16.mxu1 %v6820_v0 }
 0x1bb   : > { %2290 = vmatpush1.bf16.msra.mxu0 %v4816_v31 }
 0x1bc   : > { %2291 = vmatprep.subr.bf16.mxu0 %v4821_v34 }
 0x1bf   : > { %2292 = vmatpush1.bf16.msra.mxu0 %v4819_v33 }
 0x1c0   : > { %2293 = vmatprep.subr.bf16.mxu0 %v4824_v36 }
 0x1c1   : > { %4087 = vmatmul.mubr.msk.bf16.gmra.mrb[88].mxu0 %vm1526_vm0, %v4784_v15  ;;  %4095 = vmatmul.mubr.msk.bf16.gmra.mrb[88].mxu1 %vm1526_vm0, %v4784_v15 }
 0x1c2   : > { %1653 = vmatprep.mubr.bf16.mxu0 %v6820_v0  ;;  %1766 = vmatprep.mubr.bf16.mxu1 %v6820_v0 }
 0x1c3   : > { %2294 = vmatpush1.bf16.msra.mxu0 %v4822_v35 }
 0x1c4   : > { %2295 = vmatprep.subr.bf16.mxu0 %v4827_v38 }
 0x1c7   : > { %2296 = vmatpush1.bf16.msra.mxu0 %v4825_v37 }
 0x1c8   : > { %2297 = vmatprep.subr.bf16.mxu0 %v4830_v44 }
 0x1c9   : > { %4088 = vmatmul.mubr.msk.bf16.gmra.mrb[92].mxu0 %vm1526_vm0, %v4785_v21  ;;  %4096 = vmatmul.mubr.msk.bf16.gmra.mrb[92].mxu1 %vm1526_vm0, %v4785_v21 }
 0x1ca   : > { %2823 = vmatprep.mubr.bf16.mxu1 %v6820_v0 }
 0x1cb   : > { %2298 = vmatpush1.bf16.msra.mxu0 %v4828_v45 }
 0x1cc   : > { %2299 = vmatprep.subr.bf16.mxu0 %v4833_v50 }
 0x1cf   : > { %2300 = vmatpush1.bf16.msra.mxu0 %v4831_v51 }
 0x1d0   : > { %2382 = vmatprep.subr.bf16.mxu0 %v4836_v57 }
 0x1e4   : > { %v6032_v39 = vpop.f32.mrb[0].mxu0  ;;  %v6034_v40 = vpop.f32.mrb[0].mxu1 }
 0x1e5   : > { %v6036_v41 = vpop.f32.mrb[1].mxu0  ;;  %v6038_v42 = vpop.f32.mrb[1].mxu1 }
 0x1e8   : > { %v6040_v46 = vpop.f32.mrb[2].mxu0  ;;  %v6042_v47 = vpop.f32.mrb[2].mxu1 }
 0x1e9   : > { %v6044_v48 = vpop.f32.mrb[3].mxu0  ;;  %v6046_v49 = vpop.f32.mrb[3].mxu1 }
 0x1ec   : > { %v6048_v52 = vpop.f32.mrb[4].mxu0  ;;  %v6050_v54 = vpop.f32.mrb[4].mxu1 }
 0x1ed   : > { %v6052_v55 = vpop.f32.mrb[5].mxu0  ;;  %v6054_v56 = vpop.f32.mrb[5].mxu1 }
 0x1f0   : > { %v6056_v59 = vpop.f32.mrb[6].mxu0  ;;  %v6058_v4 = vpop.f32.mrb[6].mxu1 }
 0x1f1   : > { %v6060_v60 = vpop.f32.mrb[7].mxu0  ;;  %v6062_v62 = vpop.f32.mrb[7].mxu1 }
 0x1f4   : > { %v6064_v17 = vpop.f32.mrb[8].mxu0  ;;  %v6066_v63 = vpop.f32.mrb[8].mxu1 }
 0x1f5   : > { %v6068_v1 = vpop.f32.mrb[9].mxu0  ;;  %v6070_v2 = vpop.f32.mrb[9].mxu1 }
 0x1f8   : > { %v6072_v27 = vpop.f32.mrb[10].mxu0  ;;  %v6074_v43 = vpop.f32.mrb[10].mxu1 }
 0x1f9   : > { %v6076_v5 = vpop.f32.mrb[11].mxu0  ;;  %v6078_v61 = vpop.f32.mrb[11].mxu1 }
 0x1fc   : > { %v6080_v13 = vpop.f32.mrb[12].mxu0  ;;  %v6082_v53 = vpop.f32.mrb[12].mxu1 }
 0x1fd   : > { %v6084_v3 = vpop.f32.mrb[13].mxu0  ;;  %v6086_v6 = vpop.f32.mrb[13].mxu1 }
 0x200   : > { %v6088_v7 = vpop.f32.mrb[14].mxu0  ;;  %v6090_v8 = vpop.f32.mrb[14].mxu1 }
 0x201   : > { %v6092_v9 = vpop.f32.mrb[15].mxu0  ;;  %v6094_v10 = vpop.f32.mrb[15].mxu1 }
 0x204   : > { %v6096_v11 = vpop.f32.mrb[16].mxu0  ;;  %v6098_v12 = vpop.f32.mrb[16].mxu1 }
 0x205   : > { %v6100_v14 = vpop.f32.mrb[17].mxu0  ;;  %v6102_v15 = vpop.f32.mrb[17].mxu1 }
 0x208   : > { %v6104_v16 = vpop.f32.mrb[18].mxu0  ;;  %v6106_v18 = vpop.f32.mrb[18].mxu1 }
 0x209   : > { %v6108_v19 = vpop.f32.mrb[19].mxu0  ;;  %v6110_v20 = vpop.f32.mrb[19].mxu1 }
 0x20c   : > { %v6112_v21 = vpop.f32.mrb[20].mxu0  ;;  %v6114_v22 = vpop.f32.mrb[20].mxu1 }
 0x20d   : > { %v6116_v23 = vpop.f32.mrb[21].mxu0  ;;  %v6118_v24 = vpop.f32.mrb[21].mxu1 }
 0x210   : > { %v6120_v25 = vpop.f32.mrb[22].mxu0  ;;  %v6122_v26 = vpop.f32.mrb[22].mxu1 }
 0x211   : > { %6844 = vst [vmem:[#allocation24_spill] sm:$0xff] %v6122_v26  ;;  %v6124_v28 = vpop.f32.mrb[23].mxu0  ;;  %v6126_v29 = vpop.f32.mrb[23].mxu1 }
 0x212   : > { %6845 = vst [vmem:[#allocation25_spill] sm:$0xff] %v6124_v28  ;;  %6846 = vst [vmem:[#allocation26_spill] sm:$0xff] %v6126_v29 }
 0x214   : > { %v6128_v30 = vpop.f32.mrb[24].mxu0  ;;  %v6130_v31 = vpop.f32.mrb[24].mxu1 }
 0x215   : > { %6847 = vst [vmem:[#allocation27_spill] sm:$0xff] %v6128_v30  ;;  %6848 = vst [vmem:[#allocation28_spill] sm:$0xff] %v6130_v31  ;;  %v6132_v32 = vpop.f32.mrb[25].mxu0  ;;  %v6134_v33 = vpop.f32.mrb[25].mxu1  ;;  %v4882_v31 = vld [vmem:[#allocation7] ss:$16 sps:$4 sm:$0xff]  }
 0x216   : > { %6849 = vst [vmem:[#allocation29_spill] sm:$0xff] %v6132_v32  ;;  %6850 = vst [vmem:[#allocation30_spill] sm:$0xff] %v6134_v33 }
 0x218   : > { %v6136_v34 = vpop.f32.mrb[26].mxu0  ;;  %v6138_v35 = vpop.f32.mrb[26].mxu1 }
 0x219   : > { %6851 = vst [vmem:[#allocation31_spill] sm:$0xff] %v6136_v34  ;;  %6852 = vst [vmem:[#allocation32_spill] sm:$0xff] %v6138_v35  ;;  %v6140_v36 = vpop.f32.mrb[27].mxu0  ;;  %v6142_v37 = vpop.f32.mrb[27].mxu1 }
 0x21a   : > { %6853 = vst [vmem:[#allocation33_spill] sm:$0xff] %v6140_v36  ;;  %6854 = vst [vmem:[#allocation34_spill] sm:$0xff] %v6142_v37 }
 0x21c   : > { %v6144_v38 = vpop.f32.mrb[28].mxu0  ;;  %v6146_v44 = vpop.f32.mrb[28].mxu1 }
 0x21d   : > { %6855 = vst [vmem:[#allocation35_spill] sm:$0xff] %v6144_v38  ;;  %6856 = vst [vmem:[#allocation36_spill] sm:$0xff] %v6146_v44  ;;  %v6148_v45 = vpop.f32.mrb[29].mxu0  ;;  %v6150_v50 = vpop.f32.mrb[29].mxu1 }
 0x21e   : > { %6857 = vst [vmem:[#allocation37_spill] sm:$0xff] %v6148_v45  ;;  %6858 = vst [vmem:[#allocation38_spill] sm:$0xff] %v6150_v50 }
 0x220   : > { %v6152_v51 = vpop.f32.mrb[30].mxu0  ;;  %v6154_v57 = vpop.f32.mrb[30].mxu1 }
 0x221   : > { %6859 = vst [vmem:[#allocation39_spill] sm:$0xff] %v6152_v51  ;;  %6860 = vst [vmem:[#allocation40_spill] sm:$0xff] %v6154_v57  ;;  %v6156_v0 = vpop.f32.mrb[31].mxu0  ;;  %v6158_v58 = vpop.f32.mrb[31].mxu1 }
 0x222   : > { %6861 = vst [vmem:[#allocation41_spill] sm:$0xff] %v6156_v0  ;;  %6862 = vst [vmem:[#allocation42_spill] sm:$0xff] %v6158_v58 }
 0x224   : > { %v6160_v35 = vpop.f32.mrb[32].mxu0  ;;  %v6162_v36 = vpop.f32.mrb[32].mxu1 }
 0x225   : > { %6863 = vst [vmem:[#allocation43_spill] sm:$0xff] %v6160_v35  ;;  %6864 = vst [vmem:[#allocation44_spill] sm:$0xff] %v6162_v36  ;;  %v6164_v37 = vpop.f32.mrb[33].mxu0  ;;  %v6166_v38 = vpop.f32.mrb[33].mxu1 }
 0x226   : > { %6865 = vst [vmem:[#allocation45_spill] sm:$0xff] %v6164_v37  ;;  %6866 = vst [vmem:[#allocation46_spill] sm:$0xff] %v6166_v38 }
 0x228   : > { %v6168_v44 = vpop.f32.mrb[34].mxu0  ;;  %v6170_v45 = vpop.f32.mrb[34].mxu1 }
 0x229   : > { %6867 = vst [vmem:[#allocation47_spill] sm:$0xff] %v6168_v44  ;;  %6868 = vst [vmem:[#allocation48_spill] sm:$0xff] %v6170_v45  ;;  %v6172_v50 = vpop.f32.mrb[35].mxu0  ;;  %v6174_v51 = vpop.f32.mrb[35].mxu1 }
 0x22a   : > { %6869 = vst [vmem:[#allocation49_spill] sm:$0xff] %v6172_v50  ;;  %6870 = vst [vmem:[#allocation50_spill] sm:$0xff] %v6174_v51 }
 0x22c   : > { %v6176_v57 = vpop.f32.mrb[36].mxu0  ;;  %v6178_v0 = vpop.f32.mrb[36].mxu1 }
 0x22d   : > { %6871 = vst [vmem:[#allocation51_spill] sm:$0xff] %v6176_v57  ;;  %6872 = vst [vmem:[#allocation52_spill] sm:$0xff] %v6178_v0  ;;  %v6180_v58 = vpop.f32.mrb[37].mxu0  ;;  %v6182_v35 = vpop.f32.mrb[37].mxu1 }
 0x22e   : > { %6873 = vst [vmem:[#allocation53_spill] sm:$0xff] %v6180_v58  ;;  %6874 = vst [vmem:[#allocation54_spill] sm:$0xff] %v6182_v35 }
 0x230   : > { %v6184_v36 = vpop.f32.mrb[38].mxu0  ;;  %v6186_v37 = vpop.f32.mrb[38].mxu1 }
 0x231   : > { %6875 = vst [vmem:[#allocation55_spill] sm:$0xff] %v6184_v36  ;;  %6876 = vst [vmem:[#allocation56_spill] sm:$0xff] %v6186_v37  ;;  %v6188_v38 = vpop.f32.mrb[39].mxu0  ;;  %v6190_v44 = vpop.f32.mrb[39].mxu1 }
 0x232   : > { %6877 = vst [vmem:[#allocation57_spill] sm:$0xff] %v6188_v38  ;;  %6878 = vst [vmem:[#allocation58_spill] sm:$0xff] %v6190_v44 }
 0x234   : > { %v6192_v45 = vpop.f32.mrb[40].mxu0  ;;  %v6194_v50 = vpop.f32.mrb[40].mxu1 }
 0x235   : > { %6879 = vst [vmem:[#allocation59_spill] sm:$0xff] %v6192_v45  ;;  %6880 = vst [vmem:[#allocation60_spill] sm:$0xff] %v6194_v50  ;;  %v6196_v51 = vpop.f32.mrb[41].mxu0  ;;  %v6198_v57 = vpop.f32.mrb[41].mxu1 }
 0x236   : > { %6881 = vst [vmem:[#allocation61_spill] sm:$0xff] %v6196_v51  ;;  %6882 = vst [vmem:[#allocation62_spill] sm:$0xff] %v6198_v57 }
 0x238   : > { %v6200_v0 = vpop.f32.mrb[42].mxu0  ;;  %v6202_v58 = vpop.f32.mrb[42].mxu1 }
 0x239   : > { %6883 = vst [vmem:[#allocation63_spill] sm:$0xff] %v6200_v0  ;;  %6884 = vst [vmem:[#allocation64_spill] sm:$0xff] %v6202_v58  ;;  %v6204_v35 = vpop.f32.mrb[43].mxu0  ;;  %v6206_v36 = vpop.f32.mrb[43].mxu1 }
 0x23a   : > { %6885 = vst [vmem:[#allocation65_spill] sm:$0xff] %v6204_v35  ;;  %6886 = vst [vmem:[#allocation66_spill] sm:$0xff] %v6206_v36 }
 0x23c   : > { %v6208_v37 = vpop.f32.mrb[44].mxu0  ;;  %v6210_v38 = vpop.f32.mrb[44].mxu1 }
 0x23d   : > { %6887 = vst [vmem:[#allocation67_spill] sm:$0xff] %v6208_v37  ;;  %6888 = vst [vmem:[#allocation68_spill] sm:$0xff] %v6210_v38  ;;  %v6212_v44 = vpop.f32.mrb[45].mxu0  ;;  %v6214_v45 = vpop.f32.mrb[45].mxu1 }
 0x23e   : > { %6889 = vst [vmem:[#allocation69_spill] sm:$0xff] %v6212_v44  ;;  %6890 = vst [vmem:[#allocation70_spill] sm:$0xff] %v6214_v45 }
 0x240   : > { %v6216_v50 = vpop.f32.mrb[46].mxu0  ;;  %v6218_v51 = vpop.f32.mrb[46].mxu1 }
 0x241   : > { %6891 = vst [vmem:[#allocation71_spill] sm:$0xff] %v6216_v50  ;;  %6892 = vst [vmem:[#allocation72_spill] sm:$0xff] %v6218_v51  ;;  %v6220_v57 = vpop.f32.mrb[47].mxu0  ;;  %v6222_v0 = vpop.f32.mrb[47].mxu1 }
 0x242   : > { %6893 = vst [vmem:[#allocation73_spill] sm:$0xff] %v6220_v57  ;;  %6894 = vst [vmem:[#allocation74_spill] sm:$0xff] %v6222_v0 }
 0x244   : > { %v6224_v58 = vpop.f32.mrb[48].mxu0  ;;  %v6226_v35 = vpop.f32.mrb[48].mxu1 }
 0x245   : > { %6895 = vst [vmem:[#allocation75_spill] sm:$0xff] %v6224_v58  ;;  %6896 = vst [vmem:[#allocation76_spill] sm:$0xff] %v6226_v35  ;;  %v6228_v36 = vpop.f32.mrb[49].mxu0  ;;  %v6230_v37 = vpop.f32.mrb[49].mxu1 }
 0x246   : > { %6897 = vst [vmem:[#allocation77_spill] sm:$0xff] %v6228_v36  ;;  %6898 = vst [vmem:[#allocation78_spill] sm:$0xff] %v6230_v37 }
 0x248   : > { %v6232_v38 = vpop.f32.mrb[50].mxu0  ;;  %v6234_v44 = vpop.f32.mrb[50].mxu1 }
 0x249   : > { %6899 = vst [vmem:[#allocation79_spill] sm:$0xff] %v6232_v38  ;;  %6900 = vst [vmem:[#allocation80_spill] sm:$0xff] %v6234_v44  ;;  %v6236_v45 = vpop.f32.mrb[51].mxu0  ;;  %v6238_v50 = vpop.f32.mrb[51].mxu1 }
 0x24a   : > { %6901 = vst [vmem:[#allocation81_spill] sm:$0xff] %v6236_v45  ;;  %6902 = vst [vmem:[#allocation82_spill] sm:$0xff] %v6238_v50 }
 0x24c   : > { %v6240_v51 = vpop.f32.mrb[52].mxu0  ;;  %v6242_v57 = vpop.f32.mrb[52].mxu1 }
 0x24d   : > { %6903 = vst [vmem:[#allocation83_spill] sm:$0xff] %v6240_v51  ;;  %6904 = vst [vmem:[#allocation84_spill] sm:$0xff] %v6242_v57  ;;  %v6244_v0 = vpop.f32.mrb[53].mxu0  ;;  %v6246_v58 = vpop.f32.mrb[53].mxu1 }
 0x24e   : > { %6905 = vst [vmem:[#allocation85_spill] sm:$0xff] %v6244_v0  ;;  %6906 = vst [vmem:[#allocation86_spill] sm:$0xff] %v6246_v58 }
 0x250   : > { %v6248_v35 = vpop.f32.mrb[54].mxu0  ;;  %v6250_v36 = vpop.f32.mrb[54].mxu1 }
 0x251   : > { %6907 = vst [vmem:[#allocation87_spill] sm:$0xff] %v6248_v35  ;;  %6908 = vst [vmem:[#allocation88_spill] sm:$0xff] %v6250_v36  ;;  %v6252_v37 = vpop.f32.mrb[55].mxu0  ;;  %v6254_v38 = vpop.f32.mrb[55].mxu1 }
 0x252   : > { %6909 = vst [vmem:[#allocation89_spill] sm:$0xff] %v6252_v37  ;;  %6910 = vst [vmem:[#allocation90_spill] sm:$0xff] %v6254_v38 }
 0x254   : > { %v6256_v44 = vpop.f32.mrb[56].mxu0  ;;  %v6258_v45 = vpop.f32.mrb[56].mxu1 }
 0x255   : > { %6911 = vst [vmem:[#allocation91_spill] sm:$0xff] %v6256_v44  ;;  %6912 = vst [vmem:[#allocation92_spill] sm:$0xff] %v6258_v45  ;;  %v6260_v50 = vpop.f32.mrb[57].mxu0  ;;  %v6262_v51 = vpop.f32.mrb[57].mxu1 }
 0x256   : > { %6913 = vst [vmem:[#allocation93_spill] sm:$0xff] %v6260_v50  ;;  %6914 = vst [vmem:[#allocation94_spill] sm:$0xff] %v6262_v51 }
 0x258   : > { %v6264_v57 = vpop.f32.mrb[58].mxu0  ;;  %v6266_v0 = vpop.f32.mrb[58].mxu1 }
 0x259   : > { %6915 = vst [vmem:[#allocation95_spill] sm:$0xff] %v6264_v57  ;;  %6916 = vst [vmem:[#allocation96_spill] sm:$0xff] %v6266_v0  ;;  %v6268_v58 = vpop.f32.mrb[59].mxu0  ;;  %v6270_v35 = vpop.f32.mrb[59].mxu1 }
 0x25a   : > { %6917 = vst [vmem:[#allocation97_spill] sm:$0xff] %v6268_v58  ;;  %6918 = vst [vmem:[#allocation98_spill] sm:$0xff] %v6270_v35 }
 0x25c   : > { %v6272_v36 = vpop.f32.mrb[60].mxu0  ;;  %v6274_v37 = vpop.f32.mrb[60].mxu1 }
 0x25d   : > { %6919 = vst [vmem:[#allocation99_spill] sm:$0xff] %v6272_v36  ;;  %6920 = vst [vmem:[#allocation100_spill] sm:$0xff] %v6274_v37  ;;  %v6276_v38 = vpop.f32.mrb[61].mxu0  ;;  %v6278_v44 = vpop.f32.mrb[61].mxu1 }
 0x25e   : > { %6921 = vst [vmem:[#allocation101_spill] sm:$0xff] %v6276_v38  ;;  %6922 = vst [vmem:[#allocation102_spill] sm:$0xff] %v6278_v44 }
 0x260   : > { %v6280_v45 = vpop.f32.mrb[62].mxu0  ;;  %v6282_v50 = vpop.f32.mrb[62].mxu1 }
 0x261   : > { %6923 = vst [vmem:[#allocation103_spill] sm:$0xff] %v6280_v45  ;;  %6924 = vst [vmem:[#allocation104_spill] sm:$0xff] %v6282_v50  ;;  %v6284_v51 = vpop.f32.mrb[63].mxu0  ;;  %v6286_v57 = vpop.f32.mrb[63].mxu1 }
 0x262   : > { %6925 = vst [vmem:[#allocation105_spill] sm:$0xff] %v6284_v51  ;;  %6926 = vst [vmem:[#allocation106_spill] sm:$0xff] %v6286_v57 }
 0x264   : > { %v1585_v0 = vpop.f32.mrb[64].mxu0  ;;  %v1698_v58 = vpop.f32.mrb[64].mxu1 }
 0x265   : > { %v1586_v35 = vadd.f32 %v1585_v0, %v6032_v39  ;;  %v1699_v36 = vadd.f32 %v1698_v58, %v6034_v40  ;;  %v1587_v34 = vpop.f32.mrb[65].mxu0  ;;  %v1700_v37 = vpop.f32.mrb[65].mxu1  ;;  %v4884_v58 = vld [vmem:[#allocation7 + $0x4] ss:$16 sps:$4 sm:$0xff]  }
 0x266   : > { %v1588_v38 = vadd.f32 %v1587_v34, %v6036_v41  ;;  %v1701_v44 = vadd.f32 %v1700_v37, %v6038_v42  ;;  %v1589_v33 = vpop.f32.mrb[66].mxu0  ;;  %v1702_v45 = vpop.f32.mrb[66].mxu1  ;;  %v4887_v34 = vld [vmem:[#allocation7 + $0x24] ss:$16 sps:$4 sm:$0xff]   ;;  %2791 = vmatprep.subr.bf16.mxu1 %v4884_v58 }
 0x267   : > { %v1590_v50 = vadd.f32 %v1589_v33, %v6040_v46  ;;  %v1703_v51 = vadd.f32 %v1702_v45, %v6042_v47  ;;  %v1591_v32 = vpop.f32.mrb[67].mxu0  ;;  %v1704_v57 = vpop.f32.mrb[67].mxu1  ;;  %v1777_v39 = vmax.f32 %v1586_v35, 0.0  ;;  %v1779_v40 = vmax.f32 %v1699_v36, 0.0  ;;  %2792 = vmatpush1.bf16.msra.mxu1 %v4882_v31  ;;  %v4885_v33 = vld [vmem:[#allocation7 + $0x20] ss:$16 sps:$4 sm:$0xff]  }
 0x268   : > { %v1592_v30 = vadd.f32 %v1591_v32, %v6044_v48  ;;  %v1705_v0 = vadd.f32 %v1704_v57, %v6046_v49  ;;  %v1778_v42 = vmax.f32 %v1588_v38, 0.0  ;;  %v1780_v37 = vmax.f32 %v1701_v44, 0.0  ;;  %v4834_v35 = vld [vmem:[#allocation5 + $0x100] ss:$8 sps:$4 sm:$0xff]   ;;  %2793 = vmatprep.subr.bf16.mxu1 %v4887_v34  ;;  %v4890_v36 = vld [vmem:[#allocation7 + $0x44] ss:$16 sps:$4 sm:$0xff]  }
 0x269   : > { %v1781_v29 = vmax.f32 %v1590_v50, 0.0  ;;  %v1783_v41 = vmax.f32 %v1703_v51, 0.0  ;;  %v4839_v51 = vld [vmem:[#allocation5 + $0x114] ss:$8 sps:$4 sm:$0xff]  }
 0x26a   : > { %v1782_v28 = vmax.f32 %v1592_v30, 0.0  ;;  %v1784_v26 = vmax.f32 %v1705_v0, 0.0 }
 0x26b   : > { %v1841_v46 = vpack.c.bf16 %v1781_v29, %v1777_v39  ;;  %v6296_v47 = vpack.c.bf16 %v1783_v41, %v1779_v40  ;;  %2794 = vmatpush1.bf16.msra.mxu1 %v4885_v33 }
 0x26c   : > { %v1842_v45 = vpack.c.bf16 %v1782_v28, %v1778_v42  ;;  %v6298_v48 = vpack.c.bf16 %v1784_v26, %v1780_v37  ;;  %v1595_v49 = vpop.f32.mrb[68].mxu0  ;;  %v1708_v32 = vpop.f32.mrb[68].mxu1  ;;  %2795 = vmatprep.subr.bf16.mxu1 %v4890_v36 }
 0x26d   : > { %v1596_v50 = vadd.f32 %v1595_v49, %v6048_v52  ;;  %v1709_v38 = vadd.f32 %v1708_v32, %v6050_v54  ;;  %v1597_v30 = vpop.f32.mrb[69].mxu0  ;;  %v1710_v44 = vpop.f32.mrb[69].mxu1  ;;  %v4888_v52 = vld [vmem:[#allocation7 + $0x40] ss:$16 sps:$4 sm:$0xff]  }
 0x26e   : > { %v1598_v29 = vadd.f32 %v1597_v30, %v6052_v55  ;;  %v1711_v31 = vadd.f32 %v1710_v44, %v6054_v56  ;;  %v1599_v57 = vpop.f32.mrb[70].mxu0  ;;  %v1712_v28 = vpop.f32.mrb[70].mxu1  ;;  %2301 = vmatprep.mubr.bf16.mxu0 %v1842_v45  ;;  %v4837_v55 = vld [vmem:[#allocation5 + $0x110] ss:$8 sps:$4 sm:$0xff]   ;;  %v4893_v56 = vld [vmem:[#allocation7 + $0x64] ss:$16 sps:$4 sm:$0xff]  }
 0x26f   : > { %v1600_v26 = vadd.f32 %v1599_v57, %v6056_v59  ;;  %v1713_v0 = vadd.f32 %v1712_v28, %v6058_v4  ;;  %v1601_v58 = vpop.f32.mrb[71].mxu0  ;;  %v1714_v39 = vpop.f32.mrb[71].mxu1  ;;  %2302 = vmatmul.mubr.bf16.vlgmr.msra.gmra.mrb[96].mxu0 %v1841_v46  ;;  %v1785_v41 = vmax.f32 %v1596_v50, 0.0  ;;  %v1787_v34 = vmax.f32 %v1709_v38, 0.0  ;;  %v4842_v59 = vld [vmem:[#allocation5 + $0x124] ss:$8 sps:$4 sm:$0xff]   ;;  %2796 = vmatpush1.bf16.msra.mxu1 %v4888_v52 }
 0x270   : > { %v1602_v54 = vadd.f32 %v1601_v58, %v6060_v60  ;;  %v1715_v40 = vadd.f32 %v1714_v39, %v6062_v62  ;;  %2383 = vmatpush1.bf16.msra.mxu0 %v4834_v35  ;;  %v1786_v4 = vmax.f32 %v1598_v29, 0.0  ;;  %v1788_v45 = vmax.f32 %v1711_v31, 0.0  ;;  %v4891_v60 = vld [vmem:[#allocation7 + $0x60] ss:$16 sps:$4 sm:$0xff]   ;;  %2797 = vmatprep.subr.bf16.mxu1 %v4893_v56  ;;  %v4896_v30 = vld [vmem:[#allocation7 + $0x84] ss:$16 sps:$4 sm:$0xff]  }
 0x271   : > { %v1789_v42 = vmax.f32 %v1600_v26, 0.0  ;;  %v1791_v37 = vmax.f32 %v1713_v0, 0.0  ;;  %2384 = vmatprep.subr.bf16.mxu0 %v4839_v51  ;;  %v4840_v38 = vld [vmem:[#allocation5 + $0x120] ss:$8 sps:$4 sm:$0xff]   ;;  %v4845_v57 = vld [vmem:[#allocation5 + $0x134] ss:$8 sps:$4 sm:$0xff]  }
 0x272   : > { %v1790_v49 = vmax.f32 %v1602_v54, 0.0  ;;  %v1792_v46 = vmax.f32 %v1715_v40, 0.0 }
 0x273   : > { %v1845_v33 = vpack.c.bf16 %v1789_v42, %v1785_v41  ;;  %v6308_v32 = vpack.c.bf16 %v1791_v37, %v1787_v34  ;;  %2798 = vmatpush1.bf16.msra.mxu1 %v4891_v60 }
 0x274   : > { %v1846_v62 = vpack.c.bf16 %v1790_v49, %v1786_v4  ;;  %v6310_v35 = vpack.c.bf16 %v1792_v46, %v1788_v45  ;;  %2385 = vmatpush1.bf16.msra.mxu0 %v4837_v55  ;;  %v1605_v36 = vpop.f32.mrb[72].mxu0  ;;  %v1718_v50 = vpop.f32.mrb[72].mxu1  ;;  %2799 = vmatprep.subr.bf16.mxu1 %v4896_v30 }
 0x275   : > { %v1606_v44 = vadd.f32 %v1605_v36, %v6064_v17  ;;  %v1719_v51 = vadd.f32 %v1718_v50, %v6066_v63  ;;  %v1607_v29 = vpop.f32.mrb[73].mxu0  ;;  %v1720_v31 = vpop.f32.mrb[73].mxu1  ;;  %2386 = vmatprep.subr.bf16.mxu0 %v4842_v59  ;;  %v4894_v17 = vld [vmem:[#allocation7 + $0x80] ss:$16 sps:$4 sm:$0xff]  }
 0x276   : > { %v1608_v28 = vadd.f32 %v1607_v29, %v6068_v1  ;;  %v1721_v26 = vadd.f32 %v1720_v31, %v6070_v2  ;;  %v1609_v0 = vpop.f32.mrb[74].mxu0  ;;  %v1722_v58 = vpop.f32.mrb[74].mxu1  ;;  %2311 = vmatprep.mubr.bf16.mxu0 %v1846_v62  ;;  %v4843_v1 = vld [vmem:[#allocation5 + $0x130] ss:$8 sps:$4 sm:$0xff]  }
 0x277   : > { %v1610_v39 = vadd.f32 %v1609_v0, %v6072_v27  ;;  %v1723_v52 = vadd.f32 %v1722_v58, %v6074_v43  ;;  %v1611_v54 = vpop.f32.mrb[75].mxu0  ;;  %v1724_v40 = vpop.f32.mrb[75].mxu1  ;;  %2312 = vmatmul.mubr.bf16.gmra.mrb[100].mxu0 %v1845_v33  ;;  %v1793_v2 = vmax.f32 %v1606_v44, 0.0  ;;  %v1795_v56 = vmax.f32 %v1719_v51, 0.0  ;;  %v4848_v27 = vld [vmem:[#allocation5 + $0x144] ss:$8 sps:$4 sm:$0xff]   ;;  %2800 = vmatpush1.bf16.msra.mxu1 %v4894_v17 }
 0x278   : > { %v1612_v63 = vadd.f32 %v1611_v54, %v6076_v5  ;;  %v1725_v55 = vadd.f32 %v1724_v40, %v6078_v61  ;;  %2387 = vmatpush1.bf16.msra.mxu0 %v4840_v38  ;;  %v1794_v42 = vmax.f32 %v1608_v28, 0.0  ;;  %v1796_v43 = vmax.f32 %v1721_v26, 0.0  ;;  %v4846_v33 = vld [vmem:[#allocation5 + $0x140] ss:$8 sps:$4 sm:$0xff]   ;;  %v4851_v38 = vld [vmem:[#allocation5 + $0x154] ss:$8 sps:$4 sm:$0xff]  }
 0x279   : > { %v1797_v41 = vmax.f32 %v1610_v39, 0.0  ;;  %v1799_v34 = vmax.f32 %v1723_v52, 0.0  ;;  %2388 = vmatprep.subr.bf16.mxu0 %v4845_v57  ;;  %v4849_v0 = vld [vmem:[#allocation5 + $0x150] ss:$8 sps:$4 sm:$0xff]   ;;  %v4854_v52 = vld [vmem:[#allocation5 + $0x164] ss:$8 sps:$4 sm:$0xff]  }
 0x27a   : > { %v1798_v37 = vmax.f32 %v1612_v63, 0.0  ;;  %v1800_v59 = vmax.f32 %v1725_v55, 0.0 }
 0x27b   : > { %v1849_v4 = vpack.c.bf16 %v1797_v41, %v1793_v2  ;;  %v6320_v45 = vpack.c.bf16 %v1799_v34, %v1795_v56  ;;  %v4852_v2 = vld [vmem:[#allocation5 + $0x160] ss:$8 sps:$4 sm:$0xff]  }
 0x27c   : > { %v1850_v5 = vpack.c.bf16 %v1798_v37, %v1794_v42  ;;  %v6322_v49 = vpack.c.bf16 %v1800_v59, %v1796_v43  ;;  %2389 = vmatpush1.bf16.msra.mxu0 %v4843_v1  ;;  %v1615_v61 = vpop.f32.mrb[76].mxu0  ;;  %v1728_v46 = vpop.f32.mrb[76].mxu1  ;;  %v4857_v42 = vld [vmem:[#allocation5 + $0x174] ss:$8 sps:$4 sm:$0xff]  }
 0x27d   : > { %v1616_v60 = vadd.f32 %v1615_v61, %v6080_v13  ;;  %v1729_v62 = vadd.f32 %v1728_v46, %v6082_v53  ;;  %v1617_v36 = vpop.f32.mrb[77].mxu0  ;;  %v1730_v50 = vpop.f32.mrb[77].mxu1  ;;  %2390 = vmatprep.subr.bf16.mxu0 %v4848_v27 }
 0x27e   : > { %v1618_v30 = vadd.f32 %v1617_v36, %v6084_v3  ;;  %v1731_v44 = vadd.f32 %v1730_v50, %v6086_v6  ;;  %v1619_v51 = vpop.f32.mrb[78].mxu0  ;;  %v1732_v29 = vpop.f32.mrb[78].mxu1  ;;  %2321 = vmatprep.mubr.bf16.mxu0 %v1850_v5  ;;  %v4860_v50 = vld [vmem:[#allocation5 + $0x184] ss:$8 sps:$4 sm:$0xff]  }
 0x27f   : > { %v1620_v31 = vadd.f32 %v1619_v51, %v6088_v7  ;;  %v1733_v57 = vadd.f32 %v1732_v29, %v6090_v8  ;;  %v1621_v28 = vpop.f32.mrb[79].mxu0  ;;  %v1734_v26 = vpop.f32.mrb[79].mxu1  ;;  %2322 = vmatmul.mubr.bf16.gmra.mrb[104].mxu0 %v1849_v4  ;;  %v1801_v58 = vmax.f32 %v1616_v60, 0.0  ;;  %v1803_v3 = vmax.f32 %v1729_v62, 0.0  ;;  %v4855_v60 = vld [vmem:[#allocation5 + $0x170] ss:$8 sps:$4 sm:$0xff]  }
 0x280   : > { %v1622_v13 = vadd.f32 %v1621_v28, %v6092_v9  ;;  %v1735_v53 = vadd.f32 %v1734_v26, %v6094_v10  ;;  %2391 = vmatpush1.bf16.msra.mxu0 %v4846_v33  ;;  %v1802_v54 = vmax.f32 %v1618_v30, 0.0  ;;  %v1804_v40 = vmax.f32 %v1731_v44, 0.0 }
 0x281   : > { %v1805_v39 = vmax.f32 %v1620_v31, 0.0  ;;  %v1807_v6 = vmax.f32 %v1733_v57, 0.0  ;;  %2392 = vmatprep.subr.bf16.mxu0 %v4851_v38  ;;  %v4858_v57 = vld [vmem:[#allocation5 + $0x180] ss:$8 sps:$4 sm:$0xff]  }
 0x282   : > { %v1806_v7 = vmax.f32 %v1622_v13, 0.0  ;;  %v1808_v17 = vmax.f32 %v1735_v53, 0.0 }
 0x283   : > { %v1853_v8 = vpack.c.bf16 %v1805_v39, %v1801_v58  ;;  %v6332_v63 = vpack.c.bf16 %v1807_v6, %v1803_v3 }
 0x284   : > { %v1854_v55 = vpack.c.bf16 %v1806_v7, %v1802_v54  ;;  %v6334_v1 = vpack.c.bf16 %v1808_v17, %v1804_v40  ;;  %2393 = vmatpush1.bf16.msra.mxu0 %v4849_v0  ;;  %v1625_v9 = vpop.f32.mrb[80].mxu0  ;;  %v1738_v10 = vpop.f32.mrb[80].mxu1  ;;  %v4863_v0 = vld [vmem:[#allocation5 + $0x194] ss:$8 sps:$4 sm:$0xff]   ;;  %v6927_v54 = vld [vmem:[#allocation24_spill] sm:$0xff] }
 0x285   : > { %v1626_v56 = vadd.f32 %v1625_v9, %v6096_v11  ;;  %v1739_v41 = vadd.f32 %v1738_v10, %v6098_v12  ;;  %v1627_v34 = vpop.f32.mrb[81].mxu0  ;;  %v1740_v27 = vpop.f32.mrb[81].mxu1  ;;  %2394 = vmatprep.subr.bf16.mxu0 %v4854_v52  ;;  %v4861_v9 = vld [vmem:[#allocation5 + $0x190] ss:$8 sps:$4 sm:$0xff]  }
 0x286   : > { %v1628_v43 = vadd.f32 %v1627_v34, %v6100_v14  ;;  %v1741_v37 = vadd.f32 %v1740_v27, %v6102_v15  ;;  %v1629_v59 = vpop.f32.mrb[82].mxu0  ;;  %v1742_v4 = vpop.f32.mrb[82].mxu1  ;;  %2331 = vmatprep.mubr.bf16.mxu0 %v1854_v55 }
 0x287   : > { %v1630_v5 = vadd.f32 %v1629_v59, %v6104_v16  ;;  %v1743_v61 = vadd.f32 %v1742_v4, %v6106_v18  ;;  %v1631_v46 = vpop.f32.mrb[83].mxu0  ;;  %v1744_v33 = vpop.f32.mrb[83].mxu1  ;;  %2332 = vmatmul.mubr.bf16.gmra.mrb[108].mxu0 %v1853_v8  ;;  %v1809_v62 = vmax.f32 %v1626_v56, 0.0  ;;  %v1811_v14 = vmax.f32 %v1739_v41, 0.0  ;;  %v6929_v8 = vld [vmem:[#allocation26_spill] sm:$0xff] }
 0x288   : > { %v1632_v11 = vadd.f32 %v1631_v46, %v6108_v19  ;;  %v1745_v12 = vadd.f32 %v1744_v33, %v6110_v20  ;;  %2395 = vmatpush1.bf16.msra.mxu0 %v4852_v2  ;;  %v1810_v38 = vmax.f32 %v1628_v43, 0.0  ;;  %v1812_v30 = vmax.f32 %v1741_v37, 0.0  ;;  %v4866_v56 = vld [vmem:[#allocation5 + $0x1a4] ss:$8 sps:$4 sm:$0xff]   ;;  %v6930_v46 = vld [vmem:[#allocation27_spill] sm:$0xff] }
 0x289   : > { %v1813_v36 = vmax.f32 %v1630_v5, 0.0  ;;  %v1815_v15 = vmax.f32 %v1743_v61, 0.0  ;;  %2396 = vmatprep.subr.bf16.mxu0 %v4857_v42  ;;  %v4864_v61 = vld [vmem:[#allocation5 + $0x1a0] ss:$8 sps:$4 sm:$0xff]  }
 0x28a   : > { %v1814_v16 = vmax.f32 %v1632_v11, 0.0  ;;  %v1816_v44 = vmax.f32 %v1745_v12, 0.0  ;;  %v6931_v11 = vld [vmem:[#allocation28_spill] sm:$0xff] }
 0x28b   : > { %v1857_v18 = vpack.c.bf16 %v1813_v36, %v1809_v62  ;;  %v6344_v51 = vpack.c.bf16 %v1815_v15, %v1811_v14  ;;  %v4869_v14 = vld [vmem:[#allocation5 + $0x1b4] ss:$8 sps:$4 sm:$0xff]   ;;  %v6932_v36 = vld [vmem:[#allocation29_spill] sm:$0xff] }
 0x28c   : > { %v1858_v29 = vpack.c.bf16 %v1814_v16, %v1810_v38  ;;  %v6346_v31 = vpack.c.bf16 %v1816_v44, %v1812_v30  ;;  %2397 = vmatpush1.bf16.msra.mxu0 %v4855_v60  ;;  %v1635_v19 = vpop.f32.mrb[84].mxu0  ;;  %v1748_v20 = vpop.f32.mrb[84].mxu1  ;;  %v6934_v44 = vld [vmem:[#allocation31_spill] sm:$0xff] }
 0x28d   : > { %v1636_v28 = vadd.f32 %v1635_v19, %v6112_v21  ;;  %v1749_v26 = vadd.f32 %v1748_v20, %v6114_v22  ;;  %v1637_v13 = vpop.f32.mrb[85].mxu0  ;;  %v1750_v53 = vpop.f32.mrb[85].mxu1  ;;  %2398 = vmatprep.subr.bf16.mxu0 %v4860_v50  ;;  %v6928_v21 = vld [vmem:[#allocation25_spill] sm:$0xff]  ;;  %v6933_v50 = vld [vmem:[#allocation30_spill] sm:$0xff] }
 0x28e   : > { %v1638_v58 = vadd.f32 %v1637_v13, %v6116_v23  ;;  %v1751_v3 = vadd.f32 %v1750_v53, %v6118_v24  ;;  %v1639_v39 = vpop.f32.mrb[86].mxu0  ;;  %v1752_v6 = vpop.f32.mrb[86].mxu1  ;;  %2341 = vmatprep.mubr.bf16.mxu0 %v1858_v29  ;;  %v6935_v29 = vld [vmem:[#allocation32_spill] sm:$0xff]  ;;  %v6937_v13 = vld [vmem:[#allocation34_spill] sm:$0xff] }
 0x28f   : > { %v1640_v52 = vadd.f32 %v1639_v39, %v6120_v25  ;;  %v1753_v40 = vadd.f32 %v1752_v6, %v6927_v54  ;;  %v1641_v7 = vpop.f32.mrb[87].mxu0  ;;  %v1754_v17 = vpop.f32.mrb[87].mxu1  ;;  %2342 = vmatmul.mubr.bf16.gmra.mrb[112].mxu0 %v1857_v18  ;;  %v1817_v10 = vmax.f32 %v1636_v28, 0.0  ;;  %v1819_v23 = vmax.f32 %v1749_v26, 0.0  ;;  %v6936_v28 = vld [vmem:[#allocation33_spill] sm:$0xff] }
 0x290   : > { %v1642_v22 = vadd.f32 %v1641_v7, %v6928_v21  ;;  %v1755_v55 = vadd.f32 %v1754_v17, %v6929_v8  ;;  %2399 = vmatpush1.bf16.msra.mxu0 %v4858_v57  ;;  %v1818_v41 = vmax.f32 %v1638_v58, 0.0  ;;  %v1820_v34 = vmax.f32 %v1751_v3, 0.0 }
 0x291   : > { %v1821_v2 = vmax.f32 %v1640_v52, 0.0  ;;  %v1823_v24 = vmax.f32 %v1753_v40, 0.0  ;;  %2400 = vmatprep.subr.bf16.mxu0 %v4863_v0  ;;  %v4867_v0 = vld [vmem:[#allocation5 + $0x1b0] ss:$8 sps:$4 sm:$0xff]   ;;  %v4872_v52 = vld [vmem:[#allocation5 + $0x1c4] ss:$8 sps:$4 sm:$0xff]  }
 0x292   : > { %v1822_v25 = vmax.f32 %v1642_v22, 0.0  ;;  %v1824_v27 = vmax.f32 %v1755_v55, 0.0 }
 0x293   : > { %v1861_v42 = vpack.c.bf16 %v1821_v2, %v1817_v10  ;;  %v6356_v43 = vpack.c.bf16 %v1823_v24, %v1819_v23  ;;  %v4870_v23 = vld [vmem:[#allocation5 + $0x1c0] ss:$8 sps:$4 sm:$0xff]   ;;  %v6938_v2 = vld [vmem:[#allocation35_spill] sm:$0xff] }
 0x294   : > { %v1862_v37 = vpack.c.bf16 %v1822_v25, %v1818_v41  ;;  %v6358_v59 = vpack.c.bf16 %v1824_v27, %v1820_v34  ;;  %2401 = vmatpush1.bf16.msra.mxu0 %v4861_v9  ;;  %v1645_v4 = vpop.f32.mrb[88].mxu0  ;;  %v1758_v5 = vpop.f32.mrb[88].mxu1  ;;  %v4875_v27 = vld [vmem:[#allocation5 + $0x1d4] ss:$8 sps:$4 sm:$0xff]  }
 0x295   : > { %v1646_v33 = vadd.f32 %v1645_v4, %v6930_v46  ;;  %v1759_v12 = vadd.f32 %v1758_v5, %v6931_v11  ;;  %v1647_v60 = vpop.f32.mrb[89].mxu0  ;;  %v1760_v62 = vpop.f32.mrb[89].mxu1  ;;  %2402 = vmatprep.subr.bf16.mxu0 %v4866_v56  ;;  %v6939_v56 = vld [vmem:[#allocation36_spill] sm:$0xff]  ;;  %v6941_v4 = vld [vmem:[#allocation38_spill] sm:$0xff] }
 0x296   : > { %v1648_v15 = vadd.f32 %v1647_v60, %v6932_v36  ;;  %v1761_v38 = vadd.f32 %v1760_v62, %v6933_v50  ;;  %v1649_v30 = vpop.f32.mrb[90].mxu0  ;;  %v1762_v16 = vpop.f32.mrb[90].mxu1  ;;  %2351 = vmatprep.mubr.bf16.mxu0 %v1862_v37  ;;  %v6944_v36 = vld [vmem:[#allocation41_spill] sm:$0xff]  ;;  %v6945_v50 = vld [vmem:[#allocation42_spill] sm:$0xff] }
 0x297   : > { %v1650_v18 = vadd.f32 %v1649_v30, %v6934_v44  ;;  %v1763_v19 = vadd.f32 %v1762_v16, %v6935_v29  ;;  %v1651_v20 = vpop.f32.mrb[91].mxu0  ;;  %v1764_v57 = vpop.f32.mrb[91].mxu1  ;;  %2352 = vmatmul.mubr.bf16.gmra.mrb[116].mxu0 %v1861_v42  ;;  %v1825_v58 = vmax.f32 %v1646_v33, 0.0  ;;  %v1827_v3 = vmax.f32 %v1759_v12, 0.0  ;;  %v6940_v42 = vld [vmem:[#allocation37_spill] sm:$0xff]  ;;  %v6942_v33 = vld [vmem:[#allocation39_spill] sm:$0xff] }
 0x298   : > { %v1652_v26 = vadd.f32 %v1651_v20, %v6936_v28  ;;  %v1765_v53 = vadd.f32 %v1764_v57, %v6937_v13  ;;  %2403 = vmatpush1.bf16.msra.mxu0 %v4864_v61  ;;  %v1826_v54 = vmax.f32 %v1648_v15, 0.0  ;;  %v1828_v40 = vmax.f32 %v1761_v38, 0.0  ;;  %v6943_v12 = vld [vmem:[#allocation40_spill] sm:$0xff]  ;;  %v4873_v30 = vld [vmem:[#allocation5 + $0x1d0] ss:$8 sps:$4 sm:$0xff]  }
 0x299   : > { %v1829_v39 = vmax.f32 %v1650_v18, 0.0  ;;  %v1831_v6 = vmax.f32 %v1763_v19, 0.0  ;;  %2404 = vmatprep.subr.bf16.mxu0 %v4869_v14  ;;  %v4878_v19 = vld [vmem:[#allocation5 + $0x1e4] ss:$8 sps:$4 sm:$0xff]  }
 0x29a   : > { %v1830_v7 = vmax.f32 %v1652_v26, 0.0  ;;  %v1832_v17 = vmax.f32 %v1765_v53, 0.0 }
 0x29b   : > { %v1865_v21 = vpack.c.bf16 %v1829_v39, %v1825_v58  ;;  %v6368_v22 = vpack.c.bf16 %v1831_v6, %v1827_v3  ;;  %v4876_v3 = vld [vmem:[#allocation5 + $0x1e0] ss:$8 sps:$4 sm:$0xff]   ;;  %v4881_v39 = vld [vmem:[#allocation5 + $0x1f4] ss:$8 sps:$4 sm:$0xff]   ;;  %v4879_v6 = vld [vmem:[#allocation5 + $0x1f0] ss:$8 sps:$4 sm:$0xff]  }
 0x29c   : > { %v1866_v8 = vpack.c.bf16 %v1830_v7, %v1826_v54  ;;  %v1868_v55 = vpack.c.bf16 %v1832_v17, %v1828_v40  ;;  %2405 = vmatpush1.bf16.msra.mxu0 %v4867_v0  ;;  %v1655_v9 = vpop.f32.mrb[92].mxu0  ;;  %v1768_v10 = vpop.f32.mrb[92].mxu1 }
 0x29d   : > { %v1656_v24 = vadd.f32 %v1655_v9, %v6938_v2  ;;  %v1769_v41 = vadd.f32 %v1768_v10, %v6939_v56  ;;  %v1657_v34 = vpop.f32.mrb[93].mxu0  ;;  %v1770_v25 = vpop.f32.mrb[93].mxu1  ;;  %2406 = vmatprep.subr.bf16.mxu0 %v4872_v52 }
 0x29e   : > { %v1658_v37 = vadd.f32 %v1657_v34, %v6940_v42  ;;  %v1771_v5 = vadd.f32 %v1770_v25, %v6941_v4  ;;  %v1659_v61 = vpop.f32.mrb[94].mxu0  ;;  %v1772_v46 = vpop.f32.mrb[94].mxu1  ;;  %2361 = vmatprep.mubr.bf16.mxu0 %v1866_v8 }
 0x29f   : > { %v1660_v11 = vadd.f32 %v1659_v61, %v6942_v33  ;;  %v1773_v60 = vadd.f32 %v1772_v46, %v6943_v12  ;;  %v1661_v62 = vpop.f32.mrb[95].mxu0  ;;  %v1774_v14 = vpop.f32.mrb[95].mxu1  ;;  %2362 = vmatmul.mubr.bf16.gmra.mrb[120].mxu0 %v1865_v21  ;;  %v1833_v16 = vmax.f32 %v1656_v24, 0.0  ;;  %v1835_v44 = vmax.f32 %v1769_v41, 0.0  ;;  %v2543_v33 = vld [vmem:[%s6429_s26] sm:$0xff] }
 0x2a0   : > { %v1662_v15 = vadd.f32 %v1661_v62, %v6944_v36  ;;  %v1775_v38 = vadd.f32 %v1774_v14, %v6945_v50  ;;  %2407 = vmatpush1.bf16.msra.mxu0 %v4870_v23  ;;  %v1834_v20 = vmax.f32 %v1658_v37, 0.0  ;;  %v1836_v57 = vmax.f32 %v1771_v5, 0.0  ;;  %v2544_v36 = vld [vmem:[%s6429_s26 + $0x8] sm:$0xff] }
 0x2a1   : > { %v1837_v18 = vmax.f32 %v1660_v11, 0.0  ;;  %v1839_v29 = vmax.f32 %v1773_v60, 0.0  ;;  %2408 = vmatprep.subr.bf16.mxu0 %v4875_v27 }
 0x2a2   : > { %v1838_v28 = vmax.f32 %v1662_v15, 0.0  ;;  %v1840_v26 = vmax.f32 %v1775_v38, 0.0 }
 0x2a3   : > { %v1869_v13 = vpack.c.bf16 %v1837_v18, %v1833_v16  ;;  %v1871_v53 = vpack.c.bf16 %v1839_v29, %v1835_v44  ;;  %v4930_v44 = vld [vmem:[#allocation8 + $0x40] sm:$0xff]   ;;  %v4932_v29 = vld [vmem:[#allocation8 + $0x48] sm:$0xff]  }
 0x2a4   : > { %v1870_v0 = vpack.c.bf16 %v1838_v28, %v1834_v20  ;;  %v1872_v58 = vpack.c.bf16 %v1840_v26, %v1836_v57  ;;  %2409 = vmatpush1.bf16.msra.mxu0 %v4873_v30  ;;  %v4931_v18 = vld [vmem:[#allocation8] sm:$0xff]  }
 0x2a5   : > { %2410 = vmatprep.subr.bf16.mxu0 %v4878_v19 }
 0x2a6   : > { %2371 = vmatprep.mubr.bf16.mxu0 %v1870_v0  ;;  %v4933_v0 = vld [vmem:[#allocation8 + $0x8] sm:$0xff]  }
 0x2a7   : > { %2372 = vmatmul.mubr.bf16.gmra.mrb[124].mxu0 %v1869_v13 }
 0x2a8   : > { %2411 = vmatpush1.bf16.msra.mxu0 %v4876_v3  ;;  %2414 = vmatprep.mubr.bf16.mxu0 %v6298_v48  ;;  %v4897_v48 = vld [vmem:[#allocation7 + $0xa0] ss:$16 sps:$4 sm:$0xff]  }
 0x2a9   : > { %2412 = vmatprep.subr.bf16.mxu0 %v4881_v39  ;;  %v4934_v3 = vld [vmem:[#allocation8 + $0x50] sm:$0xff]  }
 0x2ac   : > { %2413 = vmatpush1.bf16.msra.mxu0 %v4879_v6 }
 0x2ad   : > { %4333 = vmatprep.subr.bf16.mxu0 %v4930_v44 }
 0x2af   : > { %2415 = vmatmul.mubr.bf16.vlgmr.msra.gmra.mrb[96].mxu0 %v6296_v47  ;;  %v4899_v47 = vld [vmem:[#allocation7 + $0xa4] ss:$16 sps:$4 sm:$0xff]  }
 0x2b0   : > { %2424 = vmatprep.mubr.bf16.mxu0 %v6310_v35  ;;  %2801 = vmatprep.subr.bf16.mxu1 %v4899_v47  ;;  %v4900_v35 = vld [vmem:[#allocation7 + $0xc0] ss:$16 sps:$4 sm:$0xff]   ;;  %v4906_v47 = vld [vmem:[#allocation7 + $0x8] ss:$16 sps:$4 sm:$0xff]  }
 0x2b1   : > { %2802 = vmatpush1.bf16.msra.mxu1 %v4897_v48  ;;  %4334 = vmatpush3.bf16.msra.mxu0 %v4931_v18  ;;  %v2545_v48 = vld [vmem:[%s6429_s26 + $0x10] sm:$0xff] }
 0x2b2   : > { %4335 = vmatprep.subr.bf16.mxu0 %v4932_v29 }
 0x2b5   : > { %4336 = vmatpush3.bf16.msra.mxu0 %v4933_v0 }
 0x2b6   : > { %4337 = vmatprep.subr.bf16.mxu0 %v4934_v3  ;;  %v2549_v3 = vld [vmem:[%s6429_s26 + $0x30] sm:$0xff] }
 0x2b7   : > { %2425 = vmatmul.mubr.bf16.gmra.mrb[100].mxu0 %v6308_v32  ;;  %v4902_v32 = vld [vmem:[#allocation7 + $0xc4] ss:$16 sps:$4 sm:$0xff]  }
 0x2b8   : > { %2434 = vmatprep.mubr.bf16.mxu0 %v6322_v49  ;;  %2803 = vmatprep.subr.bf16.mxu1 %v4902_v32  ;;  %v4903_v49 = vld [vmem:[#allocation7 + $0xe0] ss:$16 sps:$4 sm:$0xff]  }
 0x2b9   : > { %2804 = vmatpush1.bf16.msra.mxu1 %v4900_v35 }
 0x2bf   : > { %2435 = vmatmul.mubr.bf16.gmra.mrb[104].mxu0 %v6320_v45  ;;  %v4905_v45 = vld [vmem:[#allocation7 + $0xe4] ss:$16 sps:$4 sm:$0xff]  }
 0x2c0   : > { %2444 = vmatprep.mubr.bf16.mxu0 %v6334_v1  ;;  %2805 = vmatprep.subr.bf16.mxu1 %v4905_v45  ;;  %v6946_v1 = vlaneseq }
 0x2c1   : > { %2806 = vmatpush1.bf16.msra.mxu1 %v4903_v49  ;;  %v4911_v49 = vld [vmem:[#allocation7 + $0x2c] ss:$16 sps:$4 sm:$0xff]  }
 0x2c7   : > { %2445 = vmatmul.mubr.bf16.gmra.mrb[108].mxu0 %v6332_v63  ;;  %v4908_v63 = vld [vmem:[#allocation7 + $0xc] ss:$16 sps:$4 sm:$0xff]  }
 0x2c8   : > { %2454 = vmatprep.mubr.bf16.mxu0 %v6346_v31  ;;  %2904 = vmatprep.subr.bf16.mxu1 %v4908_v63 }
 0x2cf   : > { %2455 = vmatmul.mubr.bf16.gmra.mrb[112].mxu0 %v6344_v51  ;;  %v1940_v51 = vshrl.u32 %v6946_v1, 7 }
 0x2d0   : > { %2464 = vmatprep.mubr.bf16.mxu0 %v6358_v59 }
 0x2d1   : > { %v1941_v31 = vsub.s32 0, %v1940_v51  ;;  %v1945_v59 = vsub.s32 1, %v1940_v51 }
 0x2d7   : > { %2465 = vmatmul.mubr.bf16.gmra.mrb[116].mxu0 %v6356_v43  ;;  %v1937_v43 = vld [vmem:[%s6804_s6] sm:$0x3] }
 0x2d8   : > { %2474 = vmatprep.mubr.bf16.mxu0 %v1868_v55  ;;  %v6399_v52 = vrot.slane %v1937_v43, %v1941_v31  ;;  %v6401_v54 = vrot.slane %v1937_v43, %v1945_v59  ;;  %v2546_v31 = vld [vmem:[%s6429_s26 + $0x18] sm:$0xff]  ;;  %v4935_v43 = vld [vmem:[#allocation8 + $0x10] sm:$0xff]  }
 0x2d9   : > { %4338 = vmatpush3.bf16.msra.mxu0 %v4935_v43 }
 0x2df   : > { %2475 = vmatmul.mubr.bf16.gmra.mrb[120].mxu0 %v6368_v22 }
 0x2e0   : > { %2484 = vmatprep.mubr.bf16.mxu0 %v1872_v58 }
 0x2e7   : > { %2485 = vmatmul.mubr.bf16.gmra.mrb[124].mxu0 %v1871_v53 }
 0x382   : > { %v2416_v40 = vpop.f32.mrb[96].mxu0 }
 0x383   : > { %v4589_v7 = vadd.f32 %v2416_v40, %v6399_v52  ;;  %v2418_v17 = vpop.f32.mrb[97].mxu0 }
 0x384   : > { %v4590_v21 = vadd.f32 %v2418_v17, %v6401_v54  ;;  %v2420_v22 = vpop.f32.mrb[98].mxu0  ;;  %v4936_v17 = vld [vmem:[#allocation8 + $0x58] sm:$0xff]  }
 0x385   : > { %3746 = vst [vmem:[%s6405_s5] sm:$0xff] %v4589_v7  ;;  %v4591_v8 = vadd.f32 %v2420_v22, %v6399_v52  ;;  %v2422_v55 = vpop.f32.mrb[99].mxu0  ;;  %4339 = vmatprep.subr.bf16.mxu0 %v4936_v17  ;;  %v4921_v17 = vld [vmem:[#allocation7 + $0xa8] ss:$16 sps:$4 sm:$0xff]  }
 0x386   : > { %v2495_v9 = vmul.f32 0.5, %v4590_v21  ;;  %3747 = vst [vmem:[%s6405_s5 + $0x8] sm:$0xff] %v4590_v21  ;;  %v4592_v10 = vadd.f32 %v2422_v55, %v6401_v54  ;;  %v6947_v55 = vmov 0  }
 0x387   : > { %3748 = vst [vmem:[%s6405_s5 + $0x10] sm:$0xff] %v4591_v8 }
 0x388   : > { %v2511_v23 = vmul.f32 1.442695, %v2495_v9  ;;  %v2496_v2 = vmul.f32 0.5, %v4592_v10  ;;  %3749 = vst [vmem:[%s6405_s5 + $0x18] sm:$0xff] %v4592_v10  ;;  %v4909_v9 = vld [vmem:[#allocation7 + $0x28] ss:$16 sps:$4 sm:$0xff]  }
 0x38a   : > { %4962 = vpow2.f32 %v2511_v23  ;;  %v2513_v24 = vmul.f32 1.442695, %v2496_v2  ;;  %v2426_v56 = vpop.f32.mrb[100].mxu0  ;;  %v4914_v2 = vld [vmem:[#allocation7 + $0x4c] ss:$16 sps:$4 sm:$0xff]  }
 0x38b   : > { %v6414_v41 = vadd.f32 %v2426_v56, %v6399_v52  ;;  %v2428_v34 = vpop.f32.mrb[101].mxu0 }
 0x38c   : > { %4964 = vpow2.f32 %v2513_v24  ;;  %v4594_v25 = vadd.f32 %v2428_v34, %v6401_v54  ;;  %v2430_v27 = vpop.f32.mrb[102].mxu0  ;;  %v4937_v34 = vld [vmem:[#allocation8 + $0x18] sm:$0xff]  }
 0x38d   : > { %3750 = vst [vmem:[%s6405_s5 + $0x20] sm:$0xff] %v6414_v41  ;;  %v6420_v42 = vadd.f32 %v2430_v27, %v6399_v52  ;;  %v2432_v37 = vpop.f32.mrb[103].mxu0  ;;  %v4938_v27 = vld [vmem:[#allocation8 + $0x60] sm:$0xff]   ;;  %4340 = vmatpush3.bf16.msra.mxu0 %v4937_v34  ;;  %v4924_v34 = vld [vmem:[#allocation7 + $0xc8] ss:$16 sps:$4 sm:$0xff]  }
 0x38e   : > { %v2497_v4 = vmul.f32 0.5, %v4594_v25  ;;  %3751 = vst [vmem:[%s6405_s5 + $0x28] sm:$0xff] %v4594_v25  ;;  %v4596_v5 = vadd.f32 %v2432_v37, %v6401_v54  ;;  %4341 = vmatprep.subr.bf16.mxu0 %v4938_v27 }
 0x38f   : > { %3752 = vst [vmem:[%s6405_s5 + $0x30] sm:$0xff] %v6420_v42 }
 0x390   : > { %v2515_v61 = vmul.f32 1.442695, %v2497_v4  ;;  %v2498_v46 = vmul.f32 0.5, %v4596_v5  ;;  %3753 = vst [vmem:[%s6405_s5 + $0x38] sm:$0xff] %v4596_v5  ;;  %v4912_v5 = vld [vmem:[#allocation7 + $0x48] ss:$16 sps:$4 sm:$0xff]  }
 0x392   : > { %4966 = vpow2.f32 %v2515_v61  ;;  %v2517_v11 = vmul.f32 1.442695, %v2498_v46  ;;  %v2436_v12 = vpop.f32.mrb[104].mxu0  ;;  %v2547_v61 = vld [vmem:[%s6429_s26 + $0x20] sm:$0xff] }
 0x393   : > { %v6436_v60 = vadd.f32 %v2436_v12, %v6399_v52  ;;  %v2438_v62 = vpop.f32.mrb[105].mxu0 }
 0x394   : > { %v4963_v14 = vpop.eup %4962  ;;  %4968 = vpow2.f32 %v2517_v11  ;;  %v4598_v15 = vadd.f32 %v2438_v62, %v6401_v54  ;;  %v2440_v50 = vpop.f32.mrb[106].mxu0  ;;  %v4917_v11 = vld [vmem:[#allocation7 + $0x6c] ss:$16 sps:$4 sm:$0xff]  }
 0x395   : > { %v2559_v38 = vmul.f32 %v4963_v14, %v2543_v33  ;;  %3754 = vst [vmem:[%s6405_s5 + $0x40] sm:$0xff] %v6436_v60  ;;  %v6443_v30 = vadd.f32 %v2440_v50, %v6399_v52  ;;  %v2442_v16 = vpop.f32.mrb[107].mxu0  ;;  %v2548_v14 = vld [vmem:[%s6429_s26 + $0x28] sm:$0xff] }
 0x396   : > { %v4965_v19 = vpop.eup %4964  ;;  %v2499_v20 = vmul.f32 0.5, %v4598_v15  ;;  %3755 = vst [vmem:[%s6405_s5 + $0x48] sm:$0xff] %v4598_v15  ;;  %v4600_v57 = vadd.f32 %v2442_v16, %v6401_v54  ;;  %v4940_v16 = vld [vmem:[#allocation8 + $0x68] sm:$0xff]  }
 0x397   : > { %v2560_v28 = vmul.f32 %v4965_v19, %v2544_v36  ;;  %3756 = vst [vmem:[%s6405_s5 + $0x50] sm:$0xff] %v6443_v30  ;;  %v2575_v26 = vadd.f32 %v4589_v7, %v2559_v38  ;;  %v4939_v36 = vld [vmem:[#allocation8 + $0x20] sm:$0xff]   ;;  %v4915_v19 = vld [vmem:[#allocation7 + $0x68] ss:$16 sps:$4 sm:$0xff]  }
 0x398   : > { %v2519_v13 = vmul.f32 1.442695, %v2499_v20  ;;  %v2500_v53 = vmul.f32 0.5, %v4600_v57  ;;  %3757 = vst [vmem:[%s6405_s5 + $0x58] sm:$0xff] %v4600_v57  ;;  %4342 = vmatpush3.bf16.msra.mxu0 %v4939_v36  ;;  %v4927_v36 = vld [vmem:[#allocation7 + $0xe8] ss:$16 sps:$4 sm:$0xff]  }
 0x399   : > { %v2576_v58 = vadd.f32 %v4591_v8, %v2560_v28  ;;  %v4920_v28 = vld [vmem:[#allocation7 + $0x8c] ss:$16 sps:$4 sm:$0xff]   ;;  %4343 = vmatprep.subr.bf16.mxu0 %v4940_v16 }
 0x39a   : > { %4970 = vpow2.f32 %v2519_v13  ;;  %v2521_v39 = vmul.f32 1.442695, %v2500_v53  ;;  %v2446_v6 = vpop.f32.mrb[108].mxu0 }
 0x39b   : > { %v6452_v32 = vadd.f32 %v2446_v6, %v6399_v52  ;;  %v2448_v35 = vpop.f32.mrb[109].mxu0  ;;  %v6454_v45 = vpack.c.bf16 %v2576_v58, %v2575_v26 }
 0x39c   : > { %v4967_v63 = vpop.eup %4966  ;;  %4972 = vpow2.f32 %v2521_v39  ;;  %v4602_v1 = vadd.f32 %v2448_v35, %v6401_v54  ;;  %v2450_v51 = vpop.f32.mrb[110].mxu0  ;;  %v4918_v39 = vld [vmem:[#allocation7 + $0x88] ss:$16 sps:$4 sm:$0xff]  }
 0x39d   : > { %3758 = vst [vmem:[%s6405_s5 + $0x60] sm:$0xff] %v6452_v32  ;;  %v6461_v59 = vadd.f32 %v2450_v51, %v6399_v52  ;;  %v2452_v40 = vpop.f32.mrb[111].mxu0  ;;  %2824 = vmatmul.mubr.bf16.vlgmr.msra.gmra.mrb[96].mxu1 %v6454_v45  ;;  %v2561_v7 = vmul.f32 %v4967_v63, %v2545_v48  ;;  %v4923_v48 = vld [vmem:[#allocation7 + $0xac] ss:$16 sps:$4 sm:$0xff]  }
 0x39e   : > { %v4969_v21 = vpop.eup %4968  ;;  %v2501_v22 = vmul.f32 0.5, %v4602_v1  ;;  %3759 = vst [vmem:[%s6405_s5 + $0x68] sm:$0xff] %v4602_v1  ;;  %v4604_v8 = vadd.f32 %v2452_v40, %v6401_v54  ;;  %2905 = vmatpush1.bf16.msra.mxu1 %v4906_v47  ;;  %2833 = vmatprep.mubr.bf16.mxu1 %v6947_v55  ;;  %v2550_v63 = vld [vmem:[%s6429_s26 + $0x38] sm:$0xff] }
 0x39f   : > { %3760 = vst [vmem:[%s6405_s5 + $0x70] sm:$0xff] %v6461_v59  ;;  %2906 = vmatprep.subr.bf16.mxu1 %v4911_v49  ;;  %v2562_v10 = vmul.f32 %v4969_v21, %v2546_v31  ;;  %v2577_v23 = vadd.f32 %v6414_v41, %v2561_v7 }
 0x3a0   : > { %v2523_v24 = vmul.f32 1.442695, %v2501_v22  ;;  %v2502_v56 = vmul.f32 0.5, %v4604_v8  ;;  %3761 = vst [vmem:[%s6405_s5 + $0x78] sm:$0xff] %v4604_v8  ;;  %v4926_v8 = vld [vmem:[#allocation7 + $0xcc] ss:$16 sps:$4 sm:$0xff]  }
 0x3a1   : > { %v2578_v25 = vadd.f32 %v6420_v42, %v2562_v10 }
 0x3a2   : > { %4974 = vpow2.f32 %v2523_v24  ;;  %v2525_v37 = vmul.f32 1.442695, %v2502_v56  ;;  %v2456_v4 = vpop.f32.mrb[112].mxu0  ;;  %2907 = vmatpush1.bf16.msra.mxu1 %v4909_v9  ;;  %v2551_v56 = vld [vmem:[%s6429_s26 + $0x40] sm:$0xff] }
 0x3a3   : > { %v6474_v41 = vadd.f32 %v2456_v4, %v6399_v52  ;;  %v2458_v46 = vpop.f32.mrb[113].mxu0  ;;  %v6476_v33 = vpack.c.bf16 %v2578_v25, %v2577_v23  ;;  %2908 = vmatprep.subr.bf16.mxu1 %v4914_v2 }
 0x3a4   : > { %v4971_v12 = vpop.eup %4970  ;;  %4976 = vpow2.f32 %v2525_v37  ;;  %v4606_v42 = vadd.f32 %v2458_v46, %v6401_v54  ;;  %v2460_v62 = vpop.f32.mrb[114].mxu0  ;;  %v4929_v37 = vld [vmem:[#allocation7 + $0xec] ss:$16 sps:$4 sm:$0xff]  }
 0x3a5   : > { %3762 = vst [vmem:[%s6405_s5 + $0x80] sm:$0xff] %v6474_v41  ;;  %v6483_v15 = vadd.f32 %v2460_v62, %v6399_v52  ;;  %v2462_v50 = vpop.f32.mrb[115].mxu0  ;;  %2834 = vmatmul.mubr.bf16.gmra.mrb[100].mxu1 %v6476_v33  ;;  %v2563_v38 = vmul.f32 %v4971_v12, %v2547_v61  ;;  %v2552_v61 = vld [vmem:[%s6429_s26 + $0x48] sm:$0xff] }
 0x3a6   : > { %v4973_v44 = vpop.eup %4972  ;;  %v2503_v18 = vmul.f32 0.5, %v4606_v42  ;;  %3763 = vst [vmem:[%s6405_s5 + $0x88] sm:$0xff] %v4606_v42  ;;  %v4608_v29 = vadd.f32 %v2462_v50, %v6401_v54  ;;  %2843 = vmatprep.mubr.bf16.mxu1 %v6947_v55  ;;  %2909 = vmatpush1.bf16.msra.mxu1 %v4912_v5 }
 0x3a7   : > { %3764 = vst [vmem:[%s6405_s5 + $0x90] sm:$0xff] %v6483_v15  ;;  %v2564_v20 = vmul.f32 %v4973_v44, %v2548_v14  ;;  %v2579_v57 = vadd.f32 %v6436_v60, %v2563_v38  ;;  %2910 = vmatprep.subr.bf16.mxu1 %v4917_v11 }
 0x3a8   : > { %v2527_v26 = vmul.f32 1.442695, %v2503_v18  ;;  %v2504_v13 = vmul.f32 0.5, %v4608_v29  ;;  %3765 = vst [vmem:[%s6405_s5 + $0x98] sm:$0xff] %v4608_v29 }
 0x3a9   : > { %v2580_v53 = vadd.f32 %v6443_v30, %v2564_v20  ;;  %v2553_v20 = vld [vmem:[%s6429_s26 + $0x50] sm:$0xff] }
 0x3aa   : > { %4978 = vpow2.f32 %v2527_v26  ;;  %v2529_v0 = vmul.f32 1.442695, %v2504_v13  ;;  %v2466_v58 = vpop.f32.mrb[116].mxu0  ;;  %2911 = vmatpush1.bf16.msra.mxu1 %v4915_v19 }
 0x3ab   : > { %v6496_v6 = vadd.f32 %v2466_v58, %v6399_v52  ;;  %v2468_v60 = vpop.f32.mrb[117].mxu0  ;;  %v6498_v47 = vpack.c.bf16 %v2580_v53, %v2579_v57  ;;  %2912 = vmatprep.subr.bf16.mxu1 %v4920_v28 }
 0x3ac   : > { %v4975_v35 = vpop.eup %4974  ;;  %4980 = vpow2.f32 %v2529_v0  ;;  %v4610_v30 = vadd.f32 %v2468_v60, %v6401_v54  ;;  %v2470_v49 = vpop.f32.mrb[118].mxu0  ;;  %v2554_v0 = vld [vmem:[%s6429_s26 + $0x58] sm:$0xff] }
 0x3ad   : > { %3766 = vst [vmem:[%s6405_s5 + $0xa0] sm:$0xff] %v6496_v6  ;;  %v6505_v1 = vadd.f32 %v2470_v49, %v6399_v52  ;;  %v2472_v51 = vpop.f32.mrb[119].mxu0  ;;  %2844 = vmatmul.mubr.bf16.gmra.mrb[104].mxu1 %v6498_v47  ;;  %v2565_v31 = vmul.f32 %v4975_v35, %v2549_v3 }
 0x3ae   : > { %v4977_v43 = vpop.eup %4976  ;;  %v2505_v40 = vmul.f32 0.5, %v4610_v30  ;;  %3767 = vst [vmem:[%s6405_s5 + $0xa8] sm:$0xff] %v4610_v30  ;;  %v4612_v7 = vadd.f32 %v2472_v51, %v6401_v54  ;;  %2853 = vmatprep.mubr.bf16.mxu1 %v6947_v55  ;;  %2913 = vmatpush1.bf16.msra.mxu1 %v4918_v39 }
 0x3af   : > { %3768 = vst [vmem:[%s6405_s5 + $0xb0] sm:$0xff] %v6505_v1  ;;  %v2566_v21 = vmul.f32 %v4977_v43, %v2550_v63  ;;  %v2581_v22 = vadd.f32 %v6452_v32, %v2565_v31  ;;  %2914 = vmatprep.subr.bf16.mxu1 %v4923_v48  ;;  %v2555_v31 = vld [vmem:[%s6429_s26 + $0x60] sm:$0xff] }
 0x3b0   : > { %v2531_v9 = vmul.f32 1.442695, %v2505_v40  ;;  %v2506_v10 = vmul.f32 0.5, %v4612_v7  ;;  %3769 = vst [vmem:[%s6405_s5 + $0xb8] sm:$0xff] %v4612_v7 }
 0x3b1   : > { %v2582_v23 = vadd.f32 %v6461_v59, %v2566_v21 }
 0x3b2   : > { %4982 = vpow2.f32 %v2531_v9  ;;  %v2533_v2 = vmul.f32 1.442695, %v2506_v10  ;;  %v2476_v24 = vpop.f32.mrb[120].mxu0  ;;  %2915 = vmatpush1.bf16.msra.mxu1 %v4921_v17  ;;  %v2558_v10 = vld [vmem:[%s6429_s26 + $0x78] sm:$0xff] }
 0x3b3   : > { %v6518_v25 = vadd.f32 %v2476_v24, %v6399_v52  ;;  %v2478_v27 = vpop.f32.mrb[121].mxu0  ;;  %v6520_v32 = vpack.c.bf16 %v2582_v23, %v2581_v22  ;;  %2916 = vmatprep.subr.bf16.mxu1 %v4926_v8  ;;  %v2557_v8 = vld [vmem:[%s6429_s26 + $0x70] sm:$0xff] }
 0x3b4   : > { %v4979_v4 = vpop.eup %4978  ;;  %4984 = vpow2.f32 %v2533_v2  ;;  %v4614_v59 = vadd.f32 %v2478_v27, %v6401_v54  ;;  %v2480_v5 = vpop.f32.mrb[122].mxu0 }
 0x3b5   : > { %3770 = vst [vmem:[%s6405_s5 + $0xc0] sm:$0xff] %v6518_v25  ;;  %v4615_v46 = vadd.f32 %v2480_v5, %v6399_v52  ;;  %v2482_v11 = vpop.f32.mrb[123].mxu0  ;;  %2854 = vmatmul.mubr.bf16.gmra.mrb[108].mxu1 %v6520_v32  ;;  %v2567_v12 = vmul.f32 %v4979_v4, %v2551_v56  ;;  %v4943_v4 = vld [vmem:[#allocation8 + $0x30] sm:$0xff]   ;;  %v4948_v5 = vld [vmem:[#allocation8 + $0xc8] sm:$0xff]  }
 0x3b6   : > { %v4981_v42 = vpop.eup %4980  ;;  %v2507_v62 = vmul.f32 0.5, %v4614_v59  ;;  %3771 = vst [vmem:[%s6405_s5 + $0xc8] sm:$0xff] %v4614_v59  ;;  %v4616_v14 = vadd.f32 %v2482_v11, %v6401_v54  ;;  %2863 = vmatprep.mubr.bf16.mxu1 %v6947_v55  ;;  %2917 = vmatpush1.bf16.msra.mxu1 %v4924_v34  ;;  %v4944_v59 = vld [vmem:[#allocation8 + $0x78] sm:$0xff]  }
 0x3b7   : > { %3772 = vst [vmem:[%s6405_s5 + $0xd0] sm:$0xff] %v4615_v46  ;;  %v2568_v50 = vmul.f32 %v4981_v42, %v2552_v61  ;;  %v2583_v38 = vadd.f32 %v6474_v41, %v2567_v12  ;;  %2918 = vmatprep.subr.bf16.mxu1 %v4929_v37  ;;  %v4942_v37 = vld [vmem:[#allocation8 + $0x70] sm:$0xff]   ;;  %v4949_v61 = vld [vmem:[#allocation8 + $0x88] sm:$0xff]   ;;  %v4952_v11 = vld [vmem:[#allocation8 + $0xd8] sm:$0xff]  }
 0x3b8   : > { %v2535_v16 = vmul.f32 1.442695, %v2507_v62  ;;  %v2508_v44 = vmul.f32 0.5, %v4616_v14  ;;  %3773 = vst [vmem:[%s6405_s5 + $0xd8] sm:$0xff] %v4616_v14  ;;  %v4953_v12 = vld [vmem:[#allocation8 + $0x98] sm:$0xff]   ;;  %v4954_v42 = vld [vmem:[#allocation8 + $0xe0] sm:$0xff]  }
 0x3b9   : > { %v2584_v18 = vadd.f32 %v6483_v15, %v2568_v50  ;;  %v4955_v62 = vld [vmem:[#allocation8 + $0xa0] sm:$0xff]   ;;  %v4956_v14 = vld [vmem:[#allocation8 + $0xe8] sm:$0xff]   ;;  %v4958_v50 = vld [vmem:[#allocation8 + $0xf0] sm:$0xff]  }
 0x3ba   : > { %4986 = vpow2.f32 %v2535_v16  ;;  %v2537_v29 = vmul.f32 1.442695, %v2508_v44  ;;  %v2486_v19 = vpop.f32.mrb[124].mxu0  ;;  %2919 = vmatpush1.bf16.msra.mxu1 %v4927_v36  ;;  %v4957_v36 = vld [vmem:[#allocation8 + $0xa8] sm:$0xff]   ;;  %v4961_v16 = vld [vmem:[#allocation8 + $0xb8] sm:$0xff]  }
 0x3bb   : > { %v4617_v57 = vadd.f32 %v2486_v19, %v6399_v52  ;;  %v2488_v28 = vpop.f32.mrb[125].mxu0  ;;  %v6537_v26 = vpack.c.bf16 %v2584_v18, %v2583_v38  ;;  %v4959_v38 = vld [vmem:[#allocation8 + $0xb0] sm:$0xff]   ;;  %v6948_v18 = vld [vmem:[#allocation43_spill] sm:$0xff] }
 0x3bc   : > { %v4983_v41 = vpop.eup %4982  ;;  %4988 = vpow2.f32 %v2537_v29  ;;  %v4618_v13 = vadd.f32 %v2488_v28, %v6401_v54  ;;  %v2490_v53 = vpop.f32.mrb[126].mxu0 }
 0x3bd   : > { %3774 = vst [vmem:[%s6405_s5 + $0xe0] sm:$0xff] %v4617_v57  ;;  %v4619_v15 = vadd.f32 %v2490_v53, %v6399_v52  ;;  %v2492_v58 = vpop.f32.mrb[127].mxu0  ;;  %2864 = vmatmul.mubr.bf16.gmra.mrb[112].mxu1 %v6537_v26  ;;  %v2569_v3 = vmul.f32 %v4983_v41, %v2553_v20  ;;  %v6949_v20 = vld [vmem:[#allocation45_spill] sm:$0xff] }
 0x3be   : > { %v4985_v39 = vpop.eup %4984  ;;  %v2509_v60 = vmul.f32 0.5, %v4618_v13  ;;  %3775 = vst [vmem:[%s6405_s5 + $0xe8] sm:$0xff] %v4618_v13  ;;  %v4620_v48 = vadd.f32 %v2492_v58, %v6401_v54  ;;  %2873 = vmatprep.mubr.bf16.mxu1 %v6947_v55  ;;  %v2556_v54 = vld [vmem:[%s6429_s26 + $0x68] sm:$0xff] }
 0x3bf   : > { %3776 = vst [vmem:[%s6405_s5 + $0xf0] sm:$0xff] %v4619_v15  ;;  %v2570_v35 = vmul.f32 %v4985_v39, %v2554_v0  ;;  %v2585_v30 = vadd.f32 %v6496_v6, %v2569_v3  ;;  %v6951_v53 = vld [vmem:[#allocation49_spill] sm:$0xff] }
 0x3c0   : > { %v2539_v49 = vmul.f32 1.442695, %v2509_v60  ;;  %v2510_v63 = vmul.f32 0.5, %v4620_v48  ;;  %3777 = vst [vmem:[%s6405_s5 + $0xf8] sm:$0xff] %v4620_v48 }
 0x3c1   : > { %v2586_v52 = vadd.f32 %v6505_v1, %v2570_v35 }
 0x3c2   : > { %4990 = vpow2.f32 %v2539_v49  ;;  %v2541_v51 = vmul.f32 1.442695, %v2510_v63 }
 0x3c3   : > { %v2596_v43 = vpack.c.bf16 %v2586_v52, %v2585_v30  ;;  %v6952_v30 = vld [vmem:[#allocation51_spill] sm:$0xff]  ;;  %v6953_v52 = vld [vmem:[#allocation53_spill] sm:$0xff] }
 0x3c4   : > { %v4987_v40 = vpop.eup %4986  ;;  %4992 = vpow2.f32 %v2541_v51 }
 0x3c5   : > { %2874 = vmatmul.mubr.bf16.gmra.mrb[116].mxu1 %v2596_v43  ;;  %v2571_v7 = vmul.f32 %v4987_v40, %v2555_v31 }
 0x3c6   : > { %v4989_v17 = vpop.eup %4988  ;;  %2883 = vmatprep.mubr.bf16.mxu1 %v6947_v55 }
 0x3c7   : > { %v2572_v6 = vmul.f32 %v4989_v17, %v2556_v54  ;;  %v2587_v21 = vadd.f32 %v6518_v25, %v2571_v7  ;;  %v4941_v25 = vld [vmem:[#allocation8 + $0x28] sm:$0xff]  }
 0x3c8   : > { %4344 = vmatpush3.bf16.msra.mxu0 %v4941_v25  ;;  %v6955_v7 = vld [vmem:[#allocation57_spill] sm:$0xff]  ;;  %v6958_v25 = vld [vmem:[#allocation63_spill] sm:$0xff] }
 0x3c9   : > { %v2588_v22 = vadd.f32 %v4615_v46, %v2572_v6  ;;  %4345 = vmatprep.subr.bf16.mxu0 %v4942_v37  ;;  %v4951_v46 = vld [vmem:[#allocation8 + $0x90] sm:$0xff]  }
 0x3cb   : > { %v2597_v9 = vpack.c.bf16 %v2588_v22, %v2587_v21 }
 0x3cc   : > { %v4991_v1 = vpop.eup %4990  ;;  %4346 = vmatpush3.bf16.msra.mxu0 %v4943_v4 }
 0x3cd   : > { %2884 = vmatmul.mubr.bf16.gmra.mrb[120].mxu1 %v2597_v9  ;;  %v2573_v23 = vmul.f32 %v4991_v1, %v2557_v8  ;;  %4347 = vmatprep.subr.bf16.mxu0 %v4944_v59  ;;  %v6959_v59 = vld [vmem:[#allocation65_spill] sm:$0xff] }
 0x3ce   : > { %v4993_v2 = vpop.eup %4992  ;;  %2893 = vmatprep.mubr.bf16.mxu1 %v6947_v55 }
 0x3cf   : > { %v2574_v24 = vmul.f32 %v4993_v2, %v2558_v10  ;;  %v2589_v56 = vadd.f32 %v4617_v57, %v2573_v23  ;;  %v6956_v23 = vld [vmem:[#allocation59_spill] sm:$0xff] }
 0x3d1   : > { %v2590_v34 = vadd.f32 %v4619_v15, %v2574_v24 }
 0x3d3   : > { %v2598_v27 = vpack.c.bf16 %v2590_v34, %v2589_v56  ;;  %v6957_v56 = vld [vmem:[#allocation61_spill] sm:$0xff] }
 0x3d5   : > { %2894 = vmatmul.mubr.bf16.gmra.mrb[124].mxu1 %v2598_v27 }
 0x3d6   : > { %2936 = vmatprep.mubr.bf16.mxu1 %v6947_v55 }
 0x3dd   : > { %2937 = vmatmul.mubr.bf16.vlgmr.msra.gmra.mrb[128].mxu1 %v6454_v45  ;;  %v4945_v45 = vld [vmem:[#allocation8 + $0x38] sm:$0xff]  }
 0x3de   : > { %2946 = vmatprep.mubr.bf16.mxu1 %v6947_v55  ;;  %4348 = vmatpush3.bf16.msra.mxu0 %v4945_v45 }
 0x3e5   : > { %2947 = vmatmul.mubr.bf16.gmra.mrb[132].mxu1 %v6476_v33  ;;  %v4946_v33 = vld [vmem:[#allocation8 + $0xc0] sm:$0xff]  }
 0x3e6   : > { %2956 = vmatprep.mubr.bf16.mxu1 %v6947_v55  ;;  %4397 = vmatprep.subr.bf16.mxu1 %v4946_v33 }
 0x3ed   : > { %2957 = vmatmul.mubr.bf16.gmra.mrb[136].mxu1 %v6498_v47  ;;  %v4947_v47 = vld [vmem:[#allocation8 + $0x80] sm:$0xff]  }
 0x3ee   : > { %2966 = vmatprep.mubr.bf16.mxu1 %v6947_v55  ;;  %4398 = vmatpush3.bf16.msra.mxu1 %v4947_v47 }
 0x3ef   : > { %4399 = vmatprep.subr.bf16.mxu1 %v4948_v5 }
 0x3f2   : > { %4400 = vmatpush3.bf16.msra.mxu1 %v4949_v61 }
 0x3f5   : > { %2967 = vmatmul.mubr.bf16.gmra.mrb[140].mxu1 %v6520_v32  ;;  %v4950_v32 = vld [vmem:[#allocation8 + $0xd0] sm:$0xff]  }
 0x3f6   : > { %2976 = vmatprep.mubr.bf16.mxu1 %v6947_v55  ;;  %4401 = vmatprep.subr.bf16.mxu1 %v4950_v32 }
 0x3f7   : > { %4402 = vmatpush3.bf16.msra.mxu1 %v4951_v46 }
 0x3f8   : > { %4403 = vmatprep.subr.bf16.mxu1 %v4952_v11 }
 0x3fb   : > { %4404 = vmatpush3.bf16.msra.mxu1 %v4953_v12  ;;  %v6960_v12 = vld [vmem:[#allocation67_spill] sm:$0xff] }
 0x3fc   : > { %4405 = vmatprep.subr.bf16.mxu1 %v4954_v42 }
 0x3fd   : > { %2977 = vmatmul.mubr.bf16.gmra.mrb[144].mxu1 %v6537_v26  ;;  %v6950_v26 = vld [vmem:[#allocation47_spill] sm:$0xff] }
 0x3fe   : > { %2986 = vmatprep.mubr.bf16.mxu1 %v6947_v55 }
 0x3ff   : > { %4406 = vmatpush3.bf16.msra.mxu1 %v4955_v62 }
 0x400   : > { %4407 = vmatprep.subr.bf16.mxu1 %v4956_v14  ;;  %v6961_v14 = vld [vmem:[#allocation69_spill] sm:$0xff] }
 0x403   : > { %4408 = vmatpush3.bf16.msra.mxu1 %v4957_v36 }
 0x404   : > { %4409 = vmatprep.subr.bf16.mxu1 %v4958_v50 }
 0x405   : > { %2987 = vmatmul.mubr.bf16.gmra.mrb[148].mxu1 %v2596_v43  ;;  %v6954_v43 = vld [vmem:[#allocation55_spill] sm:$0xff] }
 0x406   : > { %2996 = vmatprep.mubr.bf16.mxu1 %v6947_v55 }
 0x407   : > { %4410 = vmatpush3.bf16.msra.mxu1 %v4959_v38  ;;  %v6962_v38 = vld [vmem:[#allocation71_spill] sm:$0xff] }
 0x40d   : > { %2997 = vmatmul.mubr.bf16.gmra.mrb[152].mxu1 %v2597_v9 }
 0x40e   : > { %3006 = vmatprep.mubr.bf16.mxu1 %v6947_v55  ;;  %v4960_v55 = vld [vmem:[#allocation8 + $0xf8] sm:$0xff]  }
 0x40f   : > { %4411 = vmatprep.subr.bf16.mxu1 %v4960_v55 }
 0x410   : > { %4412 = vmatpush3.bf16.msra.mxu1 %v4961_v16 }
 0x415   : > { %3007 = vmatmul.mubr.bf16.gmra.mrb[156].mxu1 %v2598_v27 }
 0x470   : > { %v2825_v44 = vpop.f32.mrb[96].mxu1 }
 0x471   : > { %v2826_v29 = vadd.f32 %v2825_v44, %v6948_v18  ;;  %v2827_v19 = vpop.f32.mrb[97].mxu1  ;;  %v6963_v44 = vld [vmem:[#allocation73_spill] sm:$0xff] }
 0x472   : > { %v2828_v57 = vadd.f32 %v2827_v19, %v6949_v20  ;;  %v2829_v28 = vpop.f32.mrb[98].mxu1 }
 0x473   : > { %v2830_v41 = vadd.f32 %v2829_v28, %v6950_v26  ;;  %v2831_v13 = vpop.f32.mrb[99].mxu1  ;;  %v3017_v15 = vmax.f32 %v2826_v29, 0.0 }
 0x474   : > { %v2832_v0 = vadd.f32 %v2831_v13, %v6951_v53  ;;  %v3018_v3 = vmax.f32 %v2828_v57, 0.0  ;;  %v6964_v13 = vld [vmem:[#allocation75_spill] sm:$0xff] }
 0x475   : > { %v3021_v58 = vmax.f32 %v2830_v41, 0.0 }
 0x476   : > { %v3022_v39 = vmax.f32 %v2832_v0, 0.0 }
 0x477   : > { %v3081_v60 = vpack.c.bf16 %v3021_v58, %v3017_v15  ;;  %v6965_v15 = vld [vmem:[#allocation77_spill] sm:$0xff] }
 0x478   : > { %v3082_v48 = vpack.c.bf16 %v3022_v39, %v3018_v3  ;;  %v2835_v35 = vpop.f32.mrb[100].mxu1  ;;  %v6966_v39 = vld [vmem:[#allocation79_spill] sm:$0xff] }
 0x479   : > { %v2836_v49 = vadd.f32 %v2835_v35, %v6952_v30  ;;  %v2837_v63 = vpop.f32.mrb[101].mxu1  ;;  %v6967_v35 = vld [vmem:[#allocation81_spill] sm:$0xff] }
 0x47a   : > { %v2838_v51 = vadd.f32 %v2837_v63, %v6953_v52  ;;  %v2839_v31 = vpop.f32.mrb[102].mxu1  ;;  %3408 = vmatprep.mubr.bf16.mxu0 %v3082_v48 }
 0x47b   : > { %v2840_v40 = vadd.f32 %v2839_v31, %v6954_v43  ;;  %v2841_v54 = vpop.f32.mrb[103].mxu1  ;;  %3409 = vmatmul.mubr.bf16.vlgmr.msra.gmra.mrb[128].mxu0 %v3081_v60  ;;  %v3025_v6 = vmax.f32 %v2836_v49, 0.0 }
 0x47c   : > { %v2842_v17 = vadd.f32 %v2841_v54, %v6955_v7  ;;  %v3026_v22 = vmax.f32 %v2838_v51, 0.0  ;;  %v6968_v54 = vld [vmem:[#allocation83_spill] sm:$0xff] }
 0x47d   : > { %v3029_v21 = vmax.f32 %v2840_v40, 0.0 }
 0x47e   : > { %v3030_v8 = vmax.f32 %v2842_v17, 0.0 }
 0x47f   : > { %v3085_v9 = vpack.c.bf16 %v3029_v21, %v3025_v6  ;;  %v6969_v6 = vld [vmem:[#allocation85_spill] sm:$0xff] }
 0x480   : > { %v3086_v1 = vpack.c.bf16 %v3030_v8, %v3026_v22  ;;  %v2845_v10 = vpop.f32.mrb[104].mxu1  ;;  %v6970_v8 = vld [vmem:[#allocation87_spill] sm:$0xff] }
 0x481   : > { %v2846_v2 = vadd.f32 %v2845_v10, %v6956_v23  ;;  %v2847_v24 = vpop.f32.mrb[105].mxu1  ;;  %v6971_v10 = vld [vmem:[#allocation89_spill] sm:$0xff] }
 0x482   : > { %v2848_v34 = vadd.f32 %v2847_v24, %v6957_v56  ;;  %v2849_v27 = vpop.f32.mrb[106].mxu1  ;;  %3416 = vmatprep.mubr.bf16.mxu0 %v3086_v1 }
 0x483   : > { %v2850_v37 = vadd.f32 %v2849_v27, %v6958_v25  ;;  %v2851_v4 = vpop.f32.mrb[107].mxu1  ;;  %3417 = vmatmul.mubr.bf16.gmra.mrb[132].mxu0 %v3085_v9  ;;  %v3033_v33 = vmax.f32 %v2846_v2, 0.0 }
 0x484   : > { %v2852_v45 = vadd.f32 %v2851_v4, %v6959_v59  ;;  %v3034_v5 = vmax.f32 %v2848_v34, 0.0  ;;  %v6972_v4 = vld [vmem:[#allocation91_spill] sm:$0xff] }
 0x485   : > { %v3037_v47 = vmax.f32 %v2850_v37, 0.0 }
 0x486   : > { %v3038_v61 = vmax.f32 %v2852_v45, 0.0 }
 0x487   : > { %v3089_v32 = vpack.c.bf16 %v3037_v47, %v3033_v33  ;;  %v6973_v33 = vld [vmem:[#allocation93_spill] sm:$0xff] }
 0x488   : > { %v3090_v46 = vpack.c.bf16 %v3038_v61, %v3034_v5  ;;  %v2855_v11 = vpop.f32.mrb[108].mxu1  ;;  %v6974_v61 = vld [vmem:[#allocation95_spill] sm:$0xff] }
 0x489   : > { %v2856_v42 = vadd.f32 %v2855_v11, %v6960_v12  ;;  %v2857_v62 = vpop.f32.mrb[109].mxu1  ;;  %v6975_v11 = vld [vmem:[#allocation97_spill] sm:$0xff] }
 0x48a   : > { %v2858_v36 = vadd.f32 %v2857_v62, %v6961_v14  ;;  %v2859_v50 = vpop.f32.mrb[110].mxu1  ;;  %3424 = vmatprep.mubr.bf16.mxu0 %v3090_v46 }
 0x48b   : > { %v2860_v55 = vadd.f32 %v2859_v50, %v6962_v38  ;;  %v2861_v16 = vpop.f32.mrb[111].mxu1  ;;  %3425 = vmatmul.mubr.bf16.gmra.mrb[136].mxu0 %v3089_v32  ;;  %v3041_v29 = vmax.f32 %v2856_v42, 0.0 }
 0x48c   : > { %v2862_v18 = vadd.f32 %v2861_v16, %v6963_v44  ;;  %v3042_v20 = vmax.f32 %v2858_v36, 0.0  ;;  %v6976_v16 = vld [vmem:[#allocation99_spill] sm:$0xff] }
 0x48d   : > { %v3045_v19 = vmax.f32 %v2860_v55, 0.0 }
 0x48e   : > { %v3046_v57 = vmax.f32 %v2862_v18, 0.0 }
 0x48f   : > { %v3093_v28 = vpack.c.bf16 %v3045_v19, %v3041_v29  ;;  %v6977_v29 = vld [vmem:[#allocation101_spill] sm:$0xff] }
 0x490   : > { %v3094_v26 = vpack.c.bf16 %v3046_v57, %v3042_v20  ;;  %v2865_v41 = vpop.f32.mrb[112].mxu1  ;;  %v6978_v57 = vld [vmem:[#allocation103_spill] sm:$0xff] }
 0x491   : > { %v2866_v53 = vadd.f32 %v2865_v41, %v6964_v13  ;;  %v2867_v0 = vpop.f32.mrb[113].mxu1  ;;  %v6979_v41 = vld [vmem:[#allocation105_spill] sm:$0xff] }
 0x492   : > { %v2868_v58 = vadd.f32 %v2867_v0, %v6965_v15  ;;  %v2869_v3 = vpop.f32.mrb[114].mxu1  ;;  %3432 = vmatprep.mubr.bf16.mxu0 %v3094_v26 }
 0x493   : > { %v2870_v60 = vadd.f32 %v2869_v3, %v6966_v39  ;;  %v2871_v48 = vpop.f32.mrb[115].mxu1  ;;  %3433 = vmatmul.mubr.bf16.gmra.mrb[140].mxu0 %v3093_v28  ;;  %v3049_v49 = vmax.f32 %v2866_v53, 0.0 }
 0x494   : > { %v2872_v30 = vadd.f32 %v2871_v48, %v6967_v35  ;;  %v3050_v52 = vmax.f32 %v2868_v58, 0.0  ;;  %v6980_v48 = vld [vmem:[#allocation44_spill] sm:$0xff] }
 0x495   : > { %v3053_v63 = vmax.f32 %v2870_v60, 0.0 }
 0x496   : > { %v3054_v51 = vmax.f32 %v2872_v30, 0.0 }
 0x497   : > { %v3097_v31 = vpack.c.bf16 %v3053_v63, %v3049_v49  ;;  %v6981_v49 = vld [vmem:[#allocation46_spill] sm:$0xff] }
 0x498   : > { %v3098_v43 = vpack.c.bf16 %v3054_v51, %v3050_v52  ;;  %v2875_v40 = vpop.f32.mrb[116].mxu1  ;;  %v6982_v51 = vld [vmem:[#allocation48_spill] sm:$0xff] }
 0x499   : > { %v2876_v7 = vadd.f32 %v2875_v40, %v6968_v54  ;;  %v2877_v17 = vpop.f32.mrb[117].mxu1  ;;  %v6983_v40 = vld [vmem:[#allocation50_spill] sm:$0xff] }
 0x49a   : > { %v2878_v21 = vadd.f32 %v2877_v17, %v6969_v6  ;;  %v2879_v22 = vpop.f32.mrb[118].mxu1  ;;  %3440 = vmatprep.mubr.bf16.mxu0 %v3098_v43 }
 0x49b   : > { %v2880_v9 = vadd.f32 %v2879_v22, %v6970_v8  ;;  %v2881_v1 = vpop.f32.mrb[119].mxu1  ;;  %3441 = vmatmul.mubr.bf16.gmra.mrb[144].mxu0 %v3097_v31  ;;  %v3057_v2 = vmax.f32 %v2876_v7, 0.0 }
 0x49c   : > { %v2882_v23 = vadd.f32 %v2881_v1, %v6971_v10  ;;  %v3058_v56 = vmax.f32 %v2878_v21, 0.0  ;;  %v6984_v1 = vld [vmem:[#allocation52_spill] sm:$0xff] }
 0x49d   : > { %v3061_v24 = vmax.f32 %v2880_v9, 0.0 }
 0x49e   : > { %v3062_v34 = vmax.f32 %v2882_v23, 0.0 }
 0x49f   : > { %v3101_v27 = vpack.c.bf16 %v3061_v24, %v3057_v2  ;;  %v6985_v2 = vld [vmem:[#allocation54_spill] sm:$0xff] }
 0x4a0   : > { %v3102_v25 = vpack.c.bf16 %v3062_v34, %v3058_v56  ;;  %v2885_v37 = vpop.f32.mrb[120].mxu1  ;;  %v6986_v34 = vld [vmem:[#allocation56_spill] sm:$0xff] }
 0x4a1   : > { %v2886_v59 = vadd.f32 %v2885_v37, %v6972_v4  ;;  %v2887_v45 = vpop.f32.mrb[121].mxu1  ;;  %v6987_v37 = vld [vmem:[#allocation58_spill] sm:$0xff] }
 0x4a2   : > { %v2888_v47 = vadd.f32 %v2887_v45, %v6973_v33  ;;  %v2889_v5 = vpop.f32.mrb[122].mxu1  ;;  %3448 = vmatprep.mubr.bf16.mxu0 %v3102_v25 }
 0x4a3   : > { %v2890_v32 = vadd.f32 %v2889_v5, %v6974_v61  ;;  %v2891_v46 = vpop.f32.mrb[123].mxu1  ;;  %3449 = vmatmul.mubr.bf16.gmra.mrb[148].mxu0 %v3101_v27  ;;  %v3065_v42 = vmax.f32 %v2886_v59, 0.0 }
 0x4a4   : > { %v2892_v12 = vadd.f32 %v2891_v46, %v6975_v11  ;;  %v3066_v14 = vmax.f32 %v2888_v47, 0.0  ;;  %v6988_v46 = vld [vmem:[#allocation60_spill] sm:$0xff] }
 0x4a5   : > { %v3069_v62 = vmax.f32 %v2890_v32, 0.0 }
 0x4a6   : > { %v3070_v36 = vmax.f32 %v2892_v12, 0.0 }
 0x4a7   : > { %v3105_v50 = vpack.c.bf16 %v3069_v62, %v3065_v42  ;;  %v6989_v42 = vld [vmem:[#allocation62_spill] sm:$0xff] }
 0x4a8   : > { %v3106_v38 = vpack.c.bf16 %v3070_v36, %v3066_v14  ;;  %v2895_v55 = vpop.f32.mrb[124].mxu1  ;;  %v6990_v36 = vld [vmem:[#allocation64_spill] sm:$0xff] }
 0x4a9   : > { %v2896_v44 = vadd.f32 %v2895_v55, %v6976_v16  ;;  %v2897_v18 = vpop.f32.mrb[125].mxu1  ;;  %v6991_v55 = vld [vmem:[#allocation66_spill] sm:$0xff] }
 0x4aa   : > { %v2898_v19 = vadd.f32 %v2897_v18, %v6977_v29  ;;  %v2899_v20 = vpop.f32.mrb[126].mxu1  ;;  %3456 = vmatprep.mubr.bf16.mxu0 %v3106_v38 }
 0x4ab   : > { %v2900_v28 = vadd.f32 %v2899_v20, %v6978_v57  ;;  %v2901_v26 = vpop.f32.mrb[127].mxu1  ;;  %3457 = vmatmul.mubr.bf16.gmra.mrb[152].mxu0 %v3105_v50  ;;  %v3073_v53 = vmax.f32 %v2896_v44, 0.0 }
 0x4ac   : > { %v2902_v13 = vadd.f32 %v2901_v26, %v6979_v41  ;;  %v3074_v15 = vmax.f32 %v2898_v19, 0.0  ;;  %v6992_v26 = vld [vmem:[#allocation68_spill] sm:$0xff] }
 0x4ad   : > { %v3077_v0 = vmax.f32 %v2900_v28, 0.0 }
 0x4ae   : > { %v3078_v58 = vmax.f32 %v2902_v13, 0.0 }
 0x4af   : > { %v3109_v3 = vpack.c.bf16 %v3077_v0, %v3073_v53  ;;  %v6993_v53 = vld [vmem:[#allocation70_spill] sm:$0xff] }
 0x4b0   : > { %v3110_v39 = vpack.c.bf16 %v3078_v58, %v3074_v15  ;;  %v2938_v60 = vpop.f32.mrb[128].mxu1  ;;  %v6994_v58 = vld [vmem:[#allocation72_spill] sm:$0xff] }
 0x4b1   : > { %v2939_v35 = vadd.f32 %v2938_v60, %v6980_v48  ;;  %v2940_v30 = vpop.f32.mrb[129].mxu1  ;;  %v6995_v60 = vld [vmem:[#allocation74_spill] sm:$0xff] }
 0x4b2   : > { %v2941_v63 = vadd.f32 %v2940_v30, %v6981_v49  ;;  %v2942_v52 = vpop.f32.mrb[130].mxu1  ;;  %3464 = vmatprep.mubr.bf16.mxu0 %v3110_v39 }
 0x4b3   : > { %v2943_v31 = vadd.f32 %v2942_v52, %v6982_v51  ;;  %v2944_v43 = vpop.f32.mrb[131].mxu1  ;;  %3465 = vmatmul.mubr.bf16.gmra.mrb[156].mxu0 %v3109_v3  ;;  %v3019_v7 = vmax.f32 %v2939_v35, 0.0 }
 0x4b4   : > { %v2945_v54 = vadd.f32 %v2944_v43, %v6983_v40  ;;  %v3020_v6 = vmax.f32 %v2941_v63, 0.0  ;;  %v6996_v43 = vld [vmem:[#allocation76_spill] sm:$0xff] }
 0x4b5   : > { %v3023_v17 = vmax.f32 %v2943_v31, 0.0 }
 0x4b6   : > { %v3024_v21 = vmax.f32 %v2945_v54, 0.0 }
 0x4b7   : > { %v3083_v22 = vpack.c.bf16 %v3023_v17, %v3019_v7  ;;  %v6997_v7 = vld [vmem:[#allocation78_spill] sm:$0xff] }
 0x4b8   : > { %v3084_v8 = vpack.c.bf16 %v3024_v21, %v3020_v6  ;;  %v2948_v9 = vpop.f32.mrb[132].mxu1  ;;  %v6998_v21 = vld [vmem:[#allocation80_spill] sm:$0xff] }
 0x4b9   : > { %v2949_v10 = vadd.f32 %v2948_v9, %v6984_v1  ;;  %v2950_v23 = vpop.f32.mrb[133].mxu1  ;;  %v6999_v9 = vld [vmem:[#allocation82_spill] sm:$0xff] }
 0x4ba   : > { %v2951_v24 = vadd.f32 %v2950_v23, %v6985_v2  ;;  %v2952_v56 = vpop.f32.mrb[134].mxu1  ;;  %3505 = vmatprep.mubr.bf16.mxu1 %v3084_v8 }
 0x4bb   : > { %v2953_v27 = vadd.f32 %v2952_v56, %v6986_v34  ;;  %v2954_v25 = vpop.f32.mrb[135].mxu1  ;;  %3506 = vmatmul.mubr.bf16.vlgmr.msra.gmra.mrb[160].mxu1 %v3083_v22  ;;  %v3027_v59 = vmax.f32 %v2949_v10, 0.0 }
 0x4bc   : > { %v2955_v4 = vadd.f32 %v2954_v25, %v6987_v37  ;;  %v3028_v33 = vmax.f32 %v2951_v24, 0.0  ;;  %v7000_v25 = vld [vmem:[#allocation84_spill] sm:$0xff] }
 0x4bd   : > { %v3031_v45 = vmax.f32 %v2953_v27, 0.0 }
 0x4be   : > { %v3032_v47 = vmax.f32 %v2955_v4, 0.0 }
 0x4bf   : > { %v3087_v5 = vpack.c.bf16 %v3031_v45, %v3027_v59  ;;  %v7001_v59 = vld [vmem:[#allocation86_spill] sm:$0xff] }
 0x4c0   : > { %v3088_v61 = vpack.c.bf16 %v3032_v47, %v3028_v33  ;;  %v2958_v32 = vpop.f32.mrb[136].mxu1  ;;  %v7002_v47 = vld [vmem:[#allocation88_spill] sm:$0xff] }
 0x4c1   : > { %v2959_v11 = vadd.f32 %v2958_v32, %v6988_v46  ;;  %v2960_v12 = vpop.f32.mrb[137].mxu1  ;;  %v7003_v32 = vld [vmem:[#allocation90_spill] sm:$0xff] }
 0x4c2   : > { %v2961_v62 = vadd.f32 %v2960_v12, %v6989_v42  ;;  %v2962_v14 = vpop.f32.mrb[138].mxu1  ;;  %3513 = vmatprep.mubr.bf16.mxu1 %v3088_v61 }
 0x4c3   : > { %v2963_v50 = vadd.f32 %v2962_v14, %v6990_v36  ;;  %v2964_v38 = vpop.f32.mrb[139].mxu1  ;;  %3514 = vmatmul.mubr.bf16.gmra.mrb[164].mxu1 %v3087_v5  ;;  %v3035_v44 = vmax.f32 %v2959_v11, 0.0 }
 0x4c4   : > { %v2965_v16 = vadd.f32 %v2964_v38, %v6991_v55  ;;  %v3036_v29 = vmax.f32 %v2961_v62, 0.0  ;;  %v7004_v38 = vld [vmem:[#allocation92_spill] sm:$0xff] }
 0x4c5   : > { %v3039_v18 = vmax.f32 %v2963_v50, 0.0 }
 0x4c6   : > { %v3040_v19 = vmax.f32 %v2965_v16, 0.0 }
 0x4c7   : > { %v3091_v20 = vpack.c.bf16 %v3039_v18, %v3035_v44  ;;  %v7005_v44 = vld [vmem:[#allocation94_spill] sm:$0xff] }
 0x4c8   : > { %v3092_v57 = vpack.c.bf16 %v3040_v19, %v3036_v29  ;;  %v2968_v28 = vpop.f32.mrb[140].mxu1  ;;  %v7006_v19 = vld [vmem:[#allocation96_spill] sm:$0xff] }
 0x4c9   : > { %v2969_v41 = vadd.f32 %v2968_v28, %v6992_v26  ;;  %v2970_v13 = vpop.f32.mrb[141].mxu1  ;;  %v7007_v28 = vld [vmem:[#allocation98_spill] sm:$0xff] }
 0x4ca   : > { %v2971_v0 = vadd.f32 %v2970_v13, %v6993_v53  ;;  %v2972_v15 = vpop.f32.mrb[142].mxu1  ;;  %3521 = vmatprep.mubr.bf16.mxu1 %v3092_v57 }
 0x4cb   : > { %v2973_v3 = vadd.f32 %v2972_v15, %v6994_v58  ;;  %v2974_v39 = vpop.f32.mrb[143].mxu1  ;;  %3522 = vmatmul.mubr.bf16.gmra.mrb[168].mxu1 %v3091_v20  ;;  %v3043_v35 = vmax.f32 %v2969_v41, 0.0 }
 0x4cc   : > { %v2975_v48 = vadd.f32 %v2974_v39, %v6995_v60  ;;  %v3044_v49 = vmax.f32 %v2971_v0, 0.0  ;;  %v7008_v39 = vld [vmem:[#allocation100_spill] sm:$0xff] }
 0x4cd   : > { %v3047_v30 = vmax.f32 %v2973_v3, 0.0 }
 0x4ce   : > { %v3048_v63 = vmax.f32 %v2975_v48, 0.0 }
 0x4cf   : > { %v3095_v52 = vpack.c.bf16 %v3047_v30, %v3043_v35  ;;  %v7009_v35 = vld [vmem:[#allocation102_spill] sm:$0xff] }
 0x4d0   : > { %v3096_v51 = vpack.c.bf16 %v3048_v63, %v3044_v49  ;;  %v2978_v31 = vpop.f32.mrb[144].mxu1  ;;  %v7010_v63 = vld [vmem:[#allocation104_spill] sm:$0xff] }
 0x4d1   : > { %v2979_v40 = vadd.f32 %v2978_v31, %v6996_v43  ;;  %v2980_v54 = vpop.f32.mrb[145].mxu1  ;;  %v7011_v31 = vld [vmem:[#allocation106_spill] sm:$0xff] }
 0x4d2   : > { %v2981_v17 = vadd.f32 %v2980_v54, %v6997_v7  ;;  %v2982_v6 = vpop.f32.mrb[146].mxu1  ;;  %3529 = vmatprep.mubr.bf16.mxu1 %v3096_v51 }
 0x4d3   : > { %v2983_v22 = vadd.f32 %v2982_v6, %v6998_v21  ;;  %v2984_v8 = vpop.f32.mrb[147].mxu1  ;;  %3530 = vmatmul.mubr.bf16.gmra.mrb[172].mxu1 %v3095_v52  ;;  %v3051_v10 = vmax.f32 %v2979_v40, 0.0 }
 0x4d4   : > { %v2985_v1 = vadd.f32 %v2984_v8, %v6999_v9  ;;  %v3052_v2 = vmax.f32 %v2981_v17, 0.0 }
 0x4d5   : > { %v3055_v23 = vmax.f32 %v2983_v22, 0.0 }
 0x4d6   : > { %v3056_v24 = vmax.f32 %v2985_v1, 0.0 }
 0x4d7   : > { %v3099_v56 = vpack.c.bf16 %v3055_v23, %v3051_v10 }
 0x4d8   : > { %v3100_v34 = vpack.c.bf16 %v3056_v24, %v3052_v2  ;;  %v2988_v27 = vpop.f32.mrb[148].mxu1 }
 0x4d9   : > { %v2989_v37 = vadd.f32 %v2988_v27, %v7000_v25  ;;  %v2990_v4 = vpop.f32.mrb[149].mxu1 }
 0x4da   : > { %v2991_v45 = vadd.f32 %v2990_v4, %v7001_v59  ;;  %v2992_v33 = vpop.f32.mrb[150].mxu1  ;;  %3537 = vmatprep.mubr.bf16.mxu1 %v3100_v34 }
 0x4db   : > { %v2993_v5 = vadd.f32 %v2992_v33, %v7002_v47  ;;  %v2994_v61 = vpop.f32.mrb[151].mxu1  ;;  %3538 = vmatmul.mubr.bf16.gmra.mrb[176].mxu1 %v3099_v56  ;;  %v3059_v11 = vmax.f32 %v2989_v37, 0.0 }
 0x4dc   : > { %v2995_v46 = vadd.f32 %v2994_v61, %v7003_v32  ;;  %v3060_v42 = vmax.f32 %v2991_v45, 0.0 }
 0x4dd   : > { %v3063_v12 = vmax.f32 %v2993_v5, 0.0 }
 0x4de   : > { %v3064_v62 = vmax.f32 %v2995_v46, 0.0 }
 0x4df   : > { %v3103_v14 = vpack.c.bf16 %v3063_v12, %v3059_v11 }
 0x4e0   : > { %v3104_v36 = vpack.c.bf16 %v3064_v62, %v3060_v42  ;;  %v2998_v50 = vpop.f32.mrb[152].mxu1 }
 0x4e1   : > { %v2999_v55 = vadd.f32 %v2998_v50, %v7004_v38  ;;  %v3000_v16 = vpop.f32.mrb[153].mxu1 }
 0x4e2   : > { %v3001_v18 = vadd.f32 %v3000_v16, %v7005_v44  ;;  %v3002_v29 = vpop.f32.mrb[154].mxu1  ;;  %3545 = vmatprep.mubr.bf16.mxu1 %v3104_v36 }
 0x4e3   : > { %v3003_v20 = vadd.f32 %v3002_v29, %v7006_v19  ;;  %v3004_v57 = vpop.f32.mrb[155].mxu1  ;;  %3546 = vmatmul.mubr.bf16.gmra.mrb[180].mxu1 %v3103_v14  ;;  %v3067_v41 = vmax.f32 %v2999_v55, 0.0 }
 0x4e4   : > { %v3005_v26 = vadd.f32 %v3004_v57, %v7007_v28  ;;  %v3068_v53 = vmax.f32 %v3001_v18, 0.0 }
 0x4e5   : > { %v3071_v13 = vmax.f32 %v3003_v20, 0.0 }
 0x4e6   : > { %v3072_v0 = vmax.f32 %v3005_v26, 0.0 }
 0x4e7   : > { %v3107_v15 = vpack.c.bf16 %v3071_v13, %v3067_v41 }
 0x4e8   : > { %v3108_v58 = vpack.c.bf16 %v3072_v0, %v3068_v53  ;;  %v3008_v3 = vpop.f32.mrb[156].mxu1 }
 0x4e9   : > { %v3009_v60 = vadd.f32 %v3008_v3, %v7008_v39  ;;  %v3010_v48 = vpop.f32.mrb[157].mxu1 }
 0x4ea   : > { %v3011_v30 = vadd.f32 %v3010_v48, %v7009_v35  ;;  %v3012_v49 = vpop.f32.mrb[158].mxu1  ;;  %3553 = vmatprep.mubr.bf16.mxu1 %v3108_v58 }
 0x4eb   : > { %v3013_v52 = vadd.f32 %v3012_v49, %v7010_v63  ;;  %v3014_v51 = vpop.f32.mrb[159].mxu1  ;;  %3554 = vmatmul.mubr.bf16.gmra.mrb[184].mxu1 %v3107_v15  ;;  %v3075_v40 = vmax.f32 %v3009_v60, 0.0 }
 0x4ec   : > { %v3015_v43 = vadd.f32 %v3014_v51, %v7011_v31  ;;  %v3076_v7 = vmax.f32 %v3011_v30, 0.0 }
 0x4ed   : > { %v3079_v54 = vmax.f32 %v3013_v52, 0.0 }
 0x4ee   : > { %v3080_v17 = vmax.f32 %v3015_v43, 0.0 }
 0x4ef   : > { %v3111_v6 = vpack.c.bf16 %v3079_v54, %v3075_v40 }
 0x4f0   : > { %v3112_v21 = vpack.c.bf16 %v3080_v17, %v3076_v7 }
 0x4f2   : > { %3561 = vmatprep.mubr.bf16.mxu1 %v3112_v21 }
 0x4f3   : > { %3562 = vmatmul.mubr.bf16.gmra.mrb[188].mxu1 %v3111_v6 }
 0x54e   : > { %v4349_v22 = vpop.f32.mrb[128].mxu0 }
 0x54f   : > { %v4350_v8 = vpop.f32.mrb[129].mxu0 }
 0x550   : > { %v6635_v9 = vadd.f32 %v4350_v8, %v4349_v22  ;;  %v4352_v1 = vpop.f32.mrb[130].mxu0 }
 0x551   : > { %v4353_v10 = vpop.f32.mrb[131].mxu0 }
 0x552   : > { %v6637_v23 = vadd.f32 %v4353_v10, %v4352_v1 }
 0x556   : > { %v4355_v2 = vpop.f32.mrb[132].mxu0 }
 0x557   : > { %v4356_v24 = vpop.f32.mrb[133].mxu0 }
 0x558   : > { %v6639_v56 = vadd.f32 %v4356_v24, %v4355_v2  ;;  %v4358_v34 = vpop.f32.mrb[134].mxu0 }
 0x559   : > { %v4359_v27 = vpop.f32.mrb[135].mxu0 }
 0x55a   : > { %v6641_v25 = vadd.f32 %v4359_v27, %v4358_v34 }
 0x55e   : > { %v4361_v37 = vpop.f32.mrb[136].mxu0 }
 0x55f   : > { %v4362_v4 = vpop.f32.mrb[137].mxu0 }
 0x560   : > { %v6643_v59 = vadd.f32 %v4362_v4, %v4361_v37  ;;  %v4364_v45 = vpop.f32.mrb[138].mxu0 }
 0x561   : > { %v4365_v33 = vpop.f32.mrb[139].mxu0 }
 0x562   : > { %v6645_v47 = vadd.f32 %v4365_v33, %v4364_v45 }
 0x566   : > { %v4367_v5 = vpop.f32.mrb[140].mxu0 }
 0x567   : > { %v4368_v61 = vpop.f32.mrb[141].mxu0 }
 0x568   : > { %v6647_v32 = vadd.f32 %v4368_v61, %v4367_v5  ;;  %v4370_v46 = vpop.f32.mrb[142].mxu0 }
 0x569   : > { %v4371_v11 = vpop.f32.mrb[143].mxu0 }
 0x56a   : > { %v6649_v12 = vadd.f32 %v4371_v11, %v4370_v46 }
 0x56e   : > { %v4373_v42 = vpop.f32.mrb[144].mxu0 }
 0x56f   : > { %v4374_v62 = vpop.f32.mrb[145].mxu0 }
 0x570   : > { %v6660_v14 = vadd.f32 %v4374_v62, %v4373_v42  ;;  %v4376_v36 = vpop.f32.mrb[146].mxu0 }
 0x571   : > { %5183 = shalt.err (!%p5180_p0)
}
 0x572   : > { %s5184_s23 = scalar_lea.hbm %s6655_s24, 4096  ;;  %s5188_s30 = scalar_lea.hbm %s6809_s11, 8192 }
 0x573   : > { %p5185_p5 = scmp.ne.s32.totalorder %s6655_s24, %s5184_s23  ;;  %p5189_p10 = scmp.lt.u32.totalorder %s6655_s24, %s6809_s11 }
 0x574   : > { %p5190_p12 = scmp.lt.u32.totalorder %s5188_s30, %s5184_s23  ;;  %p5192_p2 = scmp.lt.u32.totalorder %s5184_s23, %s6655_s24 }
 0x575   : > { %p5186_p6 = pnand %p5185_p5, %p7012_p3 }
 0x576   : > { %p5191_p1 = por %p5190_p12, %p5189_p10 }
 0x577   : > { %p5187_p9 = pneg %p5186_p6 }
 0x578   : > { %p5193_p4 = por %p5192_p2, %p5191_p1 }
 0x57a   : > { %p5194_p7 = pnand %p5193_p4, %p5187_p9 }
 0x57c   : > { %5197 = shalt.err (!%p5194_p7)
}
 0x57d   : > { %s5293_s29 = smov 256   ;;  %s5294_s13 = smov 16   ;;  %v4377_v50 = vpop.f32.mrb[147].mxu0  ;;  %v6703_v60 = vld [vmem:[%s6807_s9] ss:$0 sm:$0xff] }
 0x57e   : > { %4670 = dma.vmem_to_hbm [thread:$0]  (%p7012_p3), %s6658_s25, 4096, %s6655_s24, %s3784_s16, %s5293_s29, %s5293_s29, %s5294_s13   ;;  %v6686_v38 = vadd.f32 %v4377_v50, %v4376_v36  ;;  %v4379_v55 = vpop.f32.mrb[148].mxu0  ;;  %v3411_v30 = vadd.f32 %v6635_v9, %v6703_v60  ;;  %v3414_v51 = vadd.f32 %v6637_v23, %v6703_v60  ;;  %v3419_v21 = vadd.f32 %v6639_v56, %v6703_v60 }
 0x57f   : > { %v4380_v16 = vpop.f32.mrb[149].mxu0  ;;  %v3422_v1 = vadd.f32 %v6641_v25, %v6703_v60  ;;  %v3427_v45 = vadd.f32 %v6643_v59, %v6703_v60  ;;  %v3430_v25 = vadd.f32 %v6645_v47, %v6703_v60  ;;  %s3985_s25 = sshll.u32 %s6393_s14, 6  ;;  %s4283_s12 = sshll.u32 %s5379_s21, 10 }
 0x580   : > { %v6688_v44 = vadd.f32 %v4380_v16, %v4379_v55  ;;  %v4382_v18 = vpop.f32.mrb[150].mxu0  ;;  %s6726_s16 = scalar_lea.vmem [#allocation10], %s3985_s25  ;;  %s6752_s23 = scalar_lea.hbm %s6808_s10, %s4283_s12 }
 0x581   : > { %v4383_v29 = vpop.f32.mrb[151].mxu0  ;;  %s3797_s15 = sshll.u32 %s6726_s16, 4  ;;  %s3779_s20 = scalar_lea.sflag [#allocation4], %s6393_s14  ;;  %s6754_s15 = int_to_ptr.vmem [resolvable:$true] %s3797_s15 }
 0x582   : > { %v6690_v19 = vadd.f32 %v4383_v29, %v4382_v18  ;;  %v4385_v20 = vpop.f32.mrb[152].mxu0  ;;  %v3435_v29 = vadd.f32 %v6647_v32, %v6703_v60  ;;  %s5198_s5 = scalar_lea.vmem %s6754_s15, 1024  ;;  %s5295_s21 = smov [#allocation10]  }
 0x583   : > { %v4386_v57 = vpop.f32.mrb[153].mxu0  ;;  %p5199_p8 = scmp.ne.s32.totalorder %s6754_s15, %s5198_s5  ;;  %s5202_s30 = sshll.u32 %s5295_s21, 4  ;;  %s5203_s30 = int_to_ptr.vmem [resolvable:$false] %s5202_s30 }
 0x584   : > { %v6692_v28 = vadd.f32 %v4386_v57, %v4385_v20  ;;  %v4388_v26 = vpop.f32.mrb[154].mxu0  ;;  %s5204_s28 = scalar_lea.vmem %s5203_s30, 2048  ;;  %p5205_p0 = scmp.lt.s32.totalorder %s6754_s15, %s5203_s30 }
 0x585   : > { %v4389_v41 = vpop.f32.mrb[155].mxu0  ;;  %p5200_p11 = pnand %p5199_p8, %p7012_p3  ;;  %p5206_p5 = scmp.lt.s32.totalorder %s5204_s28, %s5198_s5 }
 0x586   : > { %v6694_v13 = vadd.f32 %v4389_v41, %v4388_v26  ;;  %v4391_v53 = vpop.f32.mrb[156].mxu0 }
 0x587   : > { %v4392_v0 = vpop.f32.mrb[157].mxu0  ;;  %p5201_p13 = pneg %p5200_p11  ;;  %p5207_p6 = por %p5206_p5, %p5205_p0 }
 0x588   : > { %v6696_v15 = vadd.f32 %v4392_v0, %v4391_v53  ;;  %v4394_v58 = vpop.f32.mrb[158].mxu0  ;;  %v3438_v53 = vadd.f32 %v6649_v12, %v6703_v60 }
 0x589   : > { %v4395_v3 = vpop.f32.mrb[159].mxu0  ;;  %p5208_p9 = pnand %p5207_p6, %p5201_p13 }
 0x58a   : > { %v6698_v39 = vadd.f32 %v4395_v3, %v4394_v58 }
 0x58e   : > { %v4413_v48 = vpop.f32.mrb[160].mxu1 }
 0x58f   : > { %v4414_v35 = vpop.f32.mrb[161].mxu1 }
 0x590   : > { %v4415_v49 = vadd.f32 %v4414_v35, %v4413_v48  ;;  %v4416_v63 = vpop.f32.mrb[162].mxu1 }
 0x591   : > { %v4417_v52 = vpop.f32.mrb[163].mxu1 }
 0x592   : > { %v3508_v31 = vadd.f32 %v4415_v49, %v3411_v30  ;;  %v4418_v43 = vadd.f32 %v4417_v52, %v4416_v63 }
 0x594   : > { %v4226_v40 = vmul.f32 -1.442695, %v3508_v31  ;;  %v3511_v54 = vadd.f32 %v4418_v43, %v3414_v51  ;;  %v3443_v31 = vadd.f32 %v6660_v14, %v6703_v60 }
 0x596   : > { %4994 = vpow2.f32 %v4226_v40  ;;  %v4227_v7 = vmul.f32 -1.442695, %v3511_v54  ;;  %v4419_v17 = vpop.f32.mrb[164].mxu1 }
 0x597   : > { %v4420_v6 = vpop.f32.mrb[165].mxu1 }
 0x598   : > { %4996 = vpow2.f32 %v4227_v7  ;;  %v4421_v22 = vadd.f32 %v4420_v6, %v4419_v17  ;;  %v4422_v8 = vpop.f32.mrb[166].mxu1  ;;  %v3446_v6 = vadd.f32 %v6686_v38, %v6703_v60  ;;  %v3451_v38 = vadd.f32 %v6688_v44, %v6703_v60 }
 0x599   : > { %v4423_v9 = vpop.f32.mrb[167].mxu1 }
 0x59a   : > { %v3516_v10 = vadd.f32 %v4421_v22, %v3419_v21  ;;  %v4424_v23 = vadd.f32 %v4423_v9, %v4422_v8 }
 0x59c   : > { %v4228_v2 = vmul.f32 -1.442695, %v3516_v10  ;;  %v3519_v24 = vadd.f32 %v4424_v23, %v3422_v1 }
 0x59e   : > { %4998 = vpow2.f32 %v4228_v2  ;;  %v4229_v34 = vmul.f32 -1.442695, %v3519_v24  ;;  %v4425_v27 = vpop.f32.mrb[168].mxu1 }
 0x59f   : > { %v4426_v37 = vpop.f32.mrb[169].mxu1 }
 0x5a0   : > { %v4995_v4 = vpop.eup %4994  ;;  %5000 = vpow2.f32 %v4229_v34  ;;  %v4427_v56 = vadd.f32 %v4426_v37, %v4425_v27  ;;  %v4428_v33 = vpop.f32.mrb[170].mxu1 }
 0x5a1   : > { %v3618_v5 = vadd.f32 1.0, %v4995_v4  ;;  %v4429_v61 = vpop.f32.mrb[171].mxu1 }
 0x5a2   : > { %v4997_v46 = vpop.eup %4996  ;;  %v3524_v11 = vadd.f32 %v4427_v56, %v3427_v45  ;;  %v4430_v42 = vadd.f32 %v4429_v61, %v4428_v33 }
 0x5a3   : > { %v3619_v62 = vadd.f32 1.0, %v4997_v46  ;;  %5002 = vrcp.f32 %v3618_v5  ;;  %v3454_v5 = vadd.f32 %v6690_v19, %v6703_v60 }
 0x5a4   : > { %v4230_v36 = vmul.f32 -1.442695, %v3524_v11  ;;  %v3527_v50 = vadd.f32 %v4430_v42, %v3430_v25 }
 0x5a5   : > { %5004 = vrcp.f32 %v3619_v62 }
 0x5a6   : > { %5006 = vpow2.f32 %v4230_v36  ;;  %v4231_v55 = vmul.f32 -1.442695, %v3527_v50  ;;  %v4431_v59 = vpop.f32.mrb[172].mxu1 }
 0x5a7   : > { %v4432_v16 = vpop.f32.mrb[173].mxu1 }
 0x5a8   : > { %v4999_v18 = vpop.eup %4998  ;;  %5008 = vpow2.f32 %v4231_v55  ;;  %v4433_v20 = vadd.f32 %v4432_v16, %v4431_v59  ;;  %v4434_v57 = vpop.f32.mrb[174].mxu1  ;;  %v3459_v16 = vadd.f32 %v6692_v28, %v6703_v60 }
 0x5a9   : > { %v3620_v47 = vadd.f32 1.0, %v4999_v18  ;;  %v4435_v26 = vpop.f32.mrb[175].mxu1 }
 0x5aa   : > { %v5001_v41 = vpop.eup %5000  ;;  %v3532_v0 = vadd.f32 %v4433_v20, %v3435_v29  ;;  %v4436_v58 = vadd.f32 %v4435_v26, %v4434_v57  ;;  %v3462_v26 = vadd.f32 %v6694_v13, %v6703_v60 }
 0x5ab   : > { %v3621_v3 = vadd.f32 1.0, %v5001_v41  ;;  %5010 = vrcp.f32 %v3620_v47 }
 0x5ac   : > { %v4232_v48 = vmul.f32 -1.442695, %v3532_v0  ;;  %v3535_v35 = vadd.f32 %v4436_v58, %v3438_v53 }
 0x5ad   : > { %5012 = vrcp.f32 %v3621_v3  ;;  %v5003_v30 = vpop.eup %5002 }
 0x5ae   : > { %5014 = vpow2.f32 %v4232_v48  ;;  %v4233_v32 = vmul.f32 -1.442695, %v3535_v35  ;;  %v4437_v49 = vpop.f32.mrb[176].mxu1 }
 0x5af   : > { %v5005_v63 = vpop.eup %5004  ;;  %v4438_v52 = vpop.f32.mrb[177].mxu1 }
 0x5b0   : > { %v5007_v51 = vpop.eup %5006  ;;  %v4289_v43 = vpack.c.bf16 %v5005_v63, %v5003_v30  ;;  %5016 = vpow2.f32 %v4233_v32  ;;  %v4439_v12 = vadd.f32 %v4438_v52, %v4437_v49  ;;  %v4440_v40 = vpop.f32.mrb[178].mxu1  ;;  %v3467_v63 = vadd.f32 %v6696_v15, %v6703_v60 }
 0x5b1   : > { %v3622_v54 = vadd.f32 1.0, %v5007_v51  ;;  %v4441_v7 = vpop.f32.mrb[179].mxu1 }
 0x5b2   : > { %v5009_v17 = vpop.eup %5008  ;;  %4290 = vst [vmem:[%s6726_s16] sm:$0xff] %v4289_v43   ;;  %v3540_v21 = vadd.f32 %v4439_v12, %v3443_v31  ;;  %v4442_v22 = vadd.f32 %v4441_v7, %v4440_v40  ;;  %v3470_v40 = vadd.f32 %v6698_v39, %v6703_v60 }
 0x5b3   : > { %v3623_v8 = vadd.f32 1.0, %v5009_v17  ;;  %5018 = vrcp.f32 %v3622_v54 }
 0x5b4   : > { %v4234_v9 = vmul.f32 -1.442695, %v3540_v21  ;;  %v3543_v14 = vadd.f32 %v4442_v22, %v3446_v6 }
 0x5b5   : > { %5020 = vrcp.f32 %v3623_v8  ;;  %v5011_v1 = vpop.eup %5010 }
 0x5b6   : > { %5022 = vpow2.f32 %v4234_v9  ;;  %v4235_v10 = vmul.f32 -1.442695, %v3543_v14  ;;  %v4443_v23 = vpop.f32.mrb[180].mxu1 }
 0x5b7   : > { %v5013_v2 = vpop.eup %5012  ;;  %v4444_v24 = vpop.f32.mrb[181].mxu1 }
 0x5b8   : > { %v5015_v34 = vpop.eup %5014  ;;  %v4294_v27 = vpack.c.bf16 %v5013_v2, %v5011_v1  ;;  %5024 = vpow2.f32 %v4235_v10  ;;  %v4445_v37 = vadd.f32 %v4444_v24, %v4443_v23  ;;  %v4446_v4 = vpop.f32.mrb[182].mxu1 }
 0x5b9   : > { %v3624_v45 = vadd.f32 1.0, %v5015_v34  ;;  %v4447_v56 = vpop.f32.mrb[183].mxu1 }
 0x5ba   : > { %v5017_v33 = vpop.eup %5016  ;;  %4326 = vst [vmem:[%s6726_s16 + $0x8] sm:$0xff] %v4294_v27   ;;  %v3548_v61 = vadd.f32 %v4445_v37, %v3451_v38  ;;  %v4448_v46 = vadd.f32 %v4447_v56, %v4446_v4 }
 0x5bb   : > { %v3625_v25 = vadd.f32 1.0, %v5017_v33  ;;  %5026 = vrcp.f32 %v3624_v45 }
 0x5bc   : > { %v4236_v11 = vmul.f32 -1.442695, %v3548_v61  ;;  %v3551_v42 = vadd.f32 %v4448_v46, %v3454_v5 }
 0x5bd   : > { %5028 = vrcp.f32 %v3625_v25  ;;  %v5019_v62 = vpop.eup %5018 }
 0x5be   : > { %5030 = vpow2.f32 %v4236_v11  ;;  %v4237_v44 = vmul.f32 -1.442695, %v3551_v42  ;;  %v4449_v36 = vpop.f32.mrb[184].mxu1 }
 0x5bf   : > { %v5021_v50 = vpop.eup %5020  ;;  %v4450_v55 = vpop.f32.mrb[185].mxu1 }
 0x5c0   : > { %v5023_v59 = vpop.eup %5022  ;;  %v4299_v19 = vpack.c.bf16 %v5021_v50, %v5019_v62  ;;  %5032 = vpow2.f32 %v4237_v44  ;;  %v4451_v18 = vadd.f32 %v4450_v55, %v4449_v36  ;;  %v4452_v29 = vpop.f32.mrb[186].mxu1 }
 0x5c1   : > { %v3626_v20 = vadd.f32 1.0, %v5023_v59  ;;  %v4453_v57 = vpop.f32.mrb[187].mxu1 }
 0x5c2   : > { %v5025_v47 = vpop.eup %5024  ;;  %4327 = vst [vmem:[%s6726_s16 + $0x10] sm:$0xff] %v4299_v19   ;;  %v3556_v41 = vadd.f32 %v4451_v18, %v3459_v16  ;;  %v4454_v53 = vadd.f32 %v4453_v57, %v4452_v29 }
 0x5c3   : > { %v3627_v0 = vadd.f32 1.0, %v5025_v47  ;;  %5034 = vrcp.f32 %v3626_v20 }
 0x5c4   : > { %v4238_v58 = vmul.f32 -1.442695, %v3556_v41  ;;  %v3559_v3 = vadd.f32 %v4454_v53, %v3462_v26 }
 0x5c5   : > { %5036 = vrcp.f32 %v3627_v0  ;;  %v5027_v48 = vpop.eup %5026 }
 0x5c6   : > { %5038 = vpow2.f32 %v4238_v58  ;;  %v4239_v28 = vmul.f32 -1.442695, %v3559_v3  ;;  %v4455_v35 = vpop.f32.mrb[188].mxu1 }
 0x5c7   : > { %v5029_v30 = vpop.eup %5028  ;;  %v4456_v32 = vpop.f32.mrb[189].mxu1 }
 0x5c8   : > { %v5031_v49 = vpop.eup %5030  ;;  %v4304_v13 = vpack.c.bf16 %v5029_v30, %v5027_v48  ;;  %5040 = vpow2.f32 %v4239_v28  ;;  %v4457_v52 = vadd.f32 %v4456_v32, %v4455_v35  ;;  %v4458_v51 = vpop.f32.mrb[190].mxu1 }
 0x5c9   : > { %v3628_v31 = vadd.f32 1.0, %v5031_v49  ;;  %v4459_v43 = vpop.f32.mrb[191].mxu1 }
 0x5ca   : > { %v5033_v12 = vpop.eup %5032  ;;  %4328 = vst [vmem:[%s6726_s16 + $0x18] sm:$0xff] %v4304_v13   ;;  %v3564_v54 = vadd.f32 %v4457_v52, %v3467_v63  ;;  %v4460_v7 = vadd.f32 %v4459_v43, %v4458_v51 }
 0x5cb   : > { %v3629_v17 = vadd.f32 1.0, %v5033_v12  ;;  %5042 = vrcp.f32 %v3628_v31 }
 0x5cc   : > { %v4240_v6 = vmul.f32 -1.442695, %v3564_v54  ;;  %v3567_v21 = vadd.f32 %v4460_v7, %v3470_v40 }
 0x5cd   : > { %5044 = vrcp.f32 %v3629_v17  ;;  %v5035_v15 = vpop.eup %5034 }
 0x5ce   : > { %5046 = vpow2.f32 %v4240_v6  ;;  %v4241_v22 = vmul.f32 -1.442695, %v3567_v21 }
 0x5cf   : > { %v5037_v8 = vpop.eup %5036 }
 0x5d0   : > { %v5039_v9 = vpop.eup %5038  ;;  %v4309_v14 = vpack.c.bf16 %v5037_v8, %v5035_v15  ;;  %5048 = vpow2.f32 %v4241_v22 }
 0x5d1   : > { %v3630_v1 = vadd.f32 1.0, %v5039_v9 }
 0x5d2   : > { %v5041_v10 = vpop.eup %5040  ;;  %4329 = vst [vmem:[%s6726_s16 + $0x20] sm:$0xff] %v4309_v14  }
 0x5d3   : > { %v3631_v39 = vadd.f32 1.0, %v5041_v10  ;;  %5050 = vrcp.f32 %v3630_v1 }
 0x5d5   : > { %5052 = vrcp.f32 %v3631_v39  ;;  %v5043_v60 = vpop.eup %5042 }
 0x5d7   : > { %v5045_v23 = vpop.eup %5044 }
 0x5d8   : > { %v5047_v2 = vpop.eup %5046  ;;  %v4314_v24 = vpack.c.bf16 %v5045_v23, %v5043_v60 }
 0x5d9   : > { %v3632_v34 = vadd.f32 1.0, %v5047_v2 }
 0x5da   : > { %v5049_v38 = vpop.eup %5048  ;;  %4330 = vst [vmem:[%s6726_s16 + $0x28] sm:$0xff] %v4314_v24  }
 0x5db   : > { %v3633_v27 = vadd.f32 1.0, %v5049_v38  ;;  %5054 = vrcp.f32 %v3632_v34 }
 0x5dd   : > { %5056 = vrcp.f32 %v3633_v27  ;;  %v5051_v37 = vpop.eup %5050 }
 0x5df   : > { %v5053_v4 = vpop.eup %5052 }
 0x5e0   : > { %v4319_v45 = vpack.c.bf16 %v5053_v4, %v5051_v37 }
 0x5e2   : > { %4331 = vst [vmem:[%s6726_s16 + $0x30] sm:$0xff] %v4319_v45  }
 0x5e5   : > { %v5055_v56 = vpop.eup %5054 }
 0x5e7   : > { %v5057_v33 = vpop.eup %5056 }
 0x5e8   : > { %v4324_v5 = vpack.c.bf16 %v5057_v33, %v5055_v56 }
 0x5ea   : > { %4332 = vst [vmem:[%s6726_s16 + $0x38] sm:$0xff] %v4324_v5  }
 0x5eb   : > { %5211 = shalt.err (!%p5208_p9)
}
 0x5ec   : > { %s5212_s26 = scalar_lea.hbm %s6752_s23, 1024  ;;  %s5216_s19 = scalar_lea.hbm %s6808_s10, 2048 }
 0x5ed   : > { %p5213_p10 = scmp.ne.s32.totalorder %s6752_s23, %s5212_s26  ;;  %p5217_p2 = scmp.lt.u32.totalorder %s6752_s23, %s6808_s10 }
 0x5ee   : > { %p5218_p4 = scmp.lt.u32.totalorder %s5216_s19, %s5212_s26  ;;  %p5220_p8 = scmp.lt.u32.totalorder %s5212_s26, %s6752_s23 }
 0x5ef   : > { %p5214_p12 = pnand %p5213_p10, %p7012_p3 }
 0x5f0   : > { %p5219_p7 = por %p5218_p4, %p5217_p2 }
 0x5f1   : > { %p5215_p1 = pneg %p5214_p12 }
 0x5f2   : > { %p5221_p11 = por %p5220_p8, %p5219_p7 }
 0x5f4   : > { %p5222_p13 = pnand %p5221_p11, %p5215_p1 }
 0x5f6   : > { %5225 = shalt.err (!%p5222_p13)
}
 0x5f7   : > { %s5296_s16 = smov 64   ;;  %s5297_s12 = smov 4  }
 0x5f8   : > { %4669 = dma.vmem_to_hbm [thread:$0]  (%p7012_p3), %s6754_s15, 1024, %s6752_s23, %s3779_s20, %s5296_s16, %s5296_s16, %s5297_s12  }
 0x5f9 PF: > { %s7013_s22 = sld [smem:[#allocation20_spill]]  ;;  %s7014_s17 = sld [smem:[#allocation18_spill]] }
 0x5fa   : > { %s7015_s5 = sld [smem:[#allocation23_spill]] }
 0x5ff   : > { %p4701_p0 = scmp.ge.s32.totalorder %s7013_s22, 2  ;;  %s3829_s21 = sand.u32 1, %s7014_s17  }
 0x600   : > { %p7016_p5 = scmp.ne.s32.totalorder %s7015_s5, 0  ;;  %s3830_s30 = scalar_lea.sflag [#allocation4], %s3829_s21 }
 0x602   : > { %p4687_p6 = pnand %p4701_p0, %p7016_p5 }
 0x604   : > { %5255 = dma.done.wait (!%p4687_p6), %s3830_s30, 1024  }
 0x605   : > { %5257 = vsyncadd (!%p4687_p6), %s3830_s30, 4294966272  ;;  %s3839_s28 = scalar_lea.sflag [#allocation12], %s3829_s21 }
 0x606   : > { %5259 = dma.done.wait (!%p4687_p6), %s3839_s28, 4096  }
 0x607   : > { %5261 = vsyncadd (!%p4687_p6), %s3839_s28, 4294963200  ;;  %s7017_s20 = sld [smem:[#allocation21_spill]]  ;;  %s7018_s26 = sld [smem:[#allocation19_spill]] }
 0x608   : > { %s7019_s19 = sld [smem:[#allocation22_spill]]  ;;  %s7020_s17 = smov %s5268_s18 }
 0x60d   : > { %p28_p3 = scmp.ge.s32.totalorder %s7017_s20, 4   ;;  %s7021_s18 = smov %s7018_s26 }
 0x60f   :  { %30 = sbr.rel (!%p28_p3) target bundleno = 10 (0xa), region = 135 }
 0x616   :  { %3844 = vsyncpa [#allocation3], 1 }
 0x617   :  { %3846 = vsyncpa [#allocation3 + $0x1], 1 }
 0x618   :  { %3847 = vsyncpa [#allocation6], 1 }
 0x619   :  { %3848 = vsyncpa [#allocation9], 1 }
 0x61a   :  { %3849 = vsyncpa [#allocation4], 1 }
 0x61b   :  { %3851 = vsyncpa [#allocation4 + $0x1], 1 }
 0x61c   :  { %3852 = vsyncpa [#allocation12], 1 }
 0x61d   :  { %3854 = vsyncpa [#allocation12 + $0x1], 1 }

</bundles_post_ra>
